<compile_context>
chip_gen: v6e
topology: v6e:2x2x1
jax: 0.10.0
libtpu: 0.0.40
codegen_flags: <defaults>
</compile_context>

<pallas_src>
import functools

import jax
import jax.numpy as jnp
from jax import lax
from jax.experimental import pallas as pl
from jax.experimental.pallas import tpu as pltpu


# ---------------------------------------------------------------------------
# Fused forward kernel (one board per grid step).
# ---------------------------------------------------------------------------
def _pvnet_kernel(x9_ref, w1_ref, b1_ref, w2_ref, b2_ref, w3_ref, b3_ref,
                  wpc_ref, bpc_ref, wpf_ref, bpf_ref,
                  wvc_ref, bvc_ref, wv1_ref, bv1_ref, wv2_ref, bv2_ref,
                  pol_ref, val_ref, pad2_ref, pad3_ref, *, H, W):
    HW = H * W
    f32 = jnp.float32
    bf16 = jnp.bfloat16

    # ---- conv1 (1 -> 32, 3x3, pad 1): K=9, done as 9 VPU multiply-adds ----
    x9 = x9_ref[0]                                    # (HW, 9) f32, im2col'd input
    w1 = w1_ref[...]                                  # (9, 32) f32
    a1 = jnp.zeros((HW, 32), f32)
    for k in range(9):
        a1 = a1 + x9[:, k:k + 1] * w1[k:k + 1, :]     # (HW,1)*(1,32) broadcast MAC
    a1 = jnp.maximum(a1 + b1_ref[...], 0.0)           # (HW, 32)

    # ---- conv2 (32 -> 64): in-VMEM zero-halo buffer + 9 shifted matmuls ----
    # Interior stored at rows [1:H+1] (outer dim) and cols [8:8+W] (sublane-aligned,
    # 8 = f32 sublane tile).  Halo cols 7 and 8+W / rows 0 and H+1 stay zero.
    pad2_ref[...] = jnp.zeros_like(pad2_ref)
    pad2_ref[1:1 + H, 8:8 + W, :] = a1.reshape(H, W, 32)
    a2 = jnp.zeros((HW, 64), f32)
    for dh in range(3):
        for dw in range(3):
            lhs = pad2_ref[dh:dh + H, 7 + dw:7 + dw + W, :].reshape(HW, 32)
            a2 = a2 + jnp.dot(lhs.astype(bf16), w2_ref[dh * 3 + dw],
                              preferred_element_type=f32)
    a2 = jnp.maximum(a2 + b2_ref[...], 0.0)            # (HW, 64)

    # ---- conv3 (64 -> 128) ----
    pad3_ref[...] = jnp.zeros_like(pad3_ref)
    pad3_ref[1:1 + H, 8:8 + W, :] = a2.reshape(H, W, 64)
    a3 = jnp.zeros((HW, 128), f32)
    for dh in range(3):
        for dw in range(3):
            lhs = pad3_ref[dh:dh + H, 7 + dw:7 + dw + W, :].reshape(HW, 64)
            a3 = a3 + jnp.dot(lhs.astype(bf16), w3_ref[dh * 3 + dw],
                              preferred_element_type=f32)
    a3 = jnp.maximum(a3 + b3_ref[...], 0.0)            # (HW, 128)
    a3_bf = a3.astype(bf16)

    # ---- policy head: 1x1 conv (128->4) + ReLU, NCHW-flatten Linear -> HW logits ----
    p = jnp.dot(a3_bf, wpc_ref[...], preferred_element_type=f32) + bpc_ref[...]
    p = jnp.maximum(p, 0.0)                            # (HW, 4), spatial on rows
    pol = bpf_ref[...]                                 # (HW, 1) bias column
    for c in range(4):                                 # per-channel (out, spatial) slab
        pol = pol + jnp.dot(wpf_ref[c], p[:, c:c + 1].astype(bf16),
                            preferred_element_type=f32)
    pol_ref[...] = pol.reshape(1, HW, 1)

    # ---- value head: 1x1 conv (128->2) + ReLU, Linear(2*HW->64)+ReLU, Linear(64->1)+Tanh ----
    v = jnp.dot(a3_bf, wvc_ref[...], preferred_element_type=f32) + bvc_ref[...]
    v = jnp.maximum(v, 0.0)                            # (HW, 2)
    v1 = bv1_ref[...]                                  # (64, 1)
    for c in range(2):
        v1 = v1 + jnp.dot(wv1_ref[c], v[:, c:c + 1].astype(bf16),
                          preferred_element_type=f32)
    v1 = jnp.maximum(v1, 0.0)                          # (64, 1)
    s = jnp.sum(v1 * wv2_ref[...], axis=0, keepdims=True) + bv2_ref[...]   # (1, 1)
    val_ref[...] = jnp.tanh(s).reshape(1, 1, 1)


# ---------------------------------------------------------------------------
# Wrapper: im2col for the 1-channel input + the fused pallas_call.
# ---------------------------------------------------------------------------
def _im2col_1ch(x):
    """x: (B, H, W) f32 -> (B, H*W, 9) patches, patch index k = dh*3 + dw."""
    B, H, W = x.shape
    xp = jnp.pad(x, ((0, 0), (1, 1), (1, 1)))
    cols = [xp[:, dh:dh + H, dw:dw + W] for dh in range(3) for dw in range(3)]
    return jnp.stack(cols, axis=-1).reshape(B, H * W, 9)


def _const_spec(arr):
    zeros = (0,) * arr.ndim
    return pl.BlockSpec(arr.shape, lambda b, _z=zeros: _z)


def policy_value_forward(x, kp, *, board_size):
    B = x.shape[0]
    H = W = board_size
    HW = H * W
    assert board_size % 8 == 0, "board_size must be a multiple of 8 (layout-trivial reshapes)"

    x9 = _im2col_1ch(x.astype(jnp.float32))            # tiny: 9 f32 per board cell

    kernel = functools.partial(_pvnet_kernel, H=H, W=W)

    weight_names = ["w1", "b1", "w2", "b2", "w3", "b3",
                    "wp_conv", "bp_conv", "wp_fc", "bp_fc",
                    "wv_conv", "bv_conv", "wv_fc1", "bv_fc1",
                    "wv_fc2", "bv_fc2"]
    weights = [kp[n] for n in weight_names]

    flops_per_board = (2 * HW * (9 * 32 + 9 * 32 * 64 + 9 * 64 * 128 + 128 * 4 + 128 * 2)
                       + 2 * (4 * HW * HW + 2 * 64 * HW + 64))
    weight_bytes = sum(int(w.size) * w.dtype.itemsize for w in weights)
    cost = pl.CostEstimate(
        flops=int(B * flops_per_board),
        transcendentals=int(B),
        bytes_accessed=int(weight_bytes + x9.size * 4 + B * (HW + 1) * 4),
    )

    in_specs = ([pl.BlockSpec((1, HW, 9), lambda b: (b, 0, 0))]
                + [_const_spec(w) for w in weights])

    pol, val = pl.pallas_call(
        kernel,
        grid=(B,),
        in_specs=in_specs,
        out_specs=(
            pl.BlockSpec((1, HW, 1), lambda b: (b, 0, 0)),
            pl.BlockSpec((1, 1, 1), lambda b: (b, 0, 0)),
        ),
        out_shape=(
            jax.ShapeDtypeStruct((B, HW, 1), jnp.float32),
            jax.ShapeDtypeStruct((B, 1, 1), jnp.float32),
        ),
        scratch_shapes=[
            pltpu.VMEM((H + 2, W + 9, 32), jnp.float32),   # zero-haloed conv2 input
            pltpu.VMEM((H + 2, W + 9, 64), jnp.float32),   # zero-haloed conv3 input
        ],
        compiler_params=pltpu.CompilerParams(
            dimension_semantics=("parallel",),             # shard boards over v7x's 2 TCs
            vmem_limit_bytes=32 * 1024 * 1024,
        ),
        cost_estimate=cost,
    )(x9, *weights)

    return pol[:, :, 0], val.reshape(B)


# ---------------------------------------------------------------------------
# Parameters: created in PyTorch layout, then converted to the kernel layout.
# ---------------------------------------------------------------------------
def init_torch_params(board_size, key):
    HW = board_size * board_size
    shapes = {
        "conv1_w": (32, 1, 3, 3),   "conv1_b": (32,),
        "conv2_w": (64, 32, 3, 3),  "conv2_b": (64,),
        "conv3_w": (128, 64, 3, 3), "conv3_b": (128,),
        "pconv_w": (4, 128, 1, 1),  "pconv_b": (4,),
        "pfc_w": (HW, 4 * HW),      "pfc_b": (HW,),
        "vconv_w": (2, 128, 1, 1),  "vconv_b": (2,),
        "vfc1_w": (64, 2 * HW),     "vfc1_b": (64,),
        "vfc2_w": (1, 64),          "vfc2_b": (1,),
    }
    keys = jax.random.split(key, len(shapes))
    return {name: 0.05 * jax.random.normal(k, shp, dtype=jnp.float32)
            for (name, shp), k in zip(sorted(shapes.items()), keys)}


def prepare_kernel_params(tp, board_size):
    """Convert torch-layout params to kernel layout (NCHW flatten folded into FC weights)."""
    HW = board_size * board_size
    bf16, f32 = jnp.bfloat16, jnp.float32
    kp = {}
    # conv weights: (O, I, kh, kw) -> (kh*3+kw, I, O)
    kp["w1"] = tp["conv1_w"].transpose(2, 3, 1, 0).reshape(9, 32).astype(f32)
    kp["b1"] = tp["conv1_b"].reshape(1, 32).astype(f32)
    kp["w2"] = tp["conv2_w"].transpose(2, 3, 1, 0).reshape(9, 32, 64).astype(bf16)
    kp["b2"] = tp["conv2_b"].reshape(1, 64).astype(f32)
    kp["w3"] = tp["conv3_w"].transpose(2, 3, 1, 0).reshape(9, 64, 128).astype(bf16)
    kp["b3"] = tp["conv3_b"].reshape(1, 128).astype(f32)
    # 1x1 convs: (O, I, 1, 1) -> (I, O)
    kp["wp_conv"] = tp["pconv_w"][:, :, 0, 0].T.astype(bf16)              # (128, 4)
    kp["bp_conv"] = tp["pconv_b"].reshape(1, 4).astype(f32)
    # policy FC: torch weight (HW, 4*HW), input index c*HW+s (NCHW flatten)
    #  -> per-channel slabs (4, HW_out, HW_spatial)
    kp["wp_fc"] = tp["pfc_w"].reshape(HW, 4, HW).transpose(1, 0, 2).astype(bf16)
    kp["bp_fc"] = tp["pfc_b"].reshape(HW, 1).astype(f32)
    kp["wv_conv"] = tp["vconv_w"][:, :, 0, 0].T.astype(bf16)              # (128, 2)
    kp["bv_conv"] = tp["vconv_b"].reshape(1, 2).astype(f32)
    kp["wv_fc1"] = tp["vfc1_w"].reshape(64, 2, HW).transpose(1, 0, 2).astype(bf16)
    kp["bv_fc1"] = tp["vfc1_b"].reshape(64, 1).astype(f32)
    kp["wv_fc2"] = tp["vfc2_w"].reshape(1, 64).T.astype(f32)              # (64, 1)
    kp["bv_fc2"] = tp["vfc2_b"].reshape(1, 1).astype(f32)
    return kp


# ---------------------------------------------------------------------------
# Pure-JAX reference (exact PyTorch semantics) for numerical validation.
# ---------------------------------------------------------------------------
def reference_forward(x, tp):
    B = x.shape[0]
    dn = ("NCHW", "OIHW", "NCHW")

    def conv(h, w, b, pad):
        out = lax.conv_general_dilated(h, w, (1, 1), pad, dimension_numbers=dn)
        return out + b[None, :, None, None]

    h = x.astype(jnp.float32)[:, None, :, :]
    h = jax.nn.relu(conv(h, tp["conv1_w"], tp["conv1_b"], ((1, 1), (1, 1))))
    h = jax.nn.relu(conv(h, tp["conv2_w"], tp["conv2_b"], ((1, 1), (1, 1))))
    h = jax.nn.relu(conv(h, tp["conv3_w"], tp["conv3_b"], ((1, 1), (1, 1))))

    p = jax.nn.relu(conv(h, tp["pconv_w"], tp["pconv_b"], ((0, 0), (0, 0))))
    policy = p.reshape(B, -1) @ tp["pfc_w"].T + tp["pfc_b"]

    v = jax.nn.relu(conv(h, tp["vconv_w"], tp["vconv_b"], ((0, 0), (0, 0))))
    v = jax.nn.relu(v.reshape(B, -1) @ tp["vfc1_w"].T + tp["vfc1_b"])
    v = jnp.tanh(v @ tp["vfc2_w"].T + tp["vfc2_b"])
    return policy, v.reshape(-1)


if __name__ == "__main__":
    board_size = 8
    batch = 2

    key = jax.random.PRNGKey(0)
    k_params, k_x = jax.random.split(key)
    tparams = init_torch_params(board_size, k_params)
    kparams = prepare_kernel_params(tparams, board_size)
    x = jax.random.uniform(k_x, (batch, board_size, board_size),
                           dtype=jnp.float32, minval=-1.0, maxval=1.0)

    fwd = jax.jit(functools.partial(policy_value_forward, board_size=board_size))
    policy, value = fwd(x, kparams)
    jax.block_until_ready((policy, value))

    assert policy.shape == (batch, board_size * board_size), policy.shape
    assert value.shape == (batch,), value.shape
    assert bool(jnp.all(jnp.abs(value) <= 1.0))

    # numerical check against an exact f32 reference (kernel uses bf16 matmul inputs)
    ref_policy, ref_value = reference_forward(x, tparams)
    p_err = float(jnp.max(jnp.abs(policy - ref_policy)))
    v_err = float(jnp.max(jnp.abs(value - ref_value)))
    assert p_err < 1e-2 and v_err < 1e-2, (p_err, v_err)

    print("KERNEL_OK")
</pallas_src>

<mosaic_0001>
module attributes {stable_mosaic.version = 11 : i64} {
  func.func @_pvnet_kernel(%arg0: i32, %arg1: memref<1x64x9xf32, #tpu.memory_space<vmem>>, %arg2: memref<9x32xf32, #tpu.memory_space<vmem>>, %arg3: memref<1x32xf32, #tpu.memory_space<vmem>>, %arg4: memref<9x32x64xbf16, #tpu.memory_space<vmem>>, %arg5: memref<1x64xf32, #tpu.memory_space<vmem>>, %arg6: memref<9x64x128xbf16, #tpu.memory_space<vmem>>, %arg7: memref<1x128xf32, #tpu.memory_space<vmem>>, %arg8: memref<128x4xbf16, #tpu.memory_space<vmem>>, %arg9: memref<1x4xf32, #tpu.memory_space<vmem>>, %arg10: memref<4x64x64xbf16, #tpu.memory_space<vmem>>, %arg11: memref<64x1xf32, #tpu.memory_space<vmem>>, %arg12: memref<128x2xbf16, #tpu.memory_space<vmem>>, %arg13: memref<1x2xf32, #tpu.memory_space<vmem>>, %arg14: memref<2x64x64xbf16, #tpu.memory_space<vmem>>, %arg15: memref<64x1xf32, #tpu.memory_space<vmem>>, %arg16: memref<64x1xf32, #tpu.memory_space<vmem>>, %arg17: memref<1x1xf32, #tpu.memory_space<vmem>>, %arg18: memref<1x64x1xf32, #tpu.memory_space<vmem>>, %arg19: memref<1x1x1xf32, #tpu.memory_space<vmem>>, %arg20: memref<10x17x32xf32, #tpu.memory_space<vmem>>, %arg21: memref<10x17x64xf32, #tpu.memory_space<vmem>>) attributes {dimension_semantics = [#tpu.dimension_semantics<parallel>], iteration_bounds = array<i64: 2>, scalar_prefetch = 0 : i64, scratch_operands = 2 : i64, tpu.core_type = #tpu.core_type<tc>, window_params = [{transform_indices = @transform_0, window_bounds = array<i64: 1, 64, 9>}, {pipeline_mode = #tpu.pipeline_mode<synchronous>, transform_indices = @transform_1, window_bounds = array<i64: 9, 32>}, {pipeline_mode = #tpu.pipeline_mode<synchronous>, transform_indices = @transform_2, window_bounds = array<i64: 1, 32>}, {pipeline_mode = #tpu.pipeline_mode<synchronous>, transform_indices = @transform_3, window_bounds = array<i64: 9, 32, 64>}, {pipeline_mode = #tpu.pipeline_mode<synchronous>, transform_indices = @transform_4, window_bounds = array<i64: 1, 64>}, {pipeline_mode = #tpu.pipeline_mode<synchronous>, transform_indices = @transform_5, window_bounds = array<i64: 9, 64, 128>}, {pipeline_mode = #tpu.pipeline_mode<synchronous>, transform_indices = @transform_6, window_bounds = array<i64: 1, 128>}, {pipeline_mode = #tpu.pipeline_mode<synchronous>, transform_indices = @transform_7, window_bounds = array<i64: 128, 4>}, {pipeline_mode = #tpu.pipeline_mode<synchronous>, transform_indices = @transform_8, window_bounds = array<i64: 1, 4>}, {pipeline_mode = #tpu.pipeline_mode<synchronous>, transform_indices = @transform_9, window_bounds = array<i64: 4, 64, 64>}, {pipeline_mode = #tpu.pipeline_mode<synchronous>, transform_indices = @transform_10, window_bounds = array<i64: 64, 1>}, {pipeline_mode = #tpu.pipeline_mode<synchronous>, transform_indices = @transform_11, window_bounds = array<i64: 128, 2>}, {pipeline_mode = #tpu.pipeline_mode<synchronous>, transform_indices = @transform_12, window_bounds = array<i64: 1, 2>}, {pipeline_mode = #tpu.pipeline_mode<synchronous>, transform_indices = @transform_13, window_bounds = array<i64: 2, 64, 64>}, {pipeline_mode = #tpu.pipeline_mode<synchronous>, transform_indices = @transform_14, window_bounds = array<i64: 64, 1>}, {pipeline_mode = #tpu.pipeline_mode<synchronous>, transform_indices = @transform_15, window_bounds = array<i64: 64, 1>}, {pipeline_mode = #tpu.pipeline_mode<synchronous>, transform_indices = @transform_16, window_bounds = array<i64: 1, 1>}, {transform_indices = @transform_17, window_bounds = array<i64: 1, 64, 1>}, {transform_indices = @transform_18, window_bounds = array<i64: 1, 1, 1>}]} {
    %c0 = arith.constant 0 : index
    %c0_0 = arith.constant 0 : index
    %c0_1 = arith.constant 0 : index
    %0 = vector.load %arg1[%c0, %c0_0, %c0_1] : memref<1x64x9xf32, #tpu.memory_space<vmem>>, vector<1x64x9xf32>
    %1 = vector.shape_cast %0 : vector<1x64x9xf32> to vector<64x9xf32>
    %c0_2 = arith.constant 0 : index
    %c0_3 = arith.constant 0 : index
    %2 = vector.load %arg2[%c0_2, %c0_3] : memref<9x32xf32, #tpu.memory_space<vmem>>, vector<9x32xf32>
    %cst = arith.constant 0.000000e+00 : f32
    %3 = vector.broadcast %cst : f32 to vector<64x32xf32>
    %4 = vector.extract_strided_slice %1 {offsets = [0, 0], sizes = [64, 1], strides = [1, 1]} : vector<64x9xf32> to vector<64x1xf32>
    %5 = vector.extract_strided_slice %2 {offsets = [0, 0], sizes = [1, 32], strides = [1, 1]} : vector<9x32xf32> to vector<1x32xf32>
    %6 = vector.broadcast %4 : vector<64x1xf32> to vector<64x32xf32>
    %7 = vector.broadcast %5 : vector<1x32xf32> to vector<64x32xf32>
    %8 = arith.mulf %6, %7 : vector<64x32xf32>
    %9 = arith.addf %3, %8 : vector<64x32xf32>
    %10 = vector.extract_strided_slice %1 {offsets = [0, 1], sizes = [64, 1], strides = [1, 1]} : vector<64x9xf32> to vector<64x1xf32>
    %11 = vector.extract_strided_slice %2 {offsets = [1, 0], sizes = [1, 32], strides = [1, 1]} : vector<9x32xf32> to vector<1x32xf32>
    %12 = vector.broadcast %10 : vector<64x1xf32> to vector<64x32xf32>
    %13 = vector.broadcast %11 : vector<1x32xf32> to vector<64x32xf32>
    %14 = arith.mulf %12, %13 : vector<64x32xf32>
    %15 = arith.addf %9, %14 : vector<64x32xf32>
    %16 = vector.extract_strided_slice %1 {offsets = [0, 2], sizes = [64, 1], strides = [1, 1]} : vector<64x9xf32> to vector<64x1xf32>
    %17 = vector.extract_strided_slice %2 {offsets = [2, 0], sizes = [1, 32], strides = [1, 1]} : vector<9x32xf32> to vector<1x32xf32>
    %18 = vector.broadcast %16 : vector<64x1xf32> to vector<64x32xf32>
    %19 = vector.broadcast %17 : vector<1x32xf32> to vector<64x32xf32>
    %20 = arith.mulf %18, %19 : vector<64x32xf32>
    %21 = arith.addf %15, %20 : vector<64x32xf32>
    %22 = vector.extract_strided_slice %1 {offsets = [0, 3], sizes = [64, 1], strides = [1, 1]} : vector<64x9xf32> to vector<64x1xf32>
    %23 = vector.extract_strided_slice %2 {offsets = [3, 0], sizes = [1, 32], strides = [1, 1]} : vector<9x32xf32> to vector<1x32xf32>
    %24 = vector.broadcast %22 : vector<64x1xf32> to vector<64x32xf32>
    %25 = vector.broadcast %23 : vector<1x32xf32> to vector<64x32xf32>
    %26 = arith.mulf %24, %25 : vector<64x32xf32>
    %27 = arith.addf %21, %26 : vector<64x32xf32>
    %28 = vector.extract_strided_slice %1 {offsets = [0, 4], sizes = [64, 1], strides = [1, 1]} : vector<64x9xf32> to vector<64x1xf32>
    %29 = vector.extract_strided_slice %2 {offsets = [4, 0], sizes = [1, 32], strides = [1, 1]} : vector<9x32xf32> to vector<1x32xf32>
    %30 = vector.broadcast %28 : vector<64x1xf32> to vector<64x32xf32>
    %31 = vector.broadcast %29 : vector<1x32xf32> to vector<64x32xf32>
    %32 = arith.mulf %30, %31 : vector<64x32xf32>
    %33 = arith.addf %27, %32 : vector<64x32xf32>
    %34 = vector.extract_strided_slice %1 {offsets = [0, 5], sizes = [64, 1], strides = [1, 1]} : vector<64x9xf32> to vector<64x1xf32>
    %35 = vector.extract_strided_slice %2 {offsets = [5, 0], sizes = [1, 32], strides = [1, 1]} : vector<9x32xf32> to vector<1x32xf32>
    %36 = vector.broadcast %34 : vector<64x1xf32> to vector<64x32xf32>
    %37 = vector.broadcast %35 : vector<1x32xf32> to vector<64x32xf32>
    %38 = arith.mulf %36, %37 : vector<64x32xf32>
    %39 = arith.addf %33, %38 : vector<64x32xf32>
    %40 = vector.extract_strided_slice %1 {offsets = [0, 6], sizes = [64, 1], strides = [1, 1]} : vector<64x9xf32> to vector<64x1xf32>
    %41 = vector.extract_strided_slice %2 {offsets = [6, 0], sizes = [1, 32], strides = [1, 1]} : vector<9x32xf32> to vector<1x32xf32>
    %42 = vector.broadcast %40 : vector<64x1xf32> to vector<64x32xf32>
    %43 = vector.broadcast %41 : vector<1x32xf32> to vector<64x32xf32>
    %44 = arith.mulf %42, %43 : vector<64x32xf32>
    %45 = arith.addf %39, %44 : vector<64x32xf32>
    %46 = vector.extract_strided_slice %1 {offsets = [0, 7], sizes = [64, 1], strides = [1, 1]} : vector<64x9xf32> to vector<64x1xf32>
    %47 = vector.extract_strided_slice %2 {offsets = [7, 0], sizes = [1, 32], strides = [1, 1]} : vector<9x32xf32> to vector<1x32xf32>
    %48 = vector.broadcast %46 : vector<64x1xf32> to vector<64x32xf32>
    %49 = vector.broadcast %47 : vector<1x32xf32> to vector<64x32xf32>
    %50 = arith.mulf %48, %49 : vector<64x32xf32>
    %51 = arith.addf %45, %50 : vector<64x32xf32>
    %52 = vector.extract_strided_slice %1 {offsets = [0, 8], sizes = [64, 1], strides = [1, 1]} : vector<64x9xf32> to vector<64x1xf32>
    %53 = vector.extract_strided_slice %2 {offsets = [8, 0], sizes = [1, 32], strides = [1, 1]} : vector<9x32xf32> to vector<1x32xf32>
    %54 = vector.broadcast %52 : vector<64x1xf32> to vector<64x32xf32>
    %55 = vector.broadcast %53 : vector<1x32xf32> to vector<64x32xf32>
    %56 = arith.mulf %54, %55 : vector<64x32xf32>
    %57 = arith.addf %51, %56 : vector<64x32xf32>
    %c0_4 = arith.constant 0 : index
    %c0_5 = arith.constant 0 : index
    %58 = vector.load %arg3[%c0_4, %c0_5] : memref<1x32xf32, #tpu.memory_space<vmem>>, vector<1x32xf32>
    %59 = vector.broadcast %58 : vector<1x32xf32> to vector<64x32xf32>
    %60 = arith.addf %57, %59 : vector<64x32xf32>
    %cst_6 = arith.constant 0.000000e+00 : f32
    %61 = vector.broadcast %cst_6 : f32 to vector<64x32xf32>
    %62 = arith.maximumf %60, %61 : vector<64x32xf32>
    %cst_7 = arith.constant 0.000000e+00 : f32
    %63 = vector.broadcast %cst_7 : f32 to vector<10x17x32xf32>
    %c0_8 = arith.constant 0 : index
    %c0_9 = arith.constant 0 : index
    %c0_10 = arith.constant 0 : index
    %64 = vector.load %arg20[%c0_8, %c0_9, %c0_10] : memref<10x17x32xf32, #tpu.memory_space<vmem>>, vector<10x17x32xf32>
    tpu.vector_store %arg20[%c0_8, %c0_9, %c0_10], %63 {strides = array<i32>} : memref<10x17x32xf32, #tpu.memory_space<vmem>>, vector<10x17x32xf32>,
    %65 = vector.shape_cast %62 : vector<64x32xf32> to vector<8x8x32xf32>
    %c1 = arith.constant 1 : index
    %c8 = arith.constant 8 : index
    %c0_11 = arith.constant 0 : index
    %66 = vector.load %arg20[%c1, %c8, %c0_11] : memref<10x17x32xf32, #tpu.memory_space<vmem>>, vector<8x8x32xf32>
    tpu.vector_store %arg20[%c1, %c8, %c0_11], %65 {strides = array<i32>} : memref<10x17x32xf32, #tpu.memory_space<vmem>>, vector<8x8x32xf32>,
    %cst_12 = arith.constant 0.000000e+00 : f32
    %67 = vector.broadcast %cst_12 : f32 to vector<64x64xf32>
    %c0_13 = arith.constant 0 : index
    %c7 = arith.constant 7 : index
    %c0_14 = arith.constant 0 : index
    %68 = vector.load %arg20[%c0_13, %c7, %c0_14] : memref<10x17x32xf32, #tpu.memory_space<vmem>>, vector<8x8x32xf32>
    %69 = vector.shape_cast %68 : vector<8x8x32xf32> to vector<64x32xf32>
    %70 = arith.truncf %69 : vector<64x32xf32> to vector<64x32xbf16>
    %c0_15 = arith.constant 0 : index
    %c0_16 = arith.constant 0 : index
    %c0_17 = arith.constant 0 : index
    %71 = vector.load %arg4[%c0_15, %c0_16, %c0_17] : memref<9x32x64xbf16, #tpu.memory_space<vmem>>, vector<1x32x64xbf16>
    %72 = vector.shape_cast %71 : vector<1x32x64xbf16> to vector<32x64xbf16>
    %cst_18 = arith.constant dense<0.000000e+00> : vector<64x64xf32>
    %73 = tpu.matmul %70, %72, %cst_18 {dimension_numbers = #tpu.dot_dimension_numbers<[1], [0], [0], [1], [0, 0, 1, 1], [], []>} : vector<64x32xbf16>, vector<32x64xbf16>, vector<64x64xf32> -> vector<64x64xf32>
    %74 = arith.addf %67, %73 : vector<64x64xf32>
    %c0_19 = arith.constant 0 : index
    %c8_20 = arith.constant 8 : index
    %c0_21 = arith.constant 0 : index
    %75 = vector.load %arg20[%c0_19, %c8_20, %c0_21] : memref<10x17x32xf32, #tpu.memory_space<vmem>>, vector<8x8x32xf32>
    %76 = vector.shape_cast %75 : vector<8x8x32xf32> to vector<64x32xf32>
    %77 = arith.truncf %76 : vector<64x32xf32> to vector<64x32xbf16>
    %c1_22 = arith.constant 1 : index
    %c0_23 = arith.constant 0 : index
    %c0_24 = arith.constant 0 : index
    %78 = vector.load %arg4[%c1_22, %c0_23, %c0_24] : memref<9x32x64xbf16, #tpu.memory_space<vmem>>, vector<1x32x64xbf16>
    %79 = vector.shape_cast %78 : vector<1x32x64xbf16> to vector<32x64xbf16>
    %cst_25 = arith.constant dense<0.000000e+00> : vector<64x64xf32>
    %80 = tpu.matmul %77, %79, %cst_25 {dimension_numbers = #tpu.dot_dimension_numbers<[1], [0], [0], [1], [0, 0, 1, 1], [], []>} : vector<64x32xbf16>, vector<32x64xbf16>, vector<64x64xf32> -> vector<64x64xf32>
    %81 = arith.addf %74, %80 : vector<64x64xf32>
    %c0_26 = arith.constant 0 : index
    %c9 = arith.constant 9 : index
    %c0_27 = arith.constant 0 : index
    %82 = vector.load %arg20[%c0_26, %c9, %c0_27] : memref<10x17x32xf32, #tpu.memory_space<vmem>>, vector<8x8x32xf32>
    %83 = vector.shape_cast %82 : vector<8x8x32xf32> to vector<64x32xf32>
    %84 = arith.truncf %83 : vector<64x32xf32> to vector<64x32xbf16>
    %c2 = arith.constant 2 : index
    %c0_28 = arith.constant 0 : index
    %c0_29 = arith.constant 0 : index
    %85 = vector.load %arg4[%c2, %c0_28, %c0_29] : memref<9x32x64xbf16, #tpu.memory_space<vmem>>, vector<1x32x64xbf16>
    %86 = vector.shape_cast %85 : vector<1x32x64xbf16> to vector<32x64xbf16>
    %cst_30 = arith.constant dense<0.000000e+00> : vector<64x64xf32>
    %87 = tpu.matmul %84, %86, %cst_30 {dimension_numbers = #tpu.dot_dimension_numbers<[1], [0], [0], [1], [0, 0, 1, 1], [], []>} : vector<64x32xbf16>, vector<32x64xbf16>, vector<64x64xf32> -> vector<64x64xf32>
    %88 = arith.addf %81, %87 : vector<64x64xf32>
    %c1_31 = arith.constant 1 : index
    %c7_32 = arith.constant 7 : index
    %c0_33 = arith.constant 0 : index
    %89 = vector.load %arg20[%c1_31, %c7_32, %c0_33] : memref<10x17x32xf32, #tpu.memory_space<vmem>>, vector<8x8x32xf32>
    %90 = vector.shape_cast %89 : vector<8x8x32xf32> to vector<64x32xf32>
    %91 = arith.truncf %90 : vector<64x32xf32> to vector<64x32xbf16>
    %c3 = arith.constant 3 : index
    %c0_34 = arith.constant 0 : index
    %c0_35 = arith.constant 0 : index
    %92 = vector.load %arg4[%c3, %c0_34, %c0_35] : memref<9x32x64xbf16, #tpu.memory_space<vmem>>, vector<1x32x64xbf16>
    %93 = vector.shape_cast %92 : vector<1x32x64xbf16> to vector<32x64xbf16>
    %cst_36 = arith.constant dense<0.000000e+00> : vector<64x64xf32>
    %94 = tpu.matmul %91, %93, %cst_36 {dimension_numbers = #tpu.dot_dimension_numbers<[1], [0], [0], [1], [0, 0, 1, 1], [], []>} : vector<64x32xbf16>, vector<32x64xbf16>, vector<64x64xf32> -> vector<64x64xf32>
    %95 = arith.addf %88, %94 : vector<64x64xf32>
    %c1_37 = arith.constant 1 : index
    %c8_38 = arith.constant 8 : index
    %c0_39 = arith.constant 0 : index
    %96 = vector.load %arg20[%c1_37, %c8_38, %c0_39] : memref<10x17x32xf32, #tpu.memory_space<vmem>>, vector<8x8x32xf32>
    %97 = vector.shape_cast %96 : vector<8x8x32xf32> to vector<64x32xf32>
    %98 = arith.truncf %97 : vector<64x32xf32> to vector<64x32xbf16>
    %c4 = arith.constant 4 : index
    %c0_40 = arith.constant 0 : index
    %c0_41 = arith.constant 0 : index
    %99 = vector.load %arg4[%c4, %c0_40, %c0_41] : memref<9x32x64xbf16, #tpu.memory_space<vmem>>, vector<1x32x64xbf16>
    %100 = vector.shape_cast %99 : vector<1x32x64xbf16> to vector<32x64xbf16>
    %cst_42 = arith.constant dense<0.000000e+00> : vector<64x64xf32>
    %101 = tpu.matmul %98, %100, %cst_42 {dimension_numbers = #tpu.dot_dimension_numbers<[1], [0], [0], [1], [0, 0, 1, 1], [], []>} : vector<64x32xbf16>, vector<32x64xbf16>, vector<64x64xf32> -> vector<64x64xf32>
    %102 = arith.addf %95, %101 : vector<64x64xf32>
    %c1_43 = arith.constant 1 : index
    %c9_44 = arith.constant 9 : index
    %c0_45 = arith.constant 0 : index
    %103 = vector.load %arg20[%c1_43, %c9_44, %c0_45] : memref<10x17x32xf32, #tpu.memory_space<vmem>>, vector<8x8x32xf32>
    %104 = vector.shape_cast %103 : vector<8x8x32xf32> to vector<64x32xf32>
    %105 = arith.truncf %104 : vector<64x32xf32> to vector<64x32xbf16>
    %c5 = arith.constant 5 : index
    %c0_46 = arith.constant 0 : index
    %c0_47 = arith.constant 0 : index
    %106 = vector.load %arg4[%c5, %c0_46, %c0_47] : memref<9x32x64xbf16, #tpu.memory_space<vmem>>, vector<1x32x64xbf16>
    %107 = vector.shape_cast %106 : vector<1x32x64xbf16> to vector<32x64xbf16>
    %cst_48 = arith.constant dense<0.000000e+00> : vector<64x64xf32>
    %108 = tpu.matmul %105, %107, %cst_48 {dimension_numbers = #tpu.dot_dimension_numbers<[1], [0], [0], [1], [0, 0, 1, 1], [], []>} : vector<64x32xbf16>, vector<32x64xbf16>, vector<64x64xf32> -> vector<64x64xf32>
    %109 = arith.addf %102, %108 : vector<64x64xf32>
    %c2_49 = arith.constant 2 : index
    %c7_50 = arith.constant 7 : index
    %c0_51 = arith.constant 0 : index
    %110 = vector.load %arg20[%c2_49, %c7_50, %c0_51] : memref<10x17x32xf32, #tpu.memory_space<vmem>>, vector<8x8x32xf32>
    %111 = vector.shape_cast %110 : vector<8x8x32xf32> to vector<64x32xf32>
    %112 = arith.truncf %111 : vector<64x32xf32> to vector<64x32xbf16>
    %c6 = arith.constant 6 : index
    %c0_52 = arith.constant 0 : index
    %c0_53 = arith.constant 0 : index
    %113 = vector.load %arg4[%c6, %c0_52, %c0_53] : memref<9x32x64xbf16, #tpu.memory_space<vmem>>, vector<1x32x64xbf16>
    %114 = vector.shape_cast %113 : vector<1x32x64xbf16> to vector<32x64xbf16>
    %cst_54 = arith.constant dense<0.000000e+00> : vector<64x64xf32>
    %115 = tpu.matmul %112, %114, %cst_54 {dimension_numbers = #tpu.dot_dimension_numbers<[1], [0], [0], [1], [0, 0, 1, 1], [], []>} : vector<64x32xbf16>, vector<32x64xbf16>, vector<64x64xf32> -> vector<64x64xf32>
    %116 = arith.addf %109, %115 : vector<64x64xf32>
    %c2_55 = arith.constant 2 : index
    %c8_56 = arith.constant 8 : index
    %c0_57 = arith.constant 0 : index
    %117 = vector.load %arg20[%c2_55, %c8_56, %c0_57] : memref<10x17x32xf32, #tpu.memory_space<vmem>>, vector<8x8x32xf32>
    %118 = vector.shape_cast %117 : vector<8x8x32xf32> to vector<64x32xf32>
    %119 = arith.truncf %118 : vector<64x32xf32> to vector<64x32xbf16>
    %c7_58 = arith.constant 7 : index
    %c0_59 = arith.constant 0 : index
    %c0_60 = arith.constant 0 : index
    %120 = vector.load %arg4[%c7_58, %c0_59, %c0_60] : memref<9x32x64xbf16, #tpu.memory_space<vmem>>, vector<1x32x64xbf16>
    %121 = vector.shape_cast %120 : vector<1x32x64xbf16> to vector<32x64xbf16>
    %cst_61 = arith.constant dense<0.000000e+00> : vector<64x64xf32>
    %122 = tpu.matmul %119, %121, %cst_61 {dimension_numbers = #tpu.dot_dimension_numbers<[1], [0], [0], [1], [0, 0, 1, 1], [], []>} : vector<64x32xbf16>, vector<32x64xbf16>, vector<64x64xf32> -> vector<64x64xf32>
    %123 = arith.addf %116, %122 : vector<64x64xf32>
    %c2_62 = arith.constant 2 : index
    %c9_63 = arith.constant 9 : index
    %c0_64 = arith.constant 0 : index
    %124 = vector.load %arg20[%c2_62, %c9_63, %c0_64] : memref<10x17x32xf32, #tpu.memory_space<vmem>>, vector<8x8x32xf32>
    %125 = vector.shape_cast %124 : vector<8x8x32xf32> to vector<64x32xf32>
    %126 = arith.truncf %125 : vector<64x32xf32> to vector<64x32xbf16>
    %c8_65 = arith.constant 8 : index
    %c0_66 = arith.constant 0 : index
    %c0_67 = arith.constant 0 : index
    %127 = vector.load %arg4[%c8_65, %c0_66, %c0_67] : memref<9x32x64xbf16, #tpu.memory_space<vmem>>, vector<1x32x64xbf16>
    %128 = vector.shape_cast %127 : vector<1x32x64xbf16> to vector<32x64xbf16>
    %cst_68 = arith.constant dense<0.000000e+00> : vector<64x64xf32>
    %129 = tpu.matmul %126, %128, %cst_68 {dimension_numbers = #tpu.dot_dimension_numbers<[1], [0], [0], [1], [0, 0, 1, 1], [], []>} : vector<64x32xbf16>, vector<32x64xbf16>, vector<64x64xf32> -> vector<64x64xf32>
    %130 = arith.addf %123, %129 : vector<64x64xf32>
    %c0_69 = arith.constant 0 : index
    %c0_70 = arith.constant 0 : index
    %131 = vector.load %arg5[%c0_69, %c0_70] : memref<1x64xf32, #tpu.memory_space<vmem>>, vector<1x64xf32>
    %132 = vector.broadcast %131 : vector<1x64xf32> to vector<64x64xf32>
    %133 = arith.addf %130, %132 : vector<64x64xf32>
    %cst_71 = arith.constant 0.000000e+00 : f32
    %134 = vector.broadcast %cst_71 : f32 to vector<64x64xf32>
    %135 = arith.maximumf %133, %134 : vector<64x64xf32>
    %cst_72 = arith.constant 0.000000e+00 : f32
    %136 = vector.broadcast %cst_72 : f32 to vector<10x17x64xf32>
    %c0_73 = arith.constant 0 : index
    %c0_74 = arith.constant 0 : index
    %c0_75 = arith.constant 0 : index
    %137 = vector.load %arg21[%c0_73, %c0_74, %c0_75] : memref<10x17x64xf32, #tpu.memory_space<vmem>>, vector<10x17x64xf32>
    tpu.vector_store %arg21[%c0_73, %c0_74, %c0_75], %136 {strides = array<i32>} : memref<10x17x64xf32, #tpu.memory_space<vmem>>, vector<10x17x64xf32>,
    %138 = vector.shape_cast %135 : vector<64x64xf32> to vector<8x8x64xf32>
    %c1_76 = arith.constant 1 : index
    %c8_77 = arith.constant 8 : index
    %c0_78 = arith.constant 0 : index
    %139 = vector.load %arg21[%c1_76, %c8_77, %c0_78] : memref<10x17x64xf32, #tpu.memory_space<vmem>>, vector<8x8x64xf32>
    tpu.vector_store %arg21[%c1_76, %c8_77, %c0_78], %138 {strides = array<i32>} : memref<10x17x64xf32, #tpu.memory_space<vmem>>, vector<8x8x64xf32>,
    %cst_79 = arith.constant 0.000000e+00 : f32
    %140 = vector.broadcast %cst_79 : f32 to vector<64x128xf32>
    %c0_80 = arith.constant 0 : index
    %c7_81 = arith.constant 7 : index
    %c0_82 = arith.constant 0 : index
    %141 = vector.load %arg21[%c0_80, %c7_81, %c0_82] : memref<10x17x64xf32, #tpu.memory_space<vmem>>, vector<8x8x64xf32>
    %142 = vector.shape_cast %141 : vector<8x8x64xf32> to vector<64x64xf32>
    %143 = arith.truncf %142 : vector<64x64xf32> to vector<64x64xbf16>
    %c0_83 = arith.constant 0 : index
    %c0_84 = arith.constant 0 : index
    %c0_85 = arith.constant 0 : index
    %144 = vector.load %arg6[%c0_83, %c0_84, %c0_85] : memref<9x64x128xbf16, #tpu.memory_space<vmem>>, vector<1x64x128xbf16>
    %145 = vector.shape_cast %144 : vector<1x64x128xbf16> to vector<64x128xbf16>
    %cst_86 = arith.constant dense<0.000000e+00> : vector<64x128xf32>
    %146 = tpu.matmul %143, %145, %cst_86 {dimension_numbers = #tpu.dot_dimension_numbers<[1], [0], [0], [1], [0, 0, 1, 1], [], []>} : vector<64x64xbf16>, vector<64x128xbf16>, vector<64x128xf32> -> vector<64x128xf32>
    %147 = arith.addf %140, %146 : vector<64x128xf32>
    %c0_87 = arith.constant 0 : index
    %c8_88 = arith.constant 8 : index
    %c0_89 = arith.constant 0 : index
    %148 = vector.load %arg21[%c0_87, %c8_88, %c0_89] : memref<10x17x64xf32, #tpu.memory_space<vmem>>, vector<8x8x64xf32>
    %149 = vector.shape_cast %148 : vector<8x8x64xf32> to vector<64x64xf32>
    %150 = arith.truncf %149 : vector<64x64xf32> to vector<64x64xbf16>
    %c1_90 = arith.constant 1 : index
    %c0_91 = arith.constant 0 : index
    %c0_92 = arith.constant 0 : index
    %151 = vector.load %arg6[%c1_90, %c0_91, %c0_92] : memref<9x64x128xbf16, #tpu.memory_space<vmem>>, vector<1x64x128xbf16>
    %152 = vector.shape_cast %151 : vector<1x64x128xbf16> to vector<64x128xbf16>
    %cst_93 = arith.constant dense<0.000000e+00> : vector<64x128xf32>
    %153 = tpu.matmul %150, %152, %cst_93 {dimension_numbers = #tpu.dot_dimension_numbers<[1], [0], [0], [1], [0, 0, 1, 1], [], []>} : vector<64x64xbf16>, vector<64x128xbf16>, vector<64x128xf32> -> vector<64x128xf32>
    %154 = arith.addf %147, %153 : vector<64x128xf32>
    %c0_94 = arith.constant 0 : index
    %c9_95 = arith.constant 9 : index
    %c0_96 = arith.constant 0 : index
    %155 = vector.load %arg21[%c0_94, %c9_95, %c0_96] : memref<10x17x64xf32, #tpu.memory_space<vmem>>, vector<8x8x64xf32>
    %156 = vector.shape_cast %155 : vector<8x8x64xf32> to vector<64x64xf32>
    %157 = arith.truncf %156 : vector<64x64xf32> to vector<64x64xbf16>
    %c2_97 = arith.constant 2 : index
    %c0_98 = arith.constant 0 : index
    %c0_99 = arith.constant 0 : index
    %158 = vector.load %arg6[%c2_97, %c0_98, %c0_99] : memref<9x64x128xbf16, #tpu.memory_space<vmem>>, vector<1x64x128xbf16>
    %159 = vector.shape_cast %158 : vector<1x64x128xbf16> to vector<64x128xbf16>
    %cst_100 = arith.constant dense<0.000000e+00> : vector<64x128xf32>
    %160 = tpu.matmul %157, %159, %cst_100 {dimension_numbers = #tpu.dot_dimension_numbers<[1], [0], [0], [1], [0, 0, 1, 1], [], []>} : vector<64x64xbf16>, vector<64x128xbf16>, vector<64x128xf32> -> vector<64x128xf32>
    %161 = arith.addf %154, %160 : vector<64x128xf32>
    %c1_101 = arith.constant 1 : index
    %c7_102 = arith.constant 7 : index
    %c0_103 = arith.constant 0 : index
    %162 = vector.load %arg21[%c1_101, %c7_102, %c0_103] : memref<10x17x64xf32, #tpu.memory_space<vmem>>, vector<8x8x64xf32>
    %163 = vector.shape_cast %162 : vector<8x8x64xf32> to vector<64x64xf32>
    %164 = arith.truncf %163 : vector<64x64xf32> to vector<64x64xbf16>
    %c3_104 = arith.constant 3 : index
    %c0_105 = arith.constant 0 : index
    %c0_106 = arith.constant 0 : index
    %165 = vector.load %arg6[%c3_104, %c0_105, %c0_106] : memref<9x64x128xbf16, #tpu.memory_space<vmem>>, vector<1x64x128xbf16>
    %166 = vector.shape_cast %165 : vector<1x64x128xbf16> to vector<64x128xbf16>
    %cst_107 = arith.constant dense<0.000000e+00> : vector<64x128xf32>
    %167 = tpu.matmul %164, %166, %cst_107 {dimension_numbers = #tpu.dot_dimension_numbers<[1], [0], [0], [1], [0, 0, 1, 1], [], []>} : vector<64x64xbf16>, vector<64x128xbf16>, vector<64x128xf32> -> vector<64x128xf32>
    %168 = arith.addf %161, %167 : vector<64x128xf32>
    %c1_108 = arith.constant 1 : index
    %c8_109 = arith.constant 8 : index
    %c0_110 = arith.constant 0 : index
    %169 = vector.load %arg21[%c1_108, %c8_109, %c0_110] : memref<10x17x64xf32, #tpu.memory_space<vmem>>, vector<8x8x64xf32>
    %170 = vector.shape_cast %169 : vector<8x8x64xf32> to vector<64x64xf32>
    %171 = arith.truncf %170 : vector<64x64xf32> to vector<64x64xbf16>
    %c4_111 = arith.constant 4 : index
    %c0_112 = arith.constant 0 : index
    %c0_113 = arith.constant 0 : index
    %172 = vector.load %arg6[%c4_111, %c0_112, %c0_113] : memref<9x64x128xbf16, #tpu.memory_space<vmem>>, vector<1x64x128xbf16>
    %173 = vector.shape_cast %172 : vector<1x64x128xbf16> to vector<64x128xbf16>
    %cst_114 = arith.constant dense<0.000000e+00> : vector<64x128xf32>
    %174 = tpu.matmul %171, %173, %cst_114 {dimension_numbers = #tpu.dot_dimension_numbers<[1], [0], [0], [1], [0, 0, 1, 1], [], []>} : vector<64x64xbf16>, vector<64x128xbf16>, vector<64x128xf32> -> vector<64x128xf32>
    %175 = arith.addf %168, %174 : vector<64x128xf32>
    %c1_115 = arith.constant 1 : index
    %c9_116 = arith.constant 9 : index
    %c0_117 = arith.constant 0 : index
    %176 = vector.load %arg21[%c1_115, %c9_116, %c0_117] : memref<10x17x64xf32, #tpu.memory_space<vmem>>, vector<8x8x64xf32>
    %177 = vector.shape_cast %176 : vector<8x8x64xf32> to vector<64x64xf32>
    %178 = arith.truncf %177 : vector<64x64xf32> to vector<64x64xbf16>
    %c5_118 = arith.constant 5 : index
    %c0_119 = arith.constant 0 : index
    %c0_120 = arith.constant 0 : index
    %179 = vector.load %arg6[%c5_118, %c0_119, %c0_120] : memref<9x64x128xbf16, #tpu.memory_space<vmem>>, vector<1x64x128xbf16>
    %180 = vector.shape_cast %179 : vector<1x64x128xbf16> to vector<64x128xbf16>
    %cst_121 = arith.constant dense<0.000000e+00> : vector<64x128xf32>
    %181 = tpu.matmul %178, %180, %cst_121 {dimension_numbers = #tpu.dot_dimension_numbers<[1], [0], [0], [1], [0, 0, 1, 1], [], []>} : vector<64x64xbf16>, vector<64x128xbf16>, vector<64x128xf32> -> vector<64x128xf32>
    %182 = arith.addf %175, %181 : vector<64x128xf32>
    %c2_122 = arith.constant 2 : index
    %c7_123 = arith.constant 7 : index
    %c0_124 = arith.constant 0 : index
    %183 = vector.load %arg21[%c2_122, %c7_123, %c0_124] : memref<10x17x64xf32, #tpu.memory_space<vmem>>, vector<8x8x64xf32>
    %184 = vector.shape_cast %183 : vector<8x8x64xf32> to vector<64x64xf32>
    %185 = arith.truncf %184 : vector<64x64xf32> to vector<64x64xbf16>
    %c6_125 = arith.constant 6 : index
    %c0_126 = arith.constant 0 : index
    %c0_127 = arith.constant 0 : index
    %186 = vector.load %arg6[%c6_125, %c0_126, %c0_127] : memref<9x64x128xbf16, #tpu.memory_space<vmem>>, vector<1x64x128xbf16>
    %187 = vector.shape_cast %186 : vector<1x64x128xbf16> to vector<64x128xbf16>
    %cst_128 = arith.constant dense<0.000000e+00> : vector<64x128xf32>
    %188 = tpu.matmul %185, %187, %cst_128 {dimension_numbers = #tpu.dot_dimension_numbers<[1], [0], [0], [1], [0, 0, 1, 1], [], []>} : vector<64x64xbf16>, vector<64x128xbf16>, vector<64x128xf32> -> vector<64x128xf32>
    %189 = arith.addf %182, %188 : vector<64x128xf32>
    %c2_129 = arith.constant 2 : index
    %c8_130 = arith.constant 8 : index
    %c0_131 = arith.constant 0 : index
    %190 = vector.load %arg21[%c2_129, %c8_130, %c0_131] : memref<10x17x64xf32, #tpu.memory_space<vmem>>, vector<8x8x64xf32>
    %191 = vector.shape_cast %190 : vector<8x8x64xf32> to vector<64x64xf32>
    %192 = arith.truncf %191 : vector<64x64xf32> to vector<64x64xbf16>
    %c7_132 = arith.constant 7 : index
    %c0_133 = arith.constant 0 : index
    %c0_134 = arith.constant 0 : index
    %193 = vector.load %arg6[%c7_132, %c0_133, %c0_134] : memref<9x64x128xbf16, #tpu.memory_space<vmem>>, vector<1x64x128xbf16>
    %194 = vector.shape_cast %193 : vector<1x64x128xbf16> to vector<64x128xbf16>
    %cst_135 = arith.constant dense<0.000000e+00> : vector<64x128xf32>
    %195 = tpu.matmul %192, %194, %cst_135 {dimension_numbers = #tpu.dot_dimension_numbers<[1], [0], [0], [1], [0, 0, 1, 1], [], []>} : vector<64x64xbf16>, vector<64x128xbf16>, vector<64x128xf32> -> vector<64x128xf32>
    %196 = arith.addf %189, %195 : vector<64x128xf32>
    %c2_136 = arith.constant 2 : index
    %c9_137 = arith.constant 9 : index
    %c0_138 = arith.constant 0 : index
    %197 = vector.load %arg21[%c2_136, %c9_137, %c0_138] : memref<10x17x64xf32, #tpu.memory_space<vmem>>, vector<8x8x64xf32>
    %198 = vector.shape_cast %197 : vector<8x8x64xf32> to vector<64x64xf32>
    %199 = arith.truncf %198 : vector<64x64xf32> to vector<64x64xbf16>
    %c8_139 = arith.constant 8 : index
    %c0_140 = arith.constant 0 : index
    %c0_141 = arith.constant 0 : index
    %200 = vector.load %arg6[%c8_139, %c0_140, %c0_141] : memref<9x64x128xbf16, #tpu.memory_space<vmem>>, vector<1x64x128xbf16>
    %201 = vector.shape_cast %200 : vector<1x64x128xbf16> to vector<64x128xbf16>
    %cst_142 = arith.constant dense<0.000000e+00> : vector<64x128xf32>
    %202 = tpu.matmul %199, %201, %cst_142 {dimension_numbers = #tpu.dot_dimension_numbers<[1], [0], [0], [1], [0, 0, 1, 1], [], []>} : vector<64x64xbf16>, vector<64x128xbf16>, vector<64x128xf32> -> vector<64x128xf32>
    %203 = arith.addf %196, %202 : vector<64x128xf32>
    %c0_143 = arith.constant 0 : index
    %c0_144 = arith.constant 0 : index
    %204 = vector.load %arg7[%c0_143, %c0_144] : memref<1x128xf32, #tpu.memory_space<vmem>>, vector<1x128xf32>
    %205 = vector.broadcast %204 : vector<1x128xf32> to vector<64x128xf32>
    %206 = arith.addf %203, %205 : vector<64x128xf32>
    %cst_145 = arith.constant 0.000000e+00 : f32
    %207 = vector.broadcast %cst_145 : f32 to vector<64x128xf32>
    %208 = arith.maximumf %206, %207 : vector<64x128xf32>
    %209 = arith.truncf %208 : vector<64x128xf32> to vector<64x128xbf16>
    %c0_146 = arith.constant 0 : index
    %c0_147 = arith.constant 0 : index
    %210 = vector.load %arg8[%c0_146, %c0_147] : memref<128x4xbf16, #tpu.memory_space<vmem>>, vector<128x4xbf16>
    %cst_148 = arith.constant dense<0.000000e+00> : vector<64x4xf32>
    %211 = tpu.matmul %209, %210, %cst_148 {dimension_numbers = #tpu.dot_dimension_numbers<[1], [0], [0], [1], [0, 0, 1, 1], [], []>} : vector<64x128xbf16>, vector<128x4xbf16>, vector<64x4xf32> -> vector<64x4xf32>
    %c0_149 = arith.constant 0 : index
    %c0_150 = arith.constant 0 : index
    %212 = vector.load %arg9[%c0_149, %c0_150] : memref<1x4xf32, #tpu.memory_space<vmem>>, vector<1x4xf32>
    %213 = vector.broadcast %212 : vector<1x4xf32> to vector<64x4xf32>
    %214 = arith.addf %211, %213 : vector<64x4xf32>
    %cst_151 = arith.constant 0.000000e+00 : f32
    %215 = vector.broadcast %cst_151 : f32 to vector<64x4xf32>
    %216 = arith.maximumf %214, %215 : vector<64x4xf32>
    %c0_152 = arith.constant 0 : index
    %c0_153 = arith.constant 0 : index
    %217 = vector.load %arg11[%c0_152, %c0_153] : memref<64x1xf32, #tpu.memory_space<vmem>>, vector<64x1xf32>
    %c0_154 = arith.constant 0 : index
    %c0_155 = arith.constant 0 : index
    %c0_156 = arith.constant 0 : index
    %218 = vector.load %arg10[%c0_154, %c0_155, %c0_156] : memref<4x64x64xbf16, #tpu.memory_space<vmem>>, vector<1x64x64xbf16>
    %219 = vector.shape_cast %218 : vector<1x64x64xbf16> to vector<64x64xbf16>
    %220 = vector.extract_strided_slice %216 {offsets = [0, 0], sizes = [64, 1], strides = [1, 1]} : vector<64x4xf32> to vector<64x1xf32>
    %221 = arith.truncf %220 : vector<64x1xf32> to vector<64x1xbf16>
    %cst_157 = arith.constant dense<0.000000e+00> : vector<64x1xf32>
    %222 = tpu.matmul %219, %221, %cst_157 {dimension_numbers = #tpu.dot_dimension_numbers<[1], [0], [0], [1], [0, 0, 1, 1], [], []>} : vector<64x64xbf16>, vector<64x1xbf16>, vector<64x1xf32> -> vector<64x1xf32>
    %223 = arith.addf %217, %222 : vector<64x1xf32>
    %c1_158 = arith.constant 1 : index
    %c0_159 = arith.constant 0 : index
    %c0_160 = arith.constant 0 : index
    %224 = vector.load %arg10[%c1_158, %c0_159, %c0_160] : memref<4x64x64xbf16, #tpu.memory_space<vmem>>, vector<1x64x64xbf16>
    %225 = vector.shape_cast %224 : vector<1x64x64xbf16> to vector<64x64xbf16>
    %226 = vector.extract_strided_slice %216 {offsets = [0, 1], sizes = [64, 1], strides = [1, 1]} : vector<64x4xf32> to vector<64x1xf32>
    %227 = arith.truncf %226 : vector<64x1xf32> to vector<64x1xbf16>
    %cst_161 = arith.constant dense<0.000000e+00> : vector<64x1xf32>
    %228 = tpu.matmul %225, %227, %cst_161 {dimension_numbers = #tpu.dot_dimension_numbers<[1], [0], [0], [1], [0, 0, 1, 1], [], []>} : vector<64x64xbf16>, vector<64x1xbf16>, vector<64x1xf32> -> vector<64x1xf32>
    %229 = arith.addf %223, %228 : vector<64x1xf32>
    %c2_162 = arith.constant 2 : index
    %c0_163 = arith.constant 0 : index
    %c0_164 = arith.constant 0 : index
    %230 = vector.load %arg10[%c2_162, %c0_163, %c0_164] : memref<4x64x64xbf16, #tpu.memory_space<vmem>>, vector<1x64x64xbf16>
    %231 = vector.shape_cast %230 : vector<1x64x64xbf16> to vector<64x64xbf16>
    %232 = vector.extract_strided_slice %216 {offsets = [0, 2], sizes = [64, 1], strides = [1, 1]} : vector<64x4xf32> to vector<64x1xf32>
    %233 = arith.truncf %232 : vector<64x1xf32> to vector<64x1xbf16>
    %cst_165 = arith.constant dense<0.000000e+00> : vector<64x1xf32>
    %234 = tpu.matmul %231, %233, %cst_165 {dimension_numbers = #tpu.dot_dimension_numbers<[1], [0], [0], [1], [0, 0, 1, 1], [], []>} : vector<64x64xbf16>, vector<64x1xbf16>, vector<64x1xf32> -> vector<64x1xf32>
    %235 = arith.addf %229, %234 : vector<64x1xf32>
    %c3_166 = arith.constant 3 : index
    %c0_167 = arith.constant 0 : index
    %c0_168 = arith.constant 0 : index
    %236 = vector.load %arg10[%c3_166, %c0_167, %c0_168] : memref<4x64x64xbf16, #tpu.memory_space<vmem>>, vector<1x64x64xbf16>
    %237 = vector.shape_cast %236 : vector<1x64x64xbf16> to vector<64x64xbf16>
    %238 = vector.extract_strided_slice %216 {offsets = [0, 3], sizes = [64, 1], strides = [1, 1]} : vector<64x4xf32> to vector<64x1xf32>
    %239 = arith.truncf %238 : vector<64x1xf32> to vector<64x1xbf16>
    %cst_169 = arith.constant dense<0.000000e+00> : vector<64x1xf32>
    %240 = tpu.matmul %237, %239, %cst_169 {dimension_numbers = #tpu.dot_dimension_numbers<[1], [0], [0], [1], [0, 0, 1, 1], [], []>} : vector<64x64xbf16>, vector<64x1xbf16>, vector<64x1xf32> -> vector<64x1xf32>
    %241 = arith.addf %235, %240 : vector<64x1xf32>
    %242 = vector.shape_cast %241 : vector<64x1xf32> to vector<1x64x1xf32>
    %c0_170 = arith.constant 0 : index
    %c0_171 = arith.constant 0 : index
    %c0_172 = arith.constant 0 : index
    %243 = vector.load %arg18[%c0_170, %c0_171, %c0_172] : memref<1x64x1xf32, #tpu.memory_space<vmem>>, vector<1x64x1xf32>
    tpu.vector_store %arg18[%c0_170, %c0_171, %c0_172], %242 {strides = array<i32>} : memref<1x64x1xf32, #tpu.memory_space<vmem>>, vector<1x64x1xf32>,
    %c0_173 = arith.constant 0 : index
    %c0_174 = arith.constant 0 : index
    %244 = vector.load %arg12[%c0_173, %c0_174] : memref<128x2xbf16, #tpu.memory_space<vmem>>, vector<128x2xbf16>
    %cst_175 = arith.constant dense<0.000000e+00> : vector<64x2xf32>
    %245 = tpu.matmul %209, %244, %cst_175 {dimension_numbers = #tpu.dot_dimension_numbers<[1], [0], [0], [1], [0, 0, 1, 1], [], []>} : vector<64x128xbf16>, vector<128x2xbf16>, vector<64x2xf32> -> vector<64x2xf32>
    %c0_176 = arith.constant 0 : index
    %c0_177 = arith.constant 0 : index
    %246 = vector.load %arg13[%c0_176, %c0_177] : memref<1x2xf32, #tpu.memory_space<vmem>>, vector<1x2xf32>
    %247 = vector.broadcast %246 : vector<1x2xf32> to vector<64x2xf32>
    %248 = arith.addf %245, %247 : vector<64x2xf32>
    %cst_178 = arith.constant 0.000000e+00 : f32
    %249 = vector.broadcast %cst_178 : f32 to vector<64x2xf32>
    %250 = arith.maximumf %248, %249 : vector<64x2xf32>
    %c0_179 = arith.constant 0 : index
    %c0_180 = arith.constant 0 : index
    %251 = vector.load %arg15[%c0_179, %c0_180] : memref<64x1xf32, #tpu.memory_space<vmem>>, vector<64x1xf32>
    %c0_181 = arith.constant 0 : index
    %c0_182 = arith.constant 0 : index
    %c0_183 = arith.constant 0 : index
    %252 = vector.load %arg14[%c0_181, %c0_182, %c0_183] : memref<2x64x64xbf16, #tpu.memory_space<vmem>>, vector<1x64x64xbf16>
    %253 = vector.shape_cast %252 : vector<1x64x64xbf16> to vector<64x64xbf16>
    %254 = vector.extract_strided_slice %250 {offsets = [0, 0], sizes = [64, 1], strides = [1, 1]} : vector<64x2xf32> to vector<64x1xf32>
    %255 = arith.truncf %254 : vector<64x1xf32> to vector<64x1xbf16>
    %cst_184 = arith.constant dense<0.000000e+00> : vector<64x1xf32>
    %256 = tpu.matmul %253, %255, %cst_184 {dimension_numbers = #tpu.dot_dimension_numbers<[1], [0], [0], [1], [0, 0, 1, 1], [], []>} : vector<64x64xbf16>, vector<64x1xbf16>, vector<64x1xf32> -> vector<64x1xf32>
    %257 = arith.addf %251, %256 : vector<64x1xf32>
    %c1_185 = arith.constant 1 : index
    %c0_186 = arith.constant 0 : index
    %c0_187 = arith.constant 0 : index
    %258 = vector.load %arg14[%c1_185, %c0_186, %c0_187] : memref<2x64x64xbf16, #tpu.memory_space<vmem>>, vector<1x64x64xbf16>
    %259 = vector.shape_cast %258 : vector<1x64x64xbf16> to vector<64x64xbf16>
    %260 = vector.extract_strided_slice %250 {offsets = [0, 1], sizes = [64, 1], strides = [1, 1]} : vector<64x2xf32> to vector<64x1xf32>
    %261 = arith.truncf %260 : vector<64x1xf32> to vector<64x1xbf16>
    %cst_188 = arith.constant dense<0.000000e+00> : vector<64x1xf32>
    %262 = tpu.matmul %259, %261, %cst_188 {dimension_numbers = #tpu.dot_dimension_numbers<[1], [0], [0], [1], [0, 0, 1, 1], [], []>} : vector<64x64xbf16>, vector<64x1xbf16>, vector<64x1xf32> -> vector<64x1xf32>
    %263 = arith.addf %257, %262 : vector<64x1xf32>
    %cst_189 = arith.constant 0.000000e+00 : f32
    %264 = vector.broadcast %cst_189 : f32 to vector<64x1xf32>
    %265 = arith.maximumf %263, %264 : vector<64x1xf32>
    %c0_190 = arith.constant 0 : index
    %c0_191 = arith.constant 0 : index
    %266 = vector.load %arg16[%c0_190, %c0_191] : memref<64x1xf32, #tpu.memory_space<vmem>>, vector<64x1xf32>
    %267 = arith.mulf %265, %266 : vector<64x1xf32>
    %cst_192 = arith.constant dense<0.000000e+00> : vector<1xf32>
    %268 = vector.multi_reduction <add>, %267, %cst_192 [0] : vector<64x1xf32> to vector<1xf32>
    %269 = vector.shape_cast %268 : vector<1xf32> to vector<1x1xf32>
    %c0_193 = arith.constant 0 : index
    %c0_194 = arith.constant 0 : index
    %270 = vector.load %arg17[%c0_193, %c0_194] : memref<1x1xf32, #tpu.memory_space<vmem>>, vector<1x1xf32>
    %271 = arith.addf %269, %270 : vector<1x1xf32>
    %272 = math.tanh %271 : vector<1x1xf32>
    %273 = vector.shape_cast %272 : vector<1x1xf32> to vector<1x1x1xf32>
    %c0_195 = arith.constant 0 : index
    %c0_196 = arith.constant 0 : index
    %c0_197 = arith.constant 0 : index
    %274 = vector.load %arg19[%c0_195, %c0_196, %c0_197] : memref<1x1x1xf32, #tpu.memory_space<vmem>>, vector<1x1x1xf32>
    tpu.vector_store %arg19[%c0_195, %c0_196, %c0_197], %273 {strides = array<i32>} : memref<1x1x1xf32, #tpu.memory_space<vmem>>, vector<1x1x1xf32>,
    return
  }
  func.func @transform_0(%arg0: i32) -> (i32, i32, i32) {
    %c0_i32 = arith.constant 0 : i32
    %c0_i32_0 = arith.constant 0 : i32
    %c0_i32_1 = arith.constant 0 : i32
    return %arg0, %c0_i32, %c0_i32_0 : i32, i32, i32
  }
  func.func @transform_1(%arg0: i32) -> (i32, i32) {
    %c0_i32 = arith.constant 0 : i32
    %c0_i32_0 = arith.constant 0 : i32
    %c0_i32_1 = arith.constant 0 : i32
    return %c0_i32, %c0_i32_0 : i32, i32
  }
  func.func @transform_2(%arg0: i32) -> (i32, i32) {
    %c0_i32 = arith.constant 0 : i32
    %c0_i32_0 = arith.constant 0 : i32
    %c0_i32_1 = arith.constant 0 : i32
    return %c0_i32, %c0_i32_0 : i32, i32
  }
  func.func @transform_3(%arg0: i32) -> (i32, i32, i32) {
    %c0_i32 = arith.constant 0 : i32
    %c0_i32_0 = arith.constant 0 : i32
    %c0_i32_1 = arith.constant 0 : i32
    %c0_i32_2 = arith.constant 0 : i32
    return %c0_i32, %c0_i32_0, %c0_i32_1 : i32, i32, i32
  }
  func.func @transform_4(%arg0: i32) -> (i32, i32) {
    %c0_i32 = arith.constant 0 : i32
    %c0_i32_0 = arith.constant 0 : i32
    %c0_i32_1 = arith.constant 0 : i32
    return %c0_i32, %c0_i32_0 : i32, i32
  }
  func.func @transform_5(%arg0: i32) -> (i32, i32, i32) {
    %c0_i32 = arith.constant 0 : i32
    %c0_i32_0 = arith.constant 0 : i32
    %c0_i32_1 = arith.constant 0 : i32
    %c0_i32_2 = arith.constant 0 : i32
    return %c0_i32, %c0_i32_0, %c0_i32_1 : i32, i32, i32
  }
  func.func @transform_6(%arg0: i32) -> (i32, i32) {
    %c0_i32 = arith.constant 0 : i32
    %c0_i32_0 = arith.constant 0 : i32
    %c0_i32_1 = arith.constant 0 : i32
    return %c0_i32, %c0_i32_0 : i32, i32
  }
  func.func @transform_7(%arg0: i32) -> (i32, i32) {
    %c0_i32 = arith.constant 0 : i32
    %c0_i32_0 = arith.constant 0 : i32
    %c0_i32_1 = arith.constant 0 : i32
    return %c0_i32, %c0_i32_0 : i32, i32
  }
  func.func @transform_8(%arg0: i32) -> (i32, i32) {
    %c0_i32 = arith.constant 0 : i32
    %c0_i32_0 = arith.constant 0 : i32
    %c0_i32_1 = arith.constant 0 : i32
    return %c0_i32, %c0_i32_0 : i32, i32
  }
  func.func @transform_9(%arg0: i32) -> (i32, i32, i32) {
    %c0_i32 = arith.constant 0 : i32
    %c0_i32_0 = arith.constant 0 : i32
    %c0_i32_1 = arith.constant 0 : i32
    %c0_i32_2 = arith.constant 0 : i32
    return %c0_i32, %c0_i32_0, %c0_i32_1 : i32, i32, i32
  }
  func.func @transform_10(%arg0: i32) -> (i32, i32) {
    %c0_i32 = arith.constant 0 : i32
    %c0_i32_0 = arith.constant 0 : i32
    %c0_i32_1 = arith.constant 0 : i32
    return %c0_i32, %c0_i32_0 : i32, i32
  }
  func.func @transform_11(%arg0: i32) -> (i32, i32) {
    %c0_i32 = arith.constant 0 : i32
    %c0_i32_0 = arith.constant 0 : i32
    %c0_i32_1 = arith.constant 0 : i32
    return %c0_i32, %c0_i32_0 : i32, i32
  }
  func.func @transform_12(%arg0: i32) -> (i32, i32) {
    %c0_i32 = arith.constant 0 : i32
    %c0_i32_0 = arith.constant 0 : i32
    %c0_i32_1 = arith.constant 0 : i32
    return %c0_i32, %c0_i32_0 : i32, i32
  }
  func.func @transform_13(%arg0: i32) -> (i32, i32, i32) {
    %c0_i32 = arith.constant 0 : i32
    %c0_i32_0 = arith.constant 0 : i32
    %c0_i32_1 = arith.constant 0 : i32
    %c0_i32_2 = arith.constant 0 : i32
    return %c0_i32, %c0_i32_0, %c0_i32_1 : i32, i32, i32
  }
  func.func @transform_14(%arg0: i32) -> (i32, i32) {
    %c0_i32 = arith.constant 0 : i32
    %c0_i32_0 = arith.constant 0 : i32
    %c0_i32_1 = arith.constant 0 : i32
    return %c0_i32, %c0_i32_0 : i32, i32
  }
  func.func @transform_15(%arg0: i32) -> (i32, i32) {
    %c0_i32 = arith.constant 0 : i32
    %c0_i32_0 = arith.constant 0 : i32
    %c0_i32_1 = arith.constant 0 : i32
    return %c0_i32, %c0_i32_0 : i32, i32
  }
  func.func @transform_16(%arg0: i32) -> (i32, i32) {
    %c0_i32 = arith.constant 0 : i32
    %c0_i32_0 = arith.constant 0 : i32
    %c0_i32_1 = arith.constant 0 : i32
    return %c0_i32, %c0_i32_0 : i32, i32
  }
  func.func @transform_17(%arg0: i32) -> (i32, i32, i32) {
    %c0_i32 = arith.constant 0 : i32
    %c0_i32_0 = arith.constant 0 : i32
    %c0_i32_1 = arith.constant 0 : i32
    return %arg0, %c0_i32, %c0_i32_0 : i32, i32, i32
  }
  func.func @transform_18(%arg0: i32) -> (i32, i32, i32) {
    %c0_i32 = arith.constant 0 : i32
    %c0_i32_0 = arith.constant 0 : i32
    %c0_i32_1 = arith.constant 0 : i32
    return %arg0, %c0_i32, %c0_i32_0 : i32, i32, i32
  }
}

</mosaic_0001>

<bundles_post_ra>
// kernel: policy_value_forward.1
= control target key start
LH: loop header
LB: loop body
LE: loop exit
PB: predicated region body
PF: predicated region fallthrough
CT: control target
= control target key end

     0   :  { %s5793_s29 = smov 0   ;;  %s6994_s0 = inlined_call_operand.vmem [shape: f32[2,64,9], index: 0, kind: input, shape index: {}]   ;;  %s6995_s1 = inlined_call_operand.vmem [shape: f32[9,32], index: 1, kind: input, shape index: {}]   ;;  %s6996_s2 = inlined_call_operand.vmem [shape: f32[1,32], index: 2, kind: input, shape index: {}]   ;;  %s6997_s3 = inlined_call_operand.vmem [shape: bf16[9,32,64], index: 3, kind: input, shape index: {}]   ;;  %s6998_s4 = inlined_call_operand.vmem [shape: f32[1,64], index: 4, kind: input, shape index: {}]   ;;  %s6999_s5 = inlined_call_operand.vmem [shape: bf16[9,64,128], index: 5, kind: input, shape index: {}]   ;;  %s7000_s6 = inlined_call_operand.vmem [shape: f32[1,128], index: 6, kind: input, shape index: {}]   ;;  %s7001_s7 = inlined_call_operand.vmem [shape: bf16[128,4], index: 7, kind: input, shape index: {}]   ;;  %s7002_s8 = inlined_call_operand.vmem [shape: f32[1,4], index: 8, kind: input, shape index: {}]   ;;  %s7003_s9 = inlined_call_operand.vmem [shape: bf16[4,64,64], index: 9, kind: input, shape index: {}]   ;;  %s7004_s10 = inlined_call_operand.vmem [shape: f32[64,1], index: 10, kind: input, shape index: {}]   ;;  %s7005_s11 = inlined_call_operand.vmem [shape: bf16[128,2], index: 11, kind: input, shape index: {}]   ;;  %s7006_s12 = inlined_call_operand.vmem [shape: f32[1,2], index: 12, kind: input, shape index: {}]   ;;  %s7007_s13 = inlined_call_operand.vmem [shape: bf16[2,64,64], index: 13, kind: input, shape index: {}]   ;;  %s7008_s14 = inlined_call_operand.vmem [shape: f32[64,1], index: 14, kind: input, shape index: {}]   ;;  %s7009_s15 = inlined_call_operand.vmem [shape: f32[64,1], index: 15, kind: input, shape index: {}]   ;;  %s7010_s16 = inlined_call_operand.<no memory space> [shape: f32[1,1], index: 16, kind: input, shape index: {}]   ;;  %s7011_s17 = inlined_call_operand.vmem [shape: f32[2,64,1], index: 17, kind: output, shape index: {0}]   ;;  %s7012_s18 = inlined_call_operand.vmem [shape: f32[2,1,1], index: 18, kind: output, shape index: {1}]  }
   0x1   :  { %7014 = sst [smem:[#allocation9_spill]] %s6994_s0  ;;  %v24_v0 = vstv %s7010_s16 }
   0x2   :  { %7015 = sst [smem:[#allocation10_spill]] %s6995_s1  ;;  %25 = vst [vmem:[#allocation4] sm:$0x1] %v24_v0 }
   0x3   :  { %7016 = sst [smem:[#allocation11_spill]] %s6996_s2 }
   0x4 LB: > { %s4582_s30 = sadd.s32 4294967295, %s5680_s29   ;;  %p4586_p0 = scmp.ge.s32.totalorder %s5680_s29, 1  ;;  %s5680_s29 = sphi %s5793_s29, %s31_s29  }
   0x5   : > { %p517_p1 = scmp.lt.s32.totalorder %s5680_s29, 3 }
   0x7   : > { %p518_p2 = pnand %p4586_p0, %p517_p1 }
   0x9   : > { %521 = sbr.rel (%p518_p2) target bundleno = 1854 (0x73e), region = 88 }
   0xe   : > { %p574_p3 = scmp.lt.s32.totalorder %s4582_s30, 1  ;;  %v5682_v1 = vmov 2   ;;  %v5683_v2 = vmov 0   ;;  %s7017_s1 = sld [smem:[#allocation9_spill]]  ;;  %v5684_v7 = vmov 1   ;;  %v5685_v9 = vmov 3  }
   0xf   : > { %5537 = vset.pattern.permute.xlu0 %v5682_v1  ;;  %5534 = vset.pattern.permute.xlu1 %v5683_v2  ;;  %v5686_v11 = vmov 4   ;;  %v5687_v13 = vmov 8   ;;  %v5688_v14 = vmov 5   ;;  %v5689_v15 = vmov 6   ;;  %v5578_v25 = vld [vmem:[%s6997_s3 + $0x18] sm:$0xff]   ;;  %v5579_v26 = vld [vmem:[%s6997_s3 + $0x8] sm:$0xff]  }
  0x10   : > { %s7029_s30 = smov (!%p574_p3, %s4582_s30), 1  ;;  %v5690_v16 = vmov 7   ;;  %vm1097_vm0 = vcmask 261120   ;;  %v5691_v18 = vmov 0.0   ;;  %vm1100_vm1 = vcmask 253952   ;;  %5117 = vmatprep.subr.bf16.mxu0 %v5578_v25  ;;  %5129 = vmatprep.subr.bf16.mxu1 %v5579_v26  ;;  %v5580_v30 = vld [vmem:[%s6997_s3 + $0x10] sm:$0xff]  }
  0x11   : > { %s4917_s16 = sshll.u32 %s7029_s30, 6  ;;  %1109 = vst.msk [vmem:[#allocation2 + $0x50] sm:$0xff] %vm1097_vm0, %v5691_v18  ;;  %1098 = vst.msk [vmem:[#allocation2] sm:$0xff] %vm1097_vm0, %v5691_v18  ;;  %v638_v23 = vlaneseq  ;;  %5118 = vmatpush3.bf16.msra.mxu0 %v5578_v25  ;;  %5130 = vmatpush3.bf16.msra.mxu1 %v5579_v26  ;;  %v5581_v31 = vld [vmem:[%s6997_s3] sm:$0xff]   ;;  %s7018_s19 = sld [smem:[#allocation10_spill]]  ;;  %vm2171_vm2 = vcmask 523264  }
  0x12   : > { %1099 = vst.msk [vmem:[#allocation2 + $0x8] sm:$0xff] %vm1097_vm0, %v5691_v18  ;;  %1102 = vst.msk [vmem:[#allocation2 + $0x18] sm:$0xff] %vm1097_vm0, %v5691_v18  ;;  %5119 = vmatprep.subr.bf16.mxu0 %v5580_v30  ;;  %5131 = vmatprep.subr.bf16.mxu1 %v5581_v31  ;;  %s7019_s26 = sld [smem:[#allocation11_spill]]  ;;  %vm2174_vm3 = vcmask 516096   ;;  %s5692_s27 = smov 126   ;;  %vm4044_vm4 = vcmask 7168  }
  0x13   : > { %1103 = vst.msk [vmem:[#allocation2 + $0x20] sm:$0xff] %vm1097_vm0, %v5691_v18  ;;  %1105 = vst.msk [vmem:[#allocation2 + $0x30] sm:$0xff] %vm1097_vm0, %v5691_v18  ;;  %v5989_v27 = vshrl.u32 %v638_v23, 7  ;;  %s5694_s23 = smov 125   ;;  %s586_s28 = scalar_lea.vmem %s7012_s18, %s7029_s30  ;;  %vm4500_vm5 = vcmask 0  }
  0x14   : > { %s5811_s20 = scalar_lea.vmem %s7017_s1, %s4917_s16  ;;  %1106 = vst.msk [vmem:[#allocation2 + $0x38] sm:$0xff] %vm1097_vm0, %v5691_v18  ;;  %1108 = vst.msk [vmem:[#allocation2 + $0x48] sm:$0xff] %vm1097_vm0, %v5691_v18  ;;  %s5693_s1 = smov 127  }
  0x15   : > { %v5814_v3 = vld [vmem:[%s5811_s20 + $0x8] sm:$0xff]  ;;  %v5819_v4 = vld [vmem:[%s5811_s20 + $0x10] sm:$0xff]  ;;  %v5822_v5 = vld [vmem:[%s5811_s20] sm:$0xff]  ;;  %1111 = vst.msk [vmem:[#allocation2 + $0x60] sm:$0xff] %vm1097_vm0, %v5691_v18  ;;  %v640_v32 = vsub.s32 0, %v5989_v27  ;;  %v692_v33 = vsub.s32 1, %v5989_v27  ;;  %5120 = vmatpush3.bf16.msra.mxu0 %v5580_v30  ;;  %5132 = vmatpush3.bf16.msra.mxu1 %v5581_v31 }
  0x16   : > { %715 = vperm.xlu0 %5537, %v5814_v3   ;;  %605 = vperm.xlu1 %5534, %v5814_v3   ;;  %v5827_v6 = vld [vmem:[%s5811_s20 + $0x20] sm:$0xff]  ;;  %v5838_v8 = vld [vmem:[%s5811_s20 + $0x28] sm:$0xff]  ;;  %v5847_v10 = vld [vmem:[%s5811_s20 + $0x18] sm:$0xff]  ;;  %1112 = vst.msk [vmem:[#allocation2 + $0x68] sm:$0xff] %vm1097_vm0, %v5691_v18  ;;  %v796_v39 = vsub.s32 3, %v5989_v27  ;;  %v744_v40 = vsub.s32 2, %v5989_v27 }
  0x17   : > { %v5861_v12 = vld [vmem:[%s5811_s20 + $0x30] sm:$0xff]  ;;  %v5901_v17 = vld [vmem:[%s5811_s20 + $0x38] sm:$0xff]  ;;  %1114 = vst.msk [vmem:[#allocation2 + $0x78] sm:$0xff] %vm1097_vm0, %v5691_v18  ;;  %1115 = vst.msk [vmem:[#allocation2 + $0x80] sm:$0xff] %vm1097_vm0, %v5691_v18  ;;  %v848_v45 = vsub.s32 4, %v5989_v27 }
  0x18   : > { %1117 = vst.msk [vmem:[#allocation2 + $0x90] sm:$0xff] %vm1097_vm0, %v5691_v18  ;;  %1118 = vst.msk [vmem:[#allocation2 + $0x98] sm:$0xff] %vm1097_vm0, %v5691_v18  ;;  %v6004_v34 = vld [vmem:[%s7018_s19] sm:$0xff]  ;;  %v6076_v31 = vld [vmem:[%s6997_s3 + $0x38] sm:$0xff]  }
  0x19   : > { %1120 = vst.msk [vmem:[#allocation2 + $0xa8] sm:$0xff] %vm1097_vm0, %v5691_v18  ;;  %1121 = vst.msk [vmem:[#allocation2 + $0xb0] sm:$0xff] %vm1097_vm0, %v5691_v18  ;;  %v6009_v37 = vrot.slane %v6004_v34, %v640_v32  ;;  %v6012_v38 = vrot.slane %v6004_v34, %v692_v33  ;;  %v6020_v44 = vrot.slane %v6004_v34, %v796_v39  ;;  %5153 = vmatprep.subr.bf16.mxu1 %v6076_v31 }
  0x1a   : > { %5538 = vset.pattern.permute.xlu0 %v5683_v2  ;;  %610 = vperm.xlu1 %5534, %v5819_v4   ;;  %1123 = vst.msk [vmem:[#allocation2 + $0xc0] sm:$0xff] %vm1097_vm0, %v5691_v18  ;;  %1124 = vst.msk [vmem:[#allocation2 + $0xc8] sm:$0xff] %vm1097_vm0, %v5691_v18  ;;  %v6026_v46 = vrot.slane %v6004_v34, %v744_v40  ;;  %v6033_v51 = vrot.slane %v6004_v34, %v848_v45 }
  0x1b   : > { %600 = vperm.xlu0 %5538, %v5822_v5   ;;  %1126 = vst.msk [vmem:[#allocation2 + $0xd8] sm:$0xff] %vm1097_vm0, %v5691_v18  ;;  %1127 = vst.msk [vmem:[#allocation2 + $0xe0] sm:$0xff] %vm1097_vm0, %v5691_v18 }
  0x1c   : > { %1101 = vst.msk [vmem:[#allocation2 + $0x10] sm:$0x1] %vm1100_vm1, %v5691_v18  ;;  %1104 = vst.msk [vmem:[#allocation2 + $0x28] sm:$0x1] %vm1100_vm1, %v5691_v18 }
  0x1d   : > { %1107 = vst.msk [vmem:[#allocation2 + $0x40] sm:$0x1] %vm1100_vm1, %v5691_v18  ;;  %1110 = vst.msk [vmem:[#allocation2 + $0x58] sm:$0x1] %vm1100_vm1, %v5691_v18 }
  0x1e   : > { %5535 = vset.pattern.permute.xlu1 %v5684_v7  ;;  %1113 = vst.msk [vmem:[#allocation2 + $0x70] sm:$0x1] %vm1100_vm1, %v5691_v18  ;;  %1116 = vst.msk [vmem:[#allocation2 + $0x88] sm:$0x1] %vm1100_vm1, %v5691_v18 }
  0x1f   : > { %663 = vperm.xlu1 %5535, %v5814_v3   ;;  %620 = vperm.xlu0 %5538, %v5827_v6   ;;  %1119 = vst.msk [vmem:[#allocation2 + $0xa0] sm:$0x1] %vm1100_vm1, %v5691_v18  ;;  %1122 = vst.msk [vmem:[#allocation2 + $0xb8] sm:$0x1] %vm1100_vm1, %v5691_v18 }
  0x20   : > { %1125 = vst.msk [vmem:[#allocation2 + $0xd0] sm:$0x1] %vm1100_vm1, %v5691_v18  ;;  %1128 = vst.msk [vmem:[#allocation2 + $0xe8] sm:$0x1] %vm1100_vm1, %v5691_v18 }
  0x21   : > { %2183 = vst.msk [vmem:[#allocation3 + $0x50] sm:$0xff] %vm2171_vm2, %v5691_v18  ;;  %2172 = vst.msk [vmem:[#allocation3] sm:$0xff] %vm2171_vm2, %v5691_v18 }
  0x22   : > { %2173 = vst.msk [vmem:[#allocation3 + $0x8] sm:$0xff] %vm2171_vm2, %v5691_v18  ;;  %2176 = vst.msk [vmem:[#allocation3 + $0x18] sm:$0xff] %vm2171_vm2, %v5691_v18 }
  0x23   : > { %5536 = vset.pattern.permute.xlu1 %v5682_v1  ;;  %5542 = vset.pattern.permute.xlu0 %v5684_v7  ;;  %2177 = vst.msk [vmem:[#allocation3 + $0x20] sm:$0xff] %vm2171_vm2, %v5691_v18  ;;  %2179 = vst.msk [vmem:[#allocation3 + $0x30] sm:$0xff] %vm2171_vm2, %v5691_v18 }
  0x24   : > { %659 = vperm.xlu0 %5542, %v5822_v5   ;;  %711 = vperm.xlu1 %5536, %v5822_v5   ;;  %2180 = vst.msk [vmem:[#allocation3 + $0x38] sm:$0xff] %vm2171_vm2, %v5691_v18  ;;  %2182 = vst.msk [vmem:[#allocation3 + $0x48] sm:$0xff] %vm2171_vm2, %v5691_v18 }
  0x25   : > { %2185 = vst.msk [vmem:[#allocation3 + $0x60] sm:$0xff] %vm2171_vm2, %v5691_v18  ;;  %2186 = vst.msk [vmem:[#allocation3 + $0x68] sm:$0xff] %vm2171_vm2, %v5691_v18 }
  0x26   : > { %2188 = vst.msk [vmem:[#allocation3 + $0x78] sm:$0xff] %vm2171_vm2, %v5691_v18  ;;  %2189 = vst.msk [vmem:[#allocation3 + $0x80] sm:$0xff] %vm2171_vm2, %v5691_v18 }
  0x27   : > { %2191 = vst.msk [vmem:[#allocation3 + $0x90] sm:$0xff] %vm2171_vm2, %v5691_v18  ;;  %2192 = vst.msk [vmem:[#allocation3 + $0x98] sm:$0xff] %vm2171_vm2, %v5691_v18 }
  0x28   : > { %667 = vperm.xlu0 %5542, %v5819_v4   ;;  %719 = vperm.xlu1 %5536, %v5819_v4   ;;  %2194 = vst.msk [vmem:[#allocation3 + $0xa8] sm:$0xff] %vm2171_vm2, %v5691_v18  ;;  %2195 = vst.msk [vmem:[#allocation3 + $0xb0] sm:$0xff] %vm2171_vm2, %v5691_v18 }
  0x29   : > { %2197 = vst.msk [vmem:[#allocation3 + $0xc0] sm:$0xff] %vm2171_vm2, %v5691_v18  ;;  %2198 = vst.msk [vmem:[#allocation3 + $0xc8] sm:$0xff] %vm2171_vm2, %v5691_v18 }
  0x2a   : > { %2200 = vst.msk [vmem:[#allocation3 + $0xd8] sm:$0xff] %vm2171_vm2, %v5691_v18  ;;  %2201 = vst.msk [vmem:[#allocation3 + $0xe0] sm:$0xff] %vm2171_vm2, %v5691_v18 }
  0x2b   : > { %2175 = vst.msk [vmem:[#allocation3 + $0x10] sm:$0x1] %vm2174_vm3, %v5691_v18  ;;  %2178 = vst.msk [vmem:[#allocation3 + $0x28] sm:$0x1] %vm2174_vm3, %v5691_v18 }
  0x2c   : > { %679 = vperm.xlu0 %5542, %v5838_v8   ;;  %5539 = vset.pattern.permute.xlu1 %v5685_v9  ;;  %2181 = vst.msk [vmem:[#allocation3 + $0x40] sm:$0x1] %vm2174_vm3, %v5691_v18  ;;  %2184 = vst.msk [vmem:[#allocation3 + $0x58] sm:$0x1] %vm2174_vm3, %v5691_v18 }
  0x2d   : > { %763 = vperm.xlu1 %5539, %v5822_v5   ;;  %2187 = vst.msk [vmem:[#allocation3 + $0x70] sm:$0x1] %vm2174_vm3, %v5691_v18  ;;  %2190 = vst.msk [vmem:[#allocation3 + $0x88] sm:$0x1] %vm2174_vm3, %v5691_v18 }
  0x2e   : > { %2193 = vst.msk [vmem:[#allocation3 + $0xa0] sm:$0x1] %vm2174_vm3, %v5691_v18  ;;  %2196 = vst.msk [vmem:[#allocation3 + $0xb8] sm:$0x1] %vm2174_vm3, %v5691_v18 }
  0x2f   : > { %2199 = vst.msk [vmem:[#allocation3 + $0xd0] sm:$0x1] %vm2174_vm3, %v5691_v18  ;;  %2202 = vst.msk [vmem:[#allocation3 + $0xe8] sm:$0x1] %vm2174_vm3, %v5691_v18  ;;  %v5601_v18 = vld [vmem:[%s6999_s5 + $0x8] sm:$0xff]  }
  0x30   : > { %5545 = vset.pattern.permute.xlu0 %v5685_v9 }
  0x31   : > { %767 = vperm.xlu0 %5545, %v5814_v3   ;;  %771 = vperm.xlu1 %5539, %v5819_v4  }
  0x35   : > { %775 = vperm.xlu0 %5545, %v5847_v10   ;;  %5540 = vset.pattern.permute.xlu1 %v5686_v11 }
  0x36   : > { %815 = vperm.xlu1 %5540, %v5822_v5  }
  0x39   : > { %783 = vperm.xlu0 %5545, %v5838_v8  }
  0x3a   : > { %823 = vperm.xlu1 %5540, %v5819_v4  }
  0x3d   : > { %5552 = vset.pattern.permute.xlu0 %v5686_v11 }
  0x3e   : > { %819 = vperm.xlu0 %5552, %v5814_v3   ;;  %5541 = vset.pattern.permute.xlu1 %v5683_v2 }
  0x3f   : > { %615 = vperm.xlu1 %5541, %v5847_v10  }
  0x42   : > { %831 = vperm.xlu0 %5552, %v5827_v6  }
  0x43   : > { %5543 = vset.pattern.permute.xlu1 %v5684_v7 }
  0x44   : > { %671 = vperm.xlu1 %5543, %v5847_v10  }
  0x46   : > { %839 = vperm.xlu0 %5552, %v5861_v12  }
  0x48   : > { %675 = vperm.xlu1 %5543, %v5827_v6  }
  0x4a   : > { %5559 = vset.pattern.permute.xlu0 %v5687_v13 }
  0x4b   : > { %1031 = vperm.xlu0 %5559, %v5819_v4  }
  0x4c   : > { %5544 = vset.pattern.permute.xlu1 %v5683_v2 }
  0x4d   : > { %625 = vperm.xlu1 %5544, %v5838_v8  }
  0x4f   : > { %5560 = vset.pattern.permute.xlu0 %v5688_v14 }
  0x50   : > { %867 = vperm.xlu0 %5560, %v5822_v5  }
  0x51   : > { %630 = vperm.xlu1 %5544, %v5861_v12  }
  0x54   : > { %875 = vperm.xlu0 %5560, %v5819_v4  }
  0x55   : > { %5546 = vset.pattern.permute.xlu1 %v5684_v7 }
  0x56   : > { %683 = vperm.xlu1 %5546, %v5861_v12  }
  0x58   : > { %887 = vperm.xlu0 %5560, %v5838_v8  }
  0x5a   : > { %5547 = vset.pattern.permute.xlu1 %v5688_v14 }
  0x5b   : > { %871 = vperm.xlu1 %5547, %v5814_v3  }
  0x5c   : > { %5562 = vset.pattern.permute.xlu0 %v5689_v15 }
  0x5d   : > { %919 = vperm.xlu0 %5562, %v5822_v5  }
  0x5f   : > { %5548 = vset.pattern.permute.xlu1 %v5682_v1 }
  0x60   : > { %723 = vperm.xlu1 %5548, %v5847_v10  }
  0x61   : > { %923 = vperm.xlu0 %5562, %v5814_v3  }
  0x64   : > { %727 = vperm.xlu1 %5548, %v5827_v6  }
  0x65   : > { %935 = vperm.xlu0 %5562, %v5827_v6  }
  0x68   : > { %731 = vperm.xlu1 %5548, %v5838_v8  }
  0x69   : > { %5564 = vset.pattern.permute.xlu0 %v5690_v16 }
  0x6a   : > { %975 = vperm.xlu0 %5564, %v5814_v3  }
  0x6c   : > { %735 = vperm.xlu1 %5548, %v5861_v12  }
  0x6e   : > { %983 = vperm.xlu0 %5564, %v5847_v10  }
  0x70   : > { %5549 = vset.pattern.permute.xlu1 %v5689_v15 }
  0x71   : > { %927 = vperm.xlu1 %5549, %v5819_v4  }
  0x72   : > { %995 = vperm.xlu0 %5564, %v5861_v12  }
  0x75   : > { %5550 = vset.pattern.permute.xlu1 %v5685_v9 }
  0x76   : > { %779 = vperm.xlu1 %5550, %v5827_v6   ;;  %5567 = vset.pattern.permute.xlu0 %v5687_v13 }
  0x77   : > { %1039 = vperm.xlu0 %5567, %v5827_v6  }
  0x7a   : > { %5551 = vset.pattern.permute.xlu1 %v5690_v16 }
  0x7b   : > { %971 = vperm.xlu1 %5551, %v5822_v5   ;;  %5568 = vset.pattern.permute.xlu0 %v5683_v2 }
  0x7c   : > { %635 = vperm.xlu0 %5568, %v5901_v17  }
  0x7f   : > { %5553 = vset.pattern.permute.xlu1 %v5685_v9 }
  0x80   : > { %787 = vperm.xlu1 %5553, %v5861_v12   ;;  %5571 = vset.pattern.permute.xlu0 %v5685_v9 }
  0x81   : > { %791 = vperm.xlu0 %5571, %v5901_v17  }
  0x84   : > { %5554 = vset.pattern.permute.xlu1 %v5690_v16 }
  0x85   : > { %979 = vperm.xlu1 %5554, %v5819_v4   ;;  %5574 = vset.pattern.permute.xlu0 %v5689_v15 }
  0x86   : > { %947 = vperm.xlu0 %5574, %v5901_v17  }
  0x89   : > { %5555 = vset.pattern.permute.xlu1 %v5686_v11 }
  0x8a   : > { %827 = vperm.xlu1 %5555, %v5847_v10   ;;  %5577 = vset.pattern.permute.xlu0 %v5687_v13 }
  0x8e   : > { %5556 = vset.pattern.permute.xlu1 %v5687_v13 }
  0x8f   : > { %1023 = vperm.xlu1 %5556, %v5822_v5  }
  0x91   : > { %v5970_v19 = vpop.permute.xlu1 %605  ;;  %v5972_v20 = vpop.permute.xlu0 %715 }
  0x93   : > { %5557 = vset.pattern.permute.xlu1 %v5686_v11 }
  0x94   : > { %835 = vperm.xlu1 %5557, %v5838_v8  }
  0x95   : > { %v5976_v21 = vpop.permute.xlu1 %610 }
  0x96   : > { %v601_v22 = vpop.permute.xlu0 %600 }
  0x97   : > { %v642_v41 = vmul.f32 %v6009_v37, %v601_v22 }
  0x98   : > { %5558 = vset.pattern.permute.xlu1 %v5687_v13 }
  0x99   : > { %1027 = vperm.xlu1 %5558, %v5814_v3  }
  0x9a   : > { %v5980_v24 = vpop.permute.xlu1 %663  ;;  %v621_v28 = vpop.permute.xlu0 %620 }
  0x9b   : > { %v646_v0 = vmul.f32 %v6009_v37, %v621_v28 }
  0x9d   : > { %5561 = vset.pattern.permute.xlu1 %v5688_v14 }
  0x9e   : > { %879 = vperm.xlu1 %5561, %v5847_v10  }
  0x9f   : > { %v712_v29 = vpop.permute.xlu1 %711  ;;  %v660_v36 = vpop.permute.xlu0 %659 }
  0xa0   : > { %v694_v42 = vmul.f32 %v6012_v38, %v660_v36  ;;  %v746_v49 = vmul.f32 %v6026_v46, %v712_v29 }
  0xa2   : > { %883 = vperm.xlu1 %5561, %v5827_v6   ;;  %v702_v47 = vadd.f32 %v694_v42, %v642_v41 }
  0xa3   : > { %v6006_v35 = vpop.permute.xlu1 %719  ;;  %v6042_v58 = vpop.permute.xlu0 %667 }
  0xa4   : > { %v754_v52 = vadd.f32 %v746_v49, %v702_v47 }
  0xa6   : > { %891 = vperm.xlu1 %5561, %v5861_v12  }
  0xa7   : > { %v680_v60 = vpop.permute.xlu0 %679 }
  0xa8   : > { %v764_v43 = vpop.permute.xlu1 %763  ;;  %v699_v9 = vmul.f32 %v6012_v38, %v680_v60 }
  0xa9   : > { %v798_v50 = vmul.f32 %v6020_v44, %v764_v43 }
  0xaa   : > { %5563 = vset.pattern.permute.xlu1 %v5689_v15 }
  0xab   : > { %931 = vperm.xlu1 %5563, %v5847_v10   ;;  %v806_v54 = vadd.f32 %v798_v50, %v754_v52 }
  0xac   : > { %v6028_v48 = vpop.permute.xlu1 %771  ;;  %v6052_v2 = vpop.permute.xlu0 %767 }
  0xaf   : > { %939 = vperm.xlu1 %5563, %v5838_v8  }
  0xb0   : > { %v776_v15 = vpop.permute.xlu0 %775 }
  0xb1   : > { %v816_v53 = vpop.permute.xlu1 %815  ;;  %v801_v36 = vmul.f32 %v6020_v44, %v776_v15 }
  0xb2   : > { %v850_v55 = vmul.f32 %v6033_v51, %v816_v53 }
  0xb3   : > { %943 = vperm.xlu1 %5563, %v5861_v12  }
  0xb4   : > { %v6038_v56 = vadd.f32 %v850_v55, %v806_v54  ;;  %v784_v26 = vpop.permute.xlu0 %783 }
  0xb5   : > { %v6040_v57 = vpop.permute.xlu1 %823  ;;  %v803_v49 = vmul.f32 %v6020_v44, %v784_v26 }
  0xb7   : > { %5565 = vset.pattern.permute.xlu1 %v5690_v16 }
  0xb8   : > { %987 = vperm.xlu1 %5565, %v5827_v6  }
  0xba   : > { %v616_v59 = vpop.permute.xlu1 %615 }
  0xbb   : > { %v645_v62 = vmul.f32 %v6009_v37, %v616_v59 }
  0xbc   : > { %991 = vperm.xlu1 %5565, %v5838_v8  }
  0xbf   : > { %v672_v61 = vpop.permute.xlu1 %671 }
  0xc0   : > { %v697_v63 = vmul.f32 %v6012_v38, %v672_v61  ;;  %5566 = vset.pattern.permute.xlu1 %v5687_v13 }
  0xc1   : > { %1035 = vperm.xlu1 %5566, %v5847_v10  }
  0xc2   : > { %v705_v3 = vadd.f32 %v697_v63, %v645_v62  ;;  %v696_v62 = vmul.f32 %v6012_v38, %v6042_v58  ;;  %v748_v58 = vmul.f32 %v6026_v46, %v6006_v35  ;;  %v1004_v35 = vsub.s32 7, %v5989_v27 }
  0xc3   : > { %v676_v4 = vpop.permute.xlu1 %675 }
  0xc4   : > { %v698_v5 = vmul.f32 %v6012_v38, %v676_v4 }
  0xc5   : > { %1043 = vperm.xlu1 %5566, %v5838_v8   ;;  %v6064_v8 = vld [vmem:[%s6997_s3 + $0x28] sm:$0xff]  }
  0xc6   : > { %v706_v6 = vadd.f32 %v698_v5, %v646_v0  ;;  %5141 = vmatprep.subr.bf16.mxu0 %v6064_v8  ;;  %v900_v5 = vsub.s32 5, %v5989_v27 }
  0xc8   : > { %v626_v22 = vpop.permute.xlu1 %625 }
  0xc9   : > { %v647_v23 = vmul.f32 %v6009_v37, %v626_v22  ;;  %1047 = vperm.xlu1 %5566, %v5861_v12   ;;  %v800_v22 = vmul.f32 %v6020_v44, %v6028_v48 }
  0xcb   : > { %v707_v10 = vadd.f32 %v699_v9, %v647_v23  ;;  %v952_v23 = vsub.s32 6, %v5989_v27 }
  0xcc   : > { %v631_v25 = vpop.permute.xlu1 %630 }
  0xcd   : > { %5569 = vset.pattern.permute.xlu1 %v5684_v7  ;;  %v648_v29 = vmul.f32 %v6009_v37, %v631_v25  ;;  %v6071_v7 = vpop.permute.xlu0 %819  ;;  %v6118_v25 = vrot.slane %v6004_v34, %v900_v5 }
  0xce   : > { %687 = vperm.xlu1 %5569, %v5901_v17   ;;  %v851_v5 = vmul.f32 %v6033_v51, %v6071_v7 }
  0xd1   : > { %v684_v28 = vpop.permute.xlu1 %683  ;;  %v832_v33 = vpop.permute.xlu0 %831 }
  0xd2   : > { %v700_v30 = vmul.f32 %v6012_v38, %v684_v28  ;;  %5570 = vset.pattern.permute.xlu1 %v5682_v1  ;;  %v854_v0 = vmul.f32 %v6033_v51, %v832_v33 }
  0xd3   : > { %739 = vperm.xlu1 %5570, %v5901_v17  }
  0xd4   : > { %v708_v12 = vadd.f32 %v700_v30, %v648_v29  ;;  %v6122_v29 = vrot.slane %v6004_v34, %v952_v23 }
  0xd5   : > { %v840_v40 = vpop.permute.xlu0 %839 }
  0xd6   : > { %v6078_v32 = vpop.permute.xlu1 %871  ;;  %v856_v48 = vmul.f32 %v6033_v51, %v840_v40 }
  0xd7   : > { %5572 = vset.pattern.permute.xlu1 %v5686_v11 }
  0xd8   : > { %843 = vperm.xlu1 %5572, %v5901_v17  }
  0xd9   : > { %v1032_v50 = vpop.permute.xlu0 %1031 }
  0xdb   : > { %v724_v1 = vpop.permute.xlu1 %723 }
  0xdc   : > { %v749_v39 = vmul.f32 %v6026_v46, %v724_v1  ;;  %5573 = vset.pattern.permute.xlu1 %v5688_v14 }
  0xdd   : > { %895 = vperm.xlu1 %5573, %v5901_v17  }
  0xde   : > { %v757_v41 = vadd.f32 %v749_v39, %v705_v3 }
  0xdf   : > { %v728_v42 = vpop.permute.xlu1 %727 }
  0xe0   : > { %v750_v43 = vmul.f32 %v6026_v46, %v728_v42  ;;  %v6088_v11 = vadd.f32 %v801_v36, %v757_v41  ;;  %v6131_v36 = vld [vmem:[%s7018_s19 + $0x8] ss:$0 sm:$0xff]  ;;  %v6134_v42 = vrot.slane %v6004_v34, %v1004_v35  ;;  %v6146_v34 = vld [vmem:[%s7019_s26] ss:$0 sm:$0xff] }
  0xe1   : > { %5575 = vset.pattern.permute.xlu1 %v5690_v16  ;;  %v868_v16 = vpop.permute.xlu0 %867  ;;  %v1060_v40 = vmul.f32 %v6131_v36, %v1032_v50 }
  0xe2   : > { %v758_v45 = vadd.f32 %v750_v43, %v706_v6  ;;  %999 = vperm.xlu1 %5575, %v5901_v17  }
  0xe3   : > { %v732_v47 = vpop.permute.xlu1 %731 }
  0xe4   : > { %v751_v14 = vmul.f32 %v6026_v46, %v732_v47 }
  0xe5   : > { %v876_v61 = vpop.permute.xlu0 %875 }
  0xe6   : > { %v759_v52 = vadd.f32 %v751_v14, %v707_v10  ;;  %5576 = vset.pattern.permute.xlu1 %v5687_v13  ;;  %v644_v13 = vmul.f32 %v6009_v37, %v5976_v21  ;;  %v852_v21 = vmul.f32 %v6033_v51, %v6040_v57  ;;  %v904_v28 = vmul.f32 %v6118_v25, %v876_v61 }
  0xe7   : > { %1051 = vperm.xlu1 %5576, %v5901_v17   ;;  %v736_v53 = vpop.permute.xlu1 %735  ;;  %v695_v14 = vmul.f32 %v6012_v38, %v5980_v24  ;;  %v747_v61 = vmul.f32 %v6026_v46, %v5972_v20 }
  0xe8   : > { %v752_v54 = vmul.f32 %v6026_v46, %v736_v53  ;;  %v6097_v55 = vadd.f32 %v803_v49, %v759_v52  ;;  %v704_v4 = vadd.f32 %v696_v62, %v644_v13  ;;  %v902_v52 = vmul.f32 %v6118_v25, %v868_v16 }
  0xe9   : > { %v6106_v6 = vpop.permute.xlu0 %887 }
  0xea   : > { %v760_v59 = vadd.f32 %v752_v54, %v708_v12  ;;  %v756_v10 = vadd.f32 %v748_v58, %v704_v4  ;;  %v643_v54 = vmul.f32 %v6009_v37, %v5970_v19  ;;  %v910_v16 = vadd.f32 %v902_v52, %v6038_v56 }
  0xeb   : > { %v799_v19 = vmul.f32 %v6020_v44, %v6052_v2  ;;  %v903_v58 = vmul.f32 %v6118_v25, %v6078_v32 }
  0xec   : > { %v928_v60 = vpop.permute.xlu1 %927  ;;  %v808_v26 = vadd.f32 %v800_v22, %v756_v10  ;;  %v703_v24 = vadd.f32 %v695_v14, %v643_v54 }
  0xed   : > { %v920_v12 = vpop.permute.xlu0 %919  ;;  %v956_v57 = vmul.f32 %v6122_v29, %v928_v60 }
  0xee   : > { %v860_v1 = vadd.f32 %v852_v21, %v808_v26  ;;  %v954_v50 = vmul.f32 %v6122_v29, %v920_v12  ;;  %v755_v4 = vadd.f32 %v747_v61, %v703_v24 }
  0xf0   : > { %v912_v41 = vadd.f32 %v904_v28, %v860_v1  ;;  %v1154_v1 = vld [vmem:[#allocation2 + $0x8] sm:$0xff] }
  0xf1   : > { %v780_v63 = vpop.permute.xlu1 %779  ;;  %v924_v49 = vpop.permute.xlu0 %923 }
  0xf2   : > { %v802_v3 = vmul.f32 %v6020_v44, %v780_v63  ;;  %v955_v2 = vmul.f32 %v6122_v29, %v924_v49 }
  0xf4   : > { %v810_v17 = vadd.f32 %v802_v3, %v758_v45  ;;  %v964_v45 = vadd.f32 %v956_v57, %v912_v41  ;;  %v962_v3 = vadd.f32 %v954_v50, %v910_v16  ;;  %v1138_v57 = vld [vmem:[#allocation2 + $0x7] sm:$0xff] }
  0xf5   : > { %v5583_v16 = vld [vmem:[%s6997_s3 + $0x20] sm:$0xff]  }
  0xf6   : > { %v972_v9 = vpop.permute.xlu1 %971  ;;  %v6108_v15 = vadd.f32 %v854_v0, %v810_v17  ;;  %v6158_v0 = vpop.permute.xlu0 %935 }
  0xf7   : > { %v1006_v62 = vmul.f32 %v6134_v42, %v972_v9  ;;  %v807_v9 = vadd.f32 %v799_v19, %v755_v4 }
  0xf9   : > { %v1014_v20 = vadd.f32 %v1006_v62, %v962_v3  ;;  %v859_v10 = vadd.f32 %v851_v5, %v807_v9  ;;  %v5585_v62 = vld [vmem:[%s6997_s3 + $0x30] sm:$0xff]  }
  0xfa   : > { %v976_v23 = vpop.permute.xlu0 %975 }
  0xfb   : > { %v788_v30 = vpop.permute.xlu1 %787  ;;  %v911_v28 = vadd.f32 %v903_v58, %v859_v10  ;;  %v1007_v7 = vmul.f32 %v6134_v42, %v976_v23 }
  0xfc   : > { %v804_v33 = vmul.f32 %v6020_v44, %v788_v30 }
  0xfd   : > { %v963_v30 = vadd.f32 %v955_v2, %v911_v28 }
  0xfe   : > { %v812_v39 = vadd.f32 %v804_v33, %v760_v59  ;;  %v984_v3 = vpop.permute.xlu0 %983 }
  0xff   : > { %v1015_v12 = vadd.f32 %v1007_v7, %v963_v30 }
 0x100   : > { %v980_v27 = vpop.permute.xlu1 %979  ;;  %v6136_v43 = vadd.f32 %v856_v48, %v812_v39 }
 0x101   : > { %v1008_v47 = vmul.f32 %v6134_v42, %v980_v27 }
 0x102   : > { %v996_v5 = vpop.permute.xlu0 %995 }
 0x103   : > { %v1016_v53 = vadd.f32 %v1008_v47, %v964_v45 }
 0x105   : > { %v1068_v59 = vadd.f32 %v1060_v40, %v1016_v53  ;;  %v6151_v60 = vpop.permute.xlu1 %827 }
 0x106   : > { %v853_v9 = vmul.f32 %v6033_v51, %v6151_v60  ;;  %v1040_v58 = vpop.permute.xlu0 %1039  ;;  %v907_v60 = vmul.f32 %v6118_v25, %v6106_v6 }
 0x107   : > { %v1083_v63 = vadd.f32 %v6146_v34, %v1068_v59  ;;  %v1062_v28 = vmul.f32 %v6131_v36, %v1040_v58 }
 0x108   : > { %v861_v7 = vadd.f32 %v853_v9, %v6088_v11 }
 0x109   : > { %v1091_v13 = vmax.f32 %v1083_v63, 0.0 }
 0x10a   : > { %v1024_v17 = vpop.permute.xlu1 %1023 }
 0x10b   : > { %1132 = vst.msk [vmem:[#allocation2 + $0x50] sm:$0xff] %vm1097_vm0, %v1091_v13  ;;  %v1058_v56 = vmul.f32 %v6131_v36, %v1024_v17  ;;  %v6216_v13 = vld [vmem:[%s6997_s3 + $0x48] sm:$0xff]   ;;  %v6221_v17 = vld [vmem:[%s6997_s3 + $0x58] sm:$0xff]  }
 0x10d   : > { %v1066_v22 = vadd.f32 %v1058_v56, %v1014_v20 }
 0x10f   : > { %v1081_v21 = vadd.f32 %v6146_v34, %v1066_v22  ;;  %v836_v26 = vpop.permute.xlu1 %835 }
 0x110   : > { %v855_v10 = vmul.f32 %v6033_v51, %v836_v26  ;;  %v1009_v26 = vmul.f32 %v6134_v42, %v984_v3 }
 0x111   : > { %v1089_v35 = vmax.f32 %v1081_v21, 0.0 }
 0x112   : > { %v6183_v53 = vld [vmem:[#allocation2 + $0x50] sm:$0xff] }
 0x113   : > { %1130 = vst.msk [vmem:[#allocation2 + $0x20] sm:$0xff] %vm1097_vm0, %v1089_v35  ;;  %v6189_v59 = vld [vmem:[#allocation2 + $0x4f] sm:$0xff] }
 0x114   : > { %v1028_v48 = vpop.permute.xlu1 %1027 }
 0x115   : > { %v1059_v33 = vmul.f32 %v6131_v36, %v1028_v48  ;;  %v863_v48 = vadd.f32 %v855_v10, %v6097_v55 }
 0x117   : > { %v1067_v32 = vadd.f32 %v1059_v33, %v1015_v12 }
 0x119   : > { %v1082_v39 = vadd.f32 %v6146_v34, %v1067_v32  ;;  %v880_v41 = vpop.permute.xlu1 %879 }
 0x11a   : > { %v6174_v27 = vld [vmem:[#allocation2 + $0x20] sm:$0xff]  ;;  %v905_v22 = vmul.f32 %v6118_v25, %v880_v41 }
 0x11b   : > { %v6176_v40 = vld [vmem:[#allocation2 + $0x1f] sm:$0xff]  ;;  %v1090_v45 = vmax.f32 %v1082_v39, 0.0  ;;  %v1162_v47 = vpack.c.bf16 %v6174_v27, %v1154_v1 }
 0x11c   : > { %v1146_v49 = vpack.c.bf16 %v6176_v40, %v1138_v57  ;;  %v915_v57 = vadd.f32 %v907_v60, %v863_v48 }
 0x11d   : > { %1131 = vst.msk [vmem:[#allocation2 + $0x38] sm:$0xff] %vm1097_vm0, %v1090_v45  ;;  %5121 = vmatprep.mubr.msk.bf16.mxu0 %vm1097_vm0, %v1162_v47  ;;  %v884_v14 = vpop.permute.xlu1 %883 }
 0x11e   : > { %5133 = vmatprep.mubr.msk.bf16.mxu1 %vm1097_vm0, %v1146_v49  ;;  %v906_v20 = vmul.f32 %v6118_v25, %v884_v14 }
 0x120   : > { %v914_v56 = vadd.f32 %v906_v20, %v6108_v15  ;;  %v913_v15 = vadd.f32 %v905_v22, %v861_v7 }
 0x121   : > { %v892_v52 = vpop.permute.xlu1 %891 }
 0x122   : > { %v908_v1 = vmul.f32 %v6118_v25, %v892_v52  ;;  %v1012_v52 = vmul.f32 %v6134_v42, %v996_v5  ;;  %v636_v5 = vpop.permute.xlu0 %635 }
 0x124   : > { %v6185_v54 = vld [vmem:[#allocation2 + $0x38] sm:$0xff]  ;;  %v916_v49 = vadd.f32 %v908_v1, %v6136_v43 }
 0x125   : > { %v6187_v50 = vld [vmem:[#allocation2 + $0x37] sm:$0xff]  ;;  %v6193_v61 = vpack.c.bf16 %v6183_v53, %v6185_v54  ;;  %v1585_v19 = vpack.c.bf16 %v6185_v54, %v6174_v27  ;;  %v5593_v27 = vld [vmem:[%s6997_s3 + $0x88] sm:$0xff]  }
 0x126   : > { %v6197_v24 = vpack.c.bf16 %v6189_v59, %v6187_v50  ;;  %v932_v63 = vpop.permute.xlu1 %931 }
 0x127   : > { %5122 = vmatmul.mubr.msk.bf16.vlgmr.msra.gmra.mxu0 %vm1097_vm0, %v6193_v61 }
 0x128   : > { %5134 = vmatmul.mubr.msk.bf16.vlgmr.msra.gmra.mxu1 %vm1097_vm0, %v6197_v24  ;;  %5142 = vmatpush3.bf16.msra.mxu0 %v6064_v8 }
 0x129   : > { %5154 = vmatpush3.bf16.msra.mxu1 %v6076_v31  ;;  %5143 = vmatprep.subr.bf16.mxu0 %v5583_v16  ;;  %v958_v31 = vmul.f32 %v6122_v29, %v6158_v0  ;;  %v957_v0 = vmul.f32 %v6122_v29, %v932_v63 }
 0x12a   : > { %5155 = vmatprep.subr.bf16.mxu1 %v5585_v62  ;;  %v940_v4 = vpop.permute.xlu1 %939 }
 0x12b   : > { %v966_v2 = vadd.f32 %v958_v31, %v914_v56  ;;  %v965_v33 = vadd.f32 %v957_v0, %v913_v15  ;;  %v959_v11 = vmul.f32 %v6122_v29, %v940_v4 }
 0x12c   : > { %5144 = vmatpush3.bf16.msra.mxu0 %v5583_v16 }
 0x12d   : > { %5156 = vmatpush3.bf16.msra.mxu1 %v5585_v62  ;;  %5165 = vmatprep.subr.bf16.mxu0 %v6216_v13  ;;  %v1017_v45 = vadd.f32 %v1009_v26, %v965_v33  ;;  %v967_v14 = vadd.f32 %v959_v11, %v915_v57  ;;  %v792_v33 = vpop.permute.xlu0 %791  ;;  %v1349_v57 = vld [vmem:[#allocation2 + $0x9] sm:$0xff] }
 0x12e   : > { %5177 = vmatprep.subr.bf16.mxu1 %v6221_v17  ;;  %v944_v8 = vpop.permute.xlu1 %943 }
 0x12f   : > { %v960_v47 = vmul.f32 %v6122_v29, %v944_v8 }
 0x131   : > { %v968_v63 = vadd.f32 %v960_v47, %v916_v49 }
 0x133   : > { %v988_v23 = vpop.permute.xlu1 %987  ;;  %v1020_v9 = vadd.f32 %v1012_v52, %v968_v63  ;;  %v1351_v63 = vld [vmem:[#allocation2 + $0x39] sm:$0xff] }
 0x134   : > { %v1010_v21 = vmul.f32 %v6134_v42, %v988_v23 }
 0x136   : > { %v1018_v35 = vadd.f32 %v1010_v21, %v966_v2 }
 0x137   : > { %v992_v30 = vpop.permute.xlu1 %991 }
 0x138   : > { %v1070_v12 = vadd.f32 %v1062_v28, %v1018_v35  ;;  %v1011_v6 = vmul.f32 %v6134_v42, %v992_v30  ;;  %v649_v28 = vmul.f32 %v6009_v37, %v636_v5  ;;  %v5592_v5 = vld [vmem:[%s6997_s3 + $0x78] sm:$0xff]  }
 0x13a   : > { %v1085_v32 = vadd.f32 %v6146_v34, %v1070_v12  ;;  %v1019_v3 = vadd.f32 %v1011_v6, %v967_v14  ;;  %v1471_v14 = vpack.c.bf16 %v6187_v50, %v6176_v40  ;;  %v1352_v50 = vld [vmem:[#allocation2 + $0x51] sm:$0xff] }
 0x13c   : > { %v1093_v39 = vmax.f32 %v1085_v32, 0.0  ;;  %v1036_v41 = vpop.permute.xlu1 %1035  ;;  %v805_v32 = vmul.f32 %v6020_v44, %v792_v33 }
 0x13d   : > { %v1061_v55 = vmul.f32 %v6131_v36, %v1036_v41 }
 0x13e   : > { %1134 = vst.msk [vmem:[#allocation2 + $0x80] sm:$0xff] %vm1097_vm0, %v1093_v39  ;;  %v6278_v39 = vld [vmem:[#allocation2 + $0x21] sm:$0xff] }
 0x13f   : > { %v1069_v16 = vadd.f32 %v1061_v55, %v1017_v45  ;;  %v1357_v49 = vpack.c.bf16 %v6278_v39, %v1349_v57  ;;  %v5597_v57 = vld [vmem:[%s6999_s5 + $0x18] sm:$0xff]  }
 0x140   : > { %v1044_v62 = vpop.permute.xlu1 %1043 }
 0x141   : > { %v1084_v4 = vadd.f32 %v6146_v34, %v1069_v16  ;;  %v1063_v20 = vmul.f32 %v6131_v36, %v1044_v62  ;;  %v948_v16 = vpop.permute.xlu0 %947 }
 0x143   : > { %v1092_v8 = vmax.f32 %v1084_v4, 0.0  ;;  %v1071_v31 = vadd.f32 %v1063_v20, %v1019_v3  ;;  %v961_v4 = vmul.f32 %v6122_v29, %v948_v16 }
 0x144   : > { %v1048_v56 = vpop.permute.xlu1 %1047 }
 0x145   : > { %1133 = vst.msk [vmem:[#allocation2 + $0x68] sm:$0xff] %vm1097_vm0, %v1092_v8  ;;  %v1086_v58 = vadd.f32 %v6146_v34, %v1071_v31  ;;  %v1064_v43 = vmul.f32 %v6131_v36, %v1048_v56  ;;  %v6259_v0 = vld [vmem:[#allocation2 + $0x80] sm:$0xff]  ;;  %v6303_v8 = vpack.c.bf16 %v1352_v50, %v1351_v63 }
 0x146   : > { %v1143_v30 = vld [vmem:[#allocation2 + $0x7f] sm:$0xff] }
 0x147   : > { %v1094_v22 = vmax.f32 %v1086_v58, 0.0  ;;  %v1072_v23 = vadd.f32 %v1064_v43, %v1020_v9  ;;  %v1354_v56 = vld [vmem:[#allocation2 + $0x81] sm:$0xff] }
 0x148   : > { %v5587_v43 = vld [vmem:[%s6997_s3 + $0x40] sm:$0xff]  }
 0x149   : > { %1135 = vst.msk [vmem:[#allocation2 + $0x98] sm:$0xff] %vm1097_vm0, %v1094_v22  ;;  %v1087_v10 = vadd.f32 %v6146_v34, %v1072_v23  ;;  %v688_v2 = vpop.permute.xlu1 %687 }
 0x14a   : > { %v701_v7 = vmul.f32 %v6012_v38, %v688_v2 }
 0x14b   : > { %v1095_v21 = vmax.f32 %v1087_v10, 0.0 }
 0x14c   : > { %v6261_v35 = vld [vmem:[#allocation2 + $0x68] sm:$0xff]  ;;  %v709_v26 = vadd.f32 %v701_v7, %v649_v28 }
 0x14d   : > { %v1142_v15 = vld [vmem:[#allocation2 + $0x67] sm:$0xff]  ;;  %1136 = vst.msk [vmem:[#allocation2 + $0xb0] sm:$0xff] %vm1097_vm0, %v1095_v21  ;;  %v6266_v60 = vpack.c.bf16 %v6259_v0, %v6261_v35 }
 0x14e   : > { %v6268_v48 = vpack.c.bf16 %v1143_v30, %v1142_v15  ;;  %v740_v12 = vpop.permute.xlu1 %739  ;;  %v1353_v40 = vld [vmem:[#allocation2 + $0x69] sm:$0xff]  ;;  %v1472_v31 = vpack.c.bf16 %v1142_v15, %v6189_v59  ;;  %v5591_v15 = vld [vmem:[%s6997_s3 + $0x60] sm:$0xff]  }
 0x14f   : > { %v753_v37 = vmul.f32 %v6026_v46, %v740_v12  ;;  %5125 = vmatprep.mubr.msk.bf16.mxu0 %vm1097_vm0, %v6266_v60  ;;  %v6306_v9 = vpack.c.bf16 %v1354_v56, %v1353_v40  ;;  %v5594_v12 = vld [vmem:[%s6997_s3 + $0x70] sm:$0xff]  }
 0x150   : > { %5137 = vmatprep.mubr.msk.bf16.mxu1 %vm1097_vm0, %v6268_v48  ;;  %v6276_v11 = vld [vmem:[#allocation2 + $0x98] sm:$0xff] }
 0x151   : > { %v761_v38 = vadd.f32 %v753_v37, %v709_v26  ;;  %v1144_v45 = vld [vmem:[#allocation2 + $0x97] sm:$0xff]  ;;  %v5595_v26 = vld [vmem:[%s6997_s3 + $0x80] sm:$0xff]  }
 0x152   : > { %v1473_v58 = vpack.c.bf16 %v1144_v45, %v1143_v30  ;;  %v1355_v21 = vld [vmem:[#allocation2 + $0x99] sm:$0xff]  ;;  %v1700_v30 = vpack.c.bf16 %v1353_v40, %v1352_v50 }
 0x153   : > { %v844_v1 = vpop.permute.xlu1 %843  ;;  %v813_v46 = vadd.f32 %v805_v32, %v761_v38  ;;  %v1701_v33 = vpack.c.bf16 %v1355_v21, %v1354_v56  ;;  %v1813_v37 = vld [vmem:[#allocation2 + $0xdf] sm:$0xff] }
 0x154   : > { %v6280_v41 = vld [vmem:[#allocation2 + $0xb0] sm:$0xff]  ;;  %v857_v6 = vmul.f32 %v6033_v51, %v844_v1  ;;  %v2041_v1 = vld [vmem:[#allocation2 + $0xe1] sm:$0xff] }
 0x155   : > { %v6282_v47 = vld [vmem:[#allocation2 + $0xaf] sm:$0xff]  ;;  %v6287_v55 = vpack.c.bf16 %v6280_v41, %v6276_v11 }
 0x156   : > { %v6290_v44 = vpack.c.bf16 %v6282_v47, %v1144_v45  ;;  %v865_v52 = vadd.f32 %v857_v6, %v813_v46  ;;  %v1356_v23 = vld [vmem:[#allocation2 + $0xb1] sm:$0xff]  ;;  %v5600_v45 = vld [vmem:[%s6999_s5 + $0x28] sm:$0xff]   ;;  %v5603_v46 = vld [vmem:[%s6999_s5] sm:$0xff]  }
 0x157   : > { %5126 = vmatmul.mubr.msk.bf16.gmra.mxu0 %vm1097_vm0, %v6287_v55  ;;  %v6461_v6 = vld [vmem:[%s6999_s5 + $0x58] sm:$0xff]  }
 0x158   : > { %5138 = vmatmul.mubr.msk.bf16.gmra.mxu1 %vm1097_vm0, %v6290_v44  ;;  %5145 = vmatprep.mubr.msk.bf16.mxu0 %vm1097_vm0, %v1357_v49  ;;  %v896_v51 = vpop.permute.xlu1 %895 }
 0x159   : > { %5157 = vmatprep.mubr.msk.bf16.mxu1 %vm1097_vm0, %v1471_v14  ;;  %v909_v62 = vmul.f32 %v6118_v25, %v896_v51  ;;  %v5590_v25 = vld [vmem:[%s6997_s3 + $0x50] sm:$0xff]  }
 0x15b   : > { %v917_v3 = vadd.f32 %v909_v62, %v865_v52 }
 0x15d   : > { %v1000_v20 = vpop.permute.xlu1 %999  ;;  %v969_v29 = vadd.f32 %v961_v4, %v917_v3 }
 0x15e   : > { %v1013_v22 = vmul.f32 %v6134_v42, %v1000_v20  ;;  %v5589_v42 = vld [vmem:[%s6997_s3 + $0x68] sm:$0xff]  }
 0x15f   : > { %5146 = vmatmul.mubr.msk.bf16.vlgmr.msra.gmra.mxu0 %vm1097_vm0, %v6303_v8 }
 0x160   : > { %5158 = vmatmul.mubr.msk.bf16.vlgmr.msra.gmra.mxu1 %vm1097_vm0, %v1472_v31  ;;  %5149 = vmatprep.mubr.msk.bf16.mxu0 %vm1097_vm0, %v6306_v9  ;;  %v1021_v10 = vadd.f32 %v1013_v22, %v969_v29 }
 0x161   : > { %5161 = vmatprep.mubr.msk.bf16.mxu1 %vm1097_vm0, %v1473_v58  ;;  %5166 = vmatpush3.bf16.msra.mxu0 %v6216_v13  ;;  %v1360_v13 = vpack.c.bf16 %v1356_v23, %v1355_v21 }
 0x162   : > { %5178 = vmatpush3.bf16.msra.mxu1 %v6221_v17  ;;  %v1052_v59 = vpop.permute.xlu1 %1051  ;;  %5167 = vmatprep.subr.bf16.mxu0 %v5587_v43 }
 0x163   : > { %5179 = vmatprep.subr.bf16.mxu1 %v5590_v25  ;;  %v1065_v2 = vmul.f32 %v6131_v36, %v1052_v59  ;;  %v1586_v36 = vpack.c.bf16 %v6261_v35, %v6183_v53  ;;  %v1699_v35 = vpack.c.bf16 %v1351_v63, %v6278_v39  ;;  %v5598_v39 = vld [vmem:[%s6999_s5 + $0x30] sm:$0xff]  }
 0x165   : > { %v1073_v28 = vadd.f32 %v1065_v2, %v1021_v10  ;;  %5168 = vmatpush3.bf16.msra.mxu0 %v5587_v43 }
 0x166   : > { %5180 = vmatpush3.bf16.msra.mxu1 %v5590_v25  ;;  %5189 = vmatprep.subr.bf16.mxu0 %v5589_v42 }
 0x167   : > { %5201 = vmatprep.subr.bf16.mxu1 %v5592_v5  ;;  %v1088_v17 = vadd.f32 %v6146_v34, %v1073_v28  ;;  %5150 = vmatmul.mubr.msk.bf16.gmra.mxu0 %vm1097_vm0, %v1360_v13  ;;  %v1587_v34 = vpack.c.bf16 %v6276_v11, %v6259_v0 }
 0x168   : > { %5169 = vmatprep.mubr.msk.bf16.mxu0 %vm1097_vm0, %v1585_v19 }
 0x169   : > { %v1096_v7 = vmax.f32 %v1088_v17, 0.0 }
 0x16b   : > { %1137 = vst.msk [vmem:[#allocation2 + $0xc8] sm:$0xff] %vm1097_vm0, %v1096_v7 }
 0x16f   : > { %5170 = vmatmul.mubr.msk.bf16.vlgmr.msra.gmra.mxu0 %vm1097_vm0, %v1586_v36 }
 0x170   : > { %5173 = vmatprep.mubr.msk.bf16.mxu0 %vm1097_vm0, %v1587_v34  ;;  %5190 = vmatpush3.bf16.msra.mxu0 %v5589_v42 }
 0x171   : > { %5191 = vmatprep.subr.bf16.mxu0 %v5591_v15 }
 0x172   : > { %v1470_v54 = vld [vmem:[#allocation2 + $0xc7] sm:$0xff] }
 0x173   : > { %v1584_v19 = vld [vmem:[#allocation2 + $0xc8] sm:$0xff]  ;;  %v1474_v53 = vpack.c.bf16 %v1470_v54, %v6282_v47  ;;  %v1817_v32 = vpack.c.bf16 %v1813_v37, %v1470_v54  ;;  %v5602_v47 = vld [vmem:[%s6999_s5 + $0x20] sm:$0xff]  }
 0x174   : > { %5192 = vmatpush3.bf16.msra.mxu0 %v5591_v15  ;;  %v1588_v0 = vpack.c.bf16 %v1584_v19, %v6280_v41  ;;  %v5599_v41 = vld [vmem:[%s6999_s5 + $0x10] sm:$0xff]  }
 0x175   : > { %5162 = vmatmul.mubr.msk.bf16.gmra.mxu1 %vm1097_vm0, %v1474_v53  ;;  %5213 = vmatprep.subr.bf16.mxu0 %v5593_v27 }
 0x176   : > { %5181 = vmatprep.mubr.msk.bf16.mxu1 %vm1097_vm0, %v1699_v35 }
 0x177   : > { %5174 = vmatmul.mubr.msk.bf16.gmra.mxu0 %vm1097_vm0, %v1588_v0 }
 0x178   : > { %5193 = vmatprep.mubr.msk.bf16.mxu0 %vm1097_vm0, %v6197_v24  ;;  %v1698_v24 = vld [vmem:[#allocation2 + $0xc9] sm:$0xff] }
 0x179   : > { %v1702_v38 = vpack.c.bf16 %v1698_v24, %v1356_v23 }
 0x17d   : > { %5182 = vmatmul.mubr.msk.bf16.vlgmr.msra.gmra.mxu1 %vm1097_vm0, %v1700_v30 }
 0x17e   : > { %5185 = vmatprep.mubr.msk.bf16.mxu1 %vm1097_vm0, %v1701_v33  ;;  %5202 = vmatpush3.bf16.msra.mxu1 %v5592_v5 }
 0x17f   : > { %5194 = vmatmul.mubr.msk.bf16.vlgmr.msra.gmra.mxu0 %vm1097_vm0, %v6268_v48  ;;  %5203 = vmatprep.subr.bf16.mxu1 %v5594_v12  ;;  %v1927_v48 = vld [vmem:[#allocation2 + $0xe0] sm:$0xff] }
 0x180   : > { %5197 = vmatprep.mubr.msk.bf16.mxu0 %vm1097_vm0, %v6290_v44  ;;  %5214 = vmatpush3.bf16.msra.mxu0 %v5593_v27  ;;  %v1931_v11 = vpack.c.bf16 %v1927_v48, %v1584_v19 }
 0x181   : > { %5215 = vmatprep.subr.bf16.mxu0 %v5595_v26 }
 0x182   : > { %5204 = vmatpush3.bf16.msra.mxu1 %v5594_v12 }
 0x184   : > { %5216 = vmatpush3.bf16.msra.mxu0 %v5595_v26 }
 0x185   : > { %5186 = vmatmul.mubr.msk.bf16.gmra.mxu1 %vm1097_vm0, %v1702_v38  ;;  %5241 = vmatprep.subr.bf16.mxu0 %v5597_v57 }
 0x186   : > { %5205 = vmatprep.mubr.msk.bf16.mxu1 %vm1097_vm0, %v6193_v61  ;;  %v2045_v61 = vpack.c.bf16 %v2041_v1, %v1698_v24 }
 0x187   : > { %5198 = vmatmul.mubr.msk.bf16.gmra.mxu0 %vm1097_vm0, %v1817_v32 }
 0x188   : > { %5217 = vmatprep.mubr.msk.bf16.mxu0 %vm1097_vm0, %v6303_v8 }
 0x18d   : > { %5206 = vmatmul.mubr.msk.bf16.vlgmr.msra.gmra.mxu1 %vm1097_vm0, %v6266_v60  ;;  %v5596_v60 = vld [vmem:[%s6999_s5 + $0x38] sm:$0xff]  }
 0x18e   : > { %5209 = vmatprep.mubr.msk.bf16.mxu1 %vm1097_vm0, %v6287_v55  ;;  %5225 = vmatprep.subr.bf16.mxu1 %v5596_v60  ;;  %v6466_v55 = vld [vmem:[%s6999_s5 + $0x78] sm:$0xff]  }
 0x18f   : > { %5218 = vmatmul.mubr.msk.bf16.vlgmr.msra.gmra.mxu0 %vm1097_vm0, %v6306_v9  ;;  %5226 = vmatpush3.bf16.msra.mxu1 %v5596_v60 }
 0x190   : > { %5221 = vmatprep.mubr.msk.bf16.mxu0 %vm1097_vm0, %v1360_v13  ;;  %5242 = vmatpush3.bf16.msra.mxu0 %v5597_v57 }
 0x191   : > { %5227 = vmatprep.subr.bf16.mxu1 %v5598_v39  ;;  %5243 = vmatprep.subr.bf16.mxu0 %v5599_v41 }
 0x193   : > { %5228 = vmatpush3.bf16.msra.mxu1 %v5598_v39 }
 0x194   : > { %5244 = vmatpush3.bf16.msra.mxu0 %v5599_v41  ;;  %5229 = vmatprep.subr.bf16.mxu1 %v5600_v45 }
 0x195   : > { %5210 = vmatmul.mubr.msk.bf16.gmra.mxu1 %vm1097_vm0, %v1931_v11  ;;  %5245 = vmatprep.subr.bf16.mxu0 %v5601_v18 }
 0x197   : > { %5222 = vmatmul.mubr.msk.bf16.gmra.mxu0 %vm1097_vm0, %v2045_v61  ;;  %5230 = vmatpush3.bf16.msra.mxu1 %v5600_v45 }
 0x198   : > { %5246 = vmatpush3.bf16.msra.mxu0 %v5601_v18  ;;  %5231 = vmatprep.subr.bf16.mxu1 %v5602_v47 }
 0x199   : > { %5247 = vmatprep.subr.bf16.mxu0 %v5603_v46 }
 0x19b   : > { %5232 = vmatpush3.bf16.msra.mxu1 %v5602_v47 }
 0x19c   : > { %5248 = vmatpush3.bf16.msra.mxu0 %v5603_v46  ;;  %5257 = vmatprep.subr.bf16.mxu1 %v6461_v6 }
 0x19d   : > { %5273 = vmatprep.subr.bf16.mxu0 %v6466_v55 }
 0x1e7   : > { %v5123_v44 = vpop.f32.mrf.mxu0 }
 0x1e8   : > { %v5135_v49 = vpop.f32.mrf.mxu1 }
 0x1e9   : > { %v1229_v14 = vpop.f32.mrf.mxu0  ;;  %v1327_v0 = vadd.f32 %v5135_v49, %v5123_v44 }
 0x1ea   : > { %v1318_v51 = vpop.f32.mrf.mxu1 }
 0x1eb   : > { %v5124_v16 = vpop.f32.mrf.mxu0  ;;  %v1319_v33 = vadd.f32 %v1318_v51, %v1229_v14 }
 0x1ec   : > { %v5136_v52 = vpop.f32.mrf.mxu1 }
 0x1ed   : > { %v1232_v62 = vpop.f32.mrf.mxu0  ;;  %v1330_v38 = vadd.f32 %v5136_v52, %v5124_v16 }
 0x1ee   : > { %v1321_v63 = vpop.f32.mrf.mxu1 }
 0x1ef   : > { %v1322_v11 = vadd.f32 %v1321_v63, %v1232_v62 }
 0x217   : > { %v5127_v3 = vpop.f32.mrf.mxu0 }
 0x218   : > { %v5139_v4 = vpop.f32.mrf.mxu1 }
 0x219   : > { %v1245_v40 = vpop.f32.mrf.mxu0  ;;  %v1343_v57 = vadd.f32 %v5139_v4, %v5127_v3 }
 0x21a   : > { %v1334_v50 = vpop.f32.mrf.mxu1 }
 0x21b   : > { %v5128_v20 = vpop.f32.mrf.mxu0  ;;  %v1335_v46 = vadd.f32 %v1334_v50, %v1245_v40 }
 0x21c   : > { %v5140_v31 = vpop.f32.mrf.mxu1 }
 0x21d   : > { %v6470_v8 = vpop.f32.mrf.mxu0  ;;  %v1346_v16 = vadd.f32 %v5140_v31, %v5128_v20 }
 0x21e   : > { %v1337_v58 = vpop.f32.mrf.mxu1 }
 0x21f   : > { %v5147_v56 = vpop.f32.mrf.mxu0  ;;  %v1338_v4 = vadd.f32 %v1337_v58, %v6470_v8  ;;  %v6480_v58 = vld [vmem:[%s6998_s4] ss:$0 sm:$0xff] }
 0x220   : > { %v5159_v29 = vpop.f32.mrf.mxu1  ;;  %v1457_v26 = vadd.f32 %v5147_v56, %v1327_v0 }
 0x221   : > { %v1424_v9 = vpop.f32.mrf.mxu0 }
 0x222   : > { %v1538_v23 = vpop.f32.mrf.mxu1  ;;  %v1455_v32 = vadd.f32 %v1424_v9, %v1319_v33  ;;  %v1571_v61 = vadd.f32 %v5159_v29, %v1457_v26 }
 0x223   : > { %v5148_v43 = vpop.f32.mrf.mxu0 }
 0x224   : > { %v5160_v10 = vpop.f32.mrf.mxu1  ;;  %v1458_v60 = vadd.f32 %v5148_v43, %v1330_v38  ;;  %v1569_v45 = vadd.f32 %v1538_v23, %v1455_v32 }
 0x225   : > { %v1427_v25 = vpop.f32.mrf.mxu0 }
 0x226   : > { %v1541_v28 = vpop.f32.mrf.mxu1  ;;  %v1456_v18 = vadd.f32 %v1427_v25, %v1322_v11  ;;  %v1572_v51 = vadd.f32 %v5160_v10, %v1458_v60 }
 0x227   : > { %v5151_v22 = vpop.f32.mrf.mxu0 }
 0x228   : > { %v1461_v44 = vadd.f32 %v5151_v22, %v1343_v57  ;;  %v1570_v63 = vadd.f32 %v1541_v28, %v1456_v18 }
 0x229   : > { %v1440_v59 = vpop.f32.mrf.mxu0 }
 0x22a   : > { %v1459_v52 = vadd.f32 %v1440_v59, %v1335_v46 }
 0x22b   : > { %v5152_v42 = vpop.f32.mrf.mxu0 }
 0x22c   : > { %v1462_v29 = vadd.f32 %v5152_v42, %v1346_v16 }
 0x22d   : > { %v1443_v5 = vpop.f32.mrf.mxu0 }
 0x22e   : > { %v1460_v10 = vadd.f32 %v1443_v5, %v1338_v4 }
 0x22f   : > { %v5171_v2 = vpop.f32.mrf.mxu0 }
 0x230   : > { %v1685_v47 = vadd.f32 %v5171_v2, %v1571_v61 }
 0x231   : > { %v1652_v21 = vpop.f32.mrf.mxu0 }
 0x232   : > { %v1683_v56 = vadd.f32 %v1652_v21, %v1569_v45 }
 0x233   : > { %v5172_v13 = vpop.f32.mrf.mxu0 }
 0x234   : > { %v1686_v43 = vadd.f32 %v5172_v13, %v1572_v51 }
 0x235   : > { %v5163_v17 = vpop.f32.mrf.mxu1  ;;  %v1655_v7 = vpop.f32.mrf.mxu0 }
 0x236   : > { %v1575_v9 = vadd.f32 %v5163_v17, %v1461_v44  ;;  %v1684_v50 = vadd.f32 %v1655_v7, %v1570_v63 }
 0x237   : > { %v1554_v36 = vpop.f32.mrf.mxu1  ;;  %v5175_v15 = vpop.f32.mrf.mxu0 }
 0x238   : > { %v1573_v25 = vadd.f32 %v1554_v36, %v1459_v52  ;;  %v1689_v21 = vadd.f32 %v5175_v15, %v1575_v9 }
 0x239   : > { %v5164_v34 = vpop.f32.mrf.mxu1  ;;  %v1668_v27 = vpop.f32.mrf.mxu0 }
 0x23a   : > { %v1687_v28 = vadd.f32 %v1668_v27, %v1573_v25 }
 0x23b   : > { %v1557_v54 = vpop.f32.mrf.mxu1  ;;  %v6472_v19 = vpop.f32.mrf.mxu0 }
 0x23c   : > { %v1574_v13 = vadd.f32 %v1557_v54, %v1460_v10 }
 0x23d   : > { %v6474_v53 = vpop.f32.mrf.mxu0  ;;  %v5183_v35 = vpop.f32.mrf.mxu1 }
 0x23e   : > { %v1799_v0 = vadd.f32 %v5183_v35, %v1685_v47  ;;  %v1576_v35 = vadd.f32 %v5164_v34, %v1462_v29  ;;  %v1688_v32 = vadd.f32 %v6474_v53, %v1574_v13 }
 0x23f   : > { %v1766_v30 = vpop.f32.mrf.mxu1  ;;  %v5195_v12 = vpop.f32.mrf.mxu0 }
 0x240   : > { %v1797_v3 = vadd.f32 %v1766_v30, %v1683_v56  ;;  %v1914_v22 = vadd.f32 %v5195_v12, %v1799_v0  ;;  %v1690_v36 = vadd.f32 %v6472_v19, %v1576_v35  ;;  %v2212_v35 = vld [vmem:[#allocation3 + $0x7] sm:$0xff] }
 0x241   : > { %v5184_v24 = vpop.f32.mrf.mxu1  ;;  %v1881_v37 = vpop.f32.mrf.mxu0 }
 0x242   : > { %v1800_v2 = vadd.f32 %v5184_v24, %v1686_v43  ;;  %v1912_v59 = vadd.f32 %v1881_v37, %v1797_v3 }
 0x243   : > { %v1769_v48 = vpop.f32.mrf.mxu1  ;;  %v5196_v1 = vpop.f32.mrf.mxu0 }
 0x244   : > { %v1798_v17 = vadd.f32 %v1769_v48, %v1684_v50  ;;  %v1915_v42 = vadd.f32 %v5196_v1, %v1800_v2 }
 0x245   : > { %v5187_v39 = vpop.f32.mrf.mxu1  ;;  %v1884_v41 = vpop.f32.mrf.mxu0 }
 0x246   : > { %v1803_v30 = vadd.f32 %v5187_v39, %v1689_v21  ;;  %v1913_v24 = vadd.f32 %v1884_v41, %v1798_v17  ;;  %v2232_v21 = vld [vmem:[#allocation3 + $0x8] sm:$0xff] }
 0x247   : > { %v1782_v49 = vpop.f32.mrf.mxu1  ;;  %v5199_v14 = vpop.f32.mrf.mxu0 }
 0x248   : > { %v1801_v15 = vadd.f32 %v1782_v49, %v1687_v28  ;;  %v1918_v48 = vadd.f32 %v5199_v14, %v1803_v30 }
 0x249   : > { %v5188_v33 = vpop.f32.mrf.mxu1  ;;  %v1897_v62 = vpop.f32.mrf.mxu0 }
 0x24a   : > { %v1804_v11 = vadd.f32 %v5188_v33, %v1690_v36  ;;  %v1916_v19 = vadd.f32 %v1897_v62, %v1801_v15 }
 0x24b   : > { %v1785_v23 = vpop.f32.mrf.mxu1  ;;  %v5200_v40 = vpop.f32.mrf.mxu0 }
 0x24c   : > { %v1802_v18 = vadd.f32 %v1785_v23, %v1688_v32  ;;  %v1919_v14 = vadd.f32 %v5200_v40, %v1804_v11  ;;  %v5608_v11 = vld [vmem:[%s6999_s5 + $0x48] sm:$0xff]  }
 0x24d   : > { %v1900_v20 = vpop.f32.mrf.mxu0  ;;  %v5207_v31 = vpop.f32.mrf.mxu1 }
 0x24e   : > { %v2028_v26 = vadd.f32 %v5207_v31, %v1914_v22  ;;  %v1917_v33 = vadd.f32 %v1900_v20, %v1802_v18 }
 0x24f   : > { %v1995_v38 = vpop.f32.mrf.mxu1  ;;  %v5219_v8 = vpop.f32.mrf.mxu0 }
 0x250   : > { %v2026_v7 = vadd.f32 %v1995_v38, %v1912_v59  ;;  %v2142_v5 = vadd.f32 %v5219_v8, %v2028_v26 }
 0x251   : > { %v5208_v34 = vpop.f32.mrf.mxu1  ;;  %v2109_v12 = vpop.f32.mrf.mxu0 }
 0x252   : > { %v2157_v27 = vadd.f32 %v6480_v58, %v2142_v5  ;;  %v2029_v54 = vadd.f32 %v5208_v34, %v1915_v42  ;;  %v2140_v37 = vadd.f32 %v2109_v12, %v2026_v7  ;;  %v5606_v34 = vld [vmem:[%s6999_s5 + $0x50] sm:$0xff]  }
 0x253   : > { %v1998_v61 = vpop.f32.mrf.mxu1  ;;  %v5220_v60 = vpop.f32.mrf.mxu0  ;;  %v5607_v12 = vld [vmem:[%s6999_s5 + $0x70] sm:$0xff]  }
 0x254   : > { %v2165_v57 = vmax.f32 %v2157_v27, 0.0  ;;  %v2155_v1 = vadd.f32 %v6480_v58, %v2140_v37  ;;  %v2027_v39 = vadd.f32 %v1998_v61, %v1913_v24  ;;  %v2143_v45 = vadd.f32 %v5220_v60, %v2029_v54  ;;  %v2455_v61 = vld [vmem:[#allocation3 + $0x9] sm:$0xff] }
 0x255   : > { %v5211_v47 = vpop.f32.mrf.mxu1  ;;  %v2112_v46 = vpop.f32.mrf.mxu0 }
 0x256   : > { %2206 = vst.msk [vmem:[#allocation3 + $0x50] sm:$0xff] %vm2171_vm2, %v2165_v57  ;;  %v2163_v41 = vmax.f32 %v2155_v1, 0.0  ;;  %v2158_v44 = vadd.f32 %v6480_v58, %v2143_v45  ;;  %v2032_v49 = vadd.f32 %v5211_v47, %v1918_v48  ;;  %v2141_v53 = vadd.f32 %v2112_v46, %v2027_v39  ;;  %v5610_v47 = vld [vmem:[%s6999_s5 + $0x40] sm:$0xff]  }
 0x257   : > { %v2011_v51 = vpop.f32.mrf.mxu1  ;;  %v5223_v56 = vpop.f32.mrf.mxu0  ;;  %v5611_v46 = vld [vmem:[%s6999_s5 + $0x60] sm:$0xff]  }
 0x258   : > { %2204 = vst.msk [vmem:[#allocation3 + $0x20] sm:$0xff] %vm2171_vm2, %v2163_v41  ;;  %v2166_v0 = vmax.f32 %v2158_v44, 0.0  ;;  %v2156_v16 = vadd.f32 %v6480_v58, %v2141_v53  ;;  %v2030_v52 = vadd.f32 %v2011_v51, %v1916_v19  ;;  %v2146_v9 = vadd.f32 %v5223_v56, %v2032_v49  ;;  %v5612_v44 = vld [vmem:[%s6999_s5 + $0x98] sm:$0xff]  }
 0x259   : > { %v5212_v62 = vpop.f32.mrf.mxu1  ;;  %v2125_v63 = vpop.f32.mrf.mxu0  ;;  %v5613_v53 = vld [vmem:[%s6999_s5 + $0xb8] sm:$0xff]  }
 0x25a   : > { %2207 = vst.msk [vmem:[#allocation3 + $0x68] sm:$0xff] %vm2171_vm2, %v2166_v0  ;;  %v2164_v43 = vmax.f32 %v2156_v16, 0.0  ;;  %v2161_v3 = vadd.f32 %v6480_v58, %v2146_v9  ;;  %v2033_v4 = vadd.f32 %v5212_v62, %v1919_v14  ;;  %v2144_v29 = vadd.f32 %v2125_v63, %v2030_v52  ;;  %v5614_v9 = vld [vmem:[%s6999_s5 + $0x90] sm:$0xff]  }
 0x25b   : > { %v2014_v25 = vpop.f32.mrf.mxu1  ;;  %v5224_v23 = vpop.f32.mrf.mxu0  ;;  %v5615_v62 = vld [vmem:[%s6999_s5 + $0xb0] sm:$0xff]  }
 0x25c   : > { %2205 = vst.msk [vmem:[#allocation3 + $0x38] sm:$0xff] %vm2171_vm2, %v2164_v43  ;;  %v2169_v40 = vmax.f32 %v2161_v3, 0.0  ;;  %v2159_v50 = vadd.f32 %v6480_v58, %v2144_v29  ;;  %v2031_v22 = vadd.f32 %v2014_v25, %v1917_v33  ;;  %v2147_v2 = vadd.f32 %v5224_v23, %v2033_v4  ;;  %v5616_v43 = vld [vmem:[%s6999_s5 + $0x88] sm:$0xff]  }
 0x25d   : > { %v2128_v10 = vpop.f32.mrf.mxu0  ;;  %v6504_v42 = vld [vmem:[#allocation3 + $0x50] sm:$0xff]  ;;  %v5617_v4 = vld [vmem:[%s6999_s5 + $0xa8] sm:$0xff]  }
 0x25e   : > { %2210 = vst.msk [vmem:[#allocation3 + $0xb0] sm:$0xff] %vm2171_vm2, %v2169_v40  ;;  %v2167_v20 = vmax.f32 %v2159_v50, 0.0  ;;  %v2162_v31 = vadd.f32 %v6480_v58, %v2147_v2  ;;  %v2145_v59 = vadd.f32 %v2128_v10, %v2031_v22  ;;  %v6508_v36 = vld [vmem:[#allocation3 + $0x4f] sm:$0xff] }
 0x25f   : > { %v6496_v17 = vld [vmem:[#allocation3 + $0x20] sm:$0xff]  ;;  %v2458_v51 = vld [vmem:[#allocation3 + $0x51] sm:$0xff]  ;;  %v5620_v10 = vld [vmem:[%s6999_s5 + $0xd8] sm:$0xff]  }
 0x260   : > { %v2213_v26 = vld [vmem:[#allocation3 + $0x1f] sm:$0xff]  ;;  %2208 = vst.msk [vmem:[#allocation3 + $0x80] sm:$0xff] %vm2171_vm2, %v2167_v20  ;;  %v2170_v28 = vmax.f32 %v2162_v31, 0.0  ;;  %v2160_v13 = vadd.f32 %v6480_v58, %v2145_v59  ;;  %v2240_v30 = vpack.c.bf16 %v6496_v17, %v2232_v21  ;;  %v5618_v50 = vld [vmem:[%s6999_s5 + $0x80] sm:$0xff]   ;;  %v5621_v21 = vld [vmem:[%s6999_s5 + $0xf8] sm:$0xff]  }
 0x261   : > { %v2220_v38 = vpack.c.bf16 %v2213_v26, %v2212_v35  ;;  %v6528_v24 = vld [vmem:[#allocation3 + $0x68] sm:$0xff]  ;;  %v5619_v2 = vld [vmem:[%s6999_s5 + $0xa0] sm:$0xff]   ;;  %v5622_v59 = vld [vmem:[%s6999_s5 + $0xd0] sm:$0xff]  }
 0x262   : > { %2211 = vst.msk [vmem:[#allocation3 + $0xc8] sm:$0xff] %vm2171_vm2, %v2170_v28  ;;  %v2168_v8 = vmax.f32 %v2160_v13, 0.0  ;;  %5233 = vmatprep.mubr.msk.bf16.mxu1 %vm2171_vm2, %v2240_v30  ;;  %v2216_v54 = vld [vmem:[#allocation3 + $0x67] sm:$0xff]  ;;  %v2724_v35 = vpack.c.bf16 %v6528_v24, %v6504_v42  ;;  %v5624_v13 = vld [vmem:[%s6999_s5 + $0xc8] sm:$0xff]  }
 0x263   : > { %5249 = vmatprep.mubr.msk.bf16.mxu0 %vm2171_vm2, %v2220_v38  ;;  %v6506_v7 = vld [vmem:[#allocation3 + $0x38] sm:$0xff]  ;;  %v6552_v60 = vld [vmem:[#allocation3 + $0x21] sm:$0xff]  ;;  %v2459_v0 = vld [vmem:[#allocation3 + $0x69] sm:$0xff]  ;;  %v2594_v16 = vpack.c.bf16 %v2216_v54, %v6508_v36 }
 0x264   : > { %v2214_v5 = vld [vmem:[#allocation3 + $0x37] sm:$0xff]  ;;  %2209 = vst.msk [vmem:[#allocation3 + $0x98] sm:$0xff] %vm2171_vm2, %v2168_v8  ;;  %v6513_v58 = vpack.c.bf16 %v6504_v42, %v6506_v7  ;;  %v2463_v18 = vpack.c.bf16 %v6552_v60, %v2455_v61  ;;  %v2723_v40 = vpack.c.bf16 %v6506_v7, %v6496_v17  ;;  %v2854_v20 = vpack.c.bf16 %v2459_v0, %v2458_v51  ;;  %v5636_v61 = vld [vmem:[%s7001_s7 + $0x18] sm:$0xff]  }
 0x265   : > { %v6516_v15 = vpack.c.bf16 %v6508_v36, %v2214_v5  ;;  %v2219_v39 = vld [vmem:[#allocation3 + $0xaf] sm:$0xff]  ;;  %v2593_v41 = vpack.c.bf16 %v2214_v5, %v2213_v26  ;;  %v2457_v49 = vld [vmem:[#allocation3 + $0x39] sm:$0xff] }
 0x266   : > { %5234 = vmatmul.mubr.msk.bf16.vlgmr.msra.gmra.mxu1 %vm2171_vm2, %v6513_v58  ;;  %v6581_v56 = vpack.c.bf16 %v2458_v51, %v2457_v49  ;;  %v2462_v29 = vld [vmem:[#allocation3 + $0xb1] sm:$0xff]  ;;  %v2853_v22 = vpack.c.bf16 %v2457_v49, %v6552_v60  ;;  %v5623_v26 = vld [vmem:[%s6999_s5 + $0xf0] sm:$0xff]   ;;  %v5628_v36 = vld [vmem:[%s6999_s5 + $0x118] sm:$0xff]  }
 0x267   : > { %5250 = vmatmul.mubr.msk.bf16.vlgmr.msra.gmra.mxu0 %vm2171_vm2, %v6516_v15  ;;  %5258 = vmatpush3.bf16.msra.mxu1 %v6461_v6  ;;  %v6532_v27 = vld [vmem:[#allocation3 + $0x80] sm:$0xff]  ;;  %v5609_v6 = vld [vmem:[%s6999_s5 + $0x68] sm:$0xff]   ;;  %v5626_v7 = vld [vmem:[%s6999_s5 + $0xc0] sm:$0xff]  }
 0x268   : > { %5274 = vmatpush3.bf16.msra.mxu0 %v6466_v55  ;;  %v2217_v37 = vld [vmem:[#allocation3 + $0x7f] sm:$0xff]  ;;  %v6536_v32 = vpack.c.bf16 %v6532_v27, %v6528_v24  ;;  %5259 = vmatprep.subr.bf16.mxu1 %v5606_v34  ;;  %v6550_v55 = vld [vmem:[#allocation3 + $0xb0] sm:$0xff] }
 0x269   : > { %v6538_v48 = vpack.c.bf16 %v2217_v37, %v2216_v54  ;;  %5275 = vmatprep.subr.bf16.mxu0 %v5607_v12  ;;  %v2460_v14 = vld [vmem:[#allocation3 + $0x81] sm:$0xff]  ;;  %v2852_v30 = vld [vmem:[#allocation3 + $0xc9] sm:$0xff]  ;;  %v5625_v38 = vld [vmem:[%s6999_s5 + $0xe8] sm:$0xff]  }
 0x26a   : > { %5237 = vmatprep.mubr.msk.bf16.mxu1 %vm2171_vm2, %v6536_v32  ;;  %v6584_v52 = vpack.c.bf16 %v2460_v14, %v2459_v0  ;;  %v6601_v3 = vld [vmem:[#allocation3 + $0xc7] sm:$0xff]  ;;  %v2856_v42 = vpack.c.bf16 %v2852_v30, %v2462_v29  ;;  %v5627_v5 = vld [vmem:[%s6999_s5 + $0xe0] sm:$0xff]  }
 0x26b   : > { %5253 = vmatprep.mubr.msk.bf16.mxu0 %vm2171_vm2, %v6538_v48  ;;  %5260 = vmatpush3.bf16.msra.mxu1 %v5606_v34  ;;  %v6554_v57 = vld [vmem:[#allocation3 + $0x98] sm:$0xff]  ;;  %v2596_v23 = vpack.c.bf16 %v6601_v3, %v2219_v39  ;;  %v2722_v28 = vld [vmem:[#allocation3 + $0xc8] sm:$0xff]  ;;  %v5629_v34 = vld [vmem:[%s6999_s5 + $0x110] sm:$0xff]  }
 0x26c   : > { %5276 = vmatpush3.bf16.msra.mxu0 %v5607_v12  ;;  %v2218_v1 = vld [vmem:[#allocation3 + $0x97] sm:$0xff]  ;;  %v6558_v45 = vpack.c.bf16 %v6550_v55, %v6554_v57  ;;  %5261 = vmatprep.subr.bf16.mxu1 %v5608_v11  ;;  %v2725_v31 = vpack.c.bf16 %v6554_v57, %v6532_v27  ;;  %v2726_v8 = vpack.c.bf16 %v2722_v28, %v6550_v55  ;;  %v3113_v12 = vld [vmem:[#allocation3 + $0xe0] sm:$0xff] }
 0x26d   : > { %v6560_v19 = vpack.c.bf16 %v2219_v39, %v2218_v1  ;;  %5277 = vmatprep.subr.bf16.mxu0 %v5609_v6  ;;  %v2595_v33 = vpack.c.bf16 %v2218_v1, %v2217_v37  ;;  %v2461_v63 = vld [vmem:[#allocation3 + $0x99] sm:$0xff]  ;;  %v3117_v27 = vpack.c.bf16 %v3113_v12, %v2722_v28  ;;  %v5631_v54 = vld [vmem:[%s6999_s5 + $0x100] sm:$0xff]   ;;  %v3243_v37 = vld [vmem:[#allocation3 + $0xe1] sm:$0xff] }
 0x26e   : > { %5238 = vmatmul.mubr.msk.bf16.gmra.mxu1 %vm2171_vm2, %v6558_v45  ;;  %v6606_v25 = vpack.c.bf16 %v2462_v29, %v2461_v63  ;;  %v2855_v17 = vpack.c.bf16 %v2461_v63, %v2460_v14  ;;  %v5635_v55 = vld [vmem:[%s7001_s7 + $0x20] sm:$0xff]   ;;  %v5637_v60 = vld [vmem:[%s7001_s7 + $0x10] sm:$0xff]   ;;  %v5638_v57 = vld [vmem:[%s7001_s7 + $0x8] sm:$0xff]  }
 0x26f   : > { %5254 = vmatmul.mubr.msk.bf16.gmra.mxu0 %vm2171_vm2, %v6560_v19  ;;  %5262 = vmatpush3.bf16.msra.mxu1 %v5608_v11  ;;  %v5633_v11 = vld [vmem:[%s7001_s7 + $0x30] sm:$0xff]   ;;  %v5639_v1 = vld [vmem:[%s7001_s7] sm:$0xff]  }
 0x270   : > { %5265 = vmatprep.mubr.msk.bf16.mxu1 %vm2171_vm2, %v2463_v18  ;;  %5278 = vmatpush3.bf16.msra.mxu0 %v5609_v6  ;;  %v5634_v6 = vld [vmem:[%s7001_s7 + $0x28] sm:$0xff]  }
 0x271   : > { %5281 = vmatprep.mubr.msk.bf16.mxu0 %vm2171_vm2, %v2593_v41  ;;  %5263 = vmatprep.subr.bf16.mxu1 %v5610_v47 }
 0x272   : > { %5279 = vmatprep.subr.bf16.mxu0 %v5611_v46 }
 0x273   : > { %5264 = vmatpush3.bf16.msra.mxu1 %v5610_v47 }
 0x274   : > { %5280 = vmatpush3.bf16.msra.mxu0 %v5611_v46  ;;  %5289 = vmatprep.subr.bf16.mxu1 %v5612_v44 }
 0x275   : > { %5305 = vmatprep.subr.bf16.mxu0 %v5613_v53 }
 0x276   : > { %5266 = vmatmul.mubr.msk.bf16.vlgmr.msra.gmra.mxu1 %vm2171_vm2, %v6581_v56 }
 0x277   : > { %5282 = vmatmul.mubr.msk.bf16.vlgmr.msra.gmra.mxu0 %vm2171_vm2, %v2594_v16  ;;  %5269 = vmatprep.mubr.msk.bf16.mxu1 %vm2171_vm2, %v6584_v52 }
 0x278   : > { %5285 = vmatprep.mubr.msk.bf16.mxu0 %vm2171_vm2, %v2595_v33  ;;  %5290 = vmatpush3.bf16.msra.mxu1 %v5612_v44 }
 0x279   : > { %5306 = vmatpush3.bf16.msra.mxu0 %v5613_v53  ;;  %5291 = vmatprep.subr.bf16.mxu1 %v5614_v9 }
 0x27a   : > { %5307 = vmatprep.subr.bf16.mxu0 %v5615_v62 }
 0x27c   : > { %5292 = vmatpush3.bf16.msra.mxu1 %v5614_v9 }
 0x27d   : > { %5308 = vmatpush3.bf16.msra.mxu0 %v5615_v62  ;;  %5293 = vmatprep.subr.bf16.mxu1 %v5616_v43 }
 0x27e   : > { %5270 = vmatmul.mubr.msk.bf16.gmra.mxu1 %vm2171_vm2, %v6606_v25  ;;  %5309 = vmatprep.subr.bf16.mxu0 %v5617_v4 }
 0x27f   : > { %5286 = vmatmul.mubr.msk.bf16.gmra.mxu0 %vm2171_vm2, %v2596_v23  ;;  %5297 = vmatprep.mubr.msk.bf16.mxu1 %vm2171_vm2, %v2723_v40 }
 0x280   : > { %5294 = vmatpush3.bf16.msra.mxu1 %v5616_v43  ;;  %5313 = vmatprep.mubr.msk.bf16.mxu0 %vm2171_vm2, %v2853_v22 }
 0x281   : > { %5310 = vmatpush3.bf16.msra.mxu0 %v5617_v4  ;;  %5295 = vmatprep.subr.bf16.mxu1 %v5618_v50 }
 0x282   : > { %5311 = vmatprep.subr.bf16.mxu0 %v5619_v2 }
 0x284   : > { %5296 = vmatpush3.bf16.msra.mxu1 %v5618_v50 }
 0x285   : > { %5312 = vmatpush3.bf16.msra.mxu0 %v5619_v2  ;;  %5321 = vmatprep.subr.bf16.mxu1 %v5620_v10 }
 0x286   : > { %5337 = vmatprep.subr.bf16.mxu0 %v5621_v21 }
 0x287   : > { %5298 = vmatmul.mubr.msk.bf16.vlgmr.msra.gmra.mxu1 %vm2171_vm2, %v2724_v35 }
 0x288   : > { %5314 = vmatmul.mubr.msk.bf16.vlgmr.msra.gmra.mxu0 %vm2171_vm2, %v2854_v20  ;;  %5301 = vmatprep.mubr.msk.bf16.mxu1 %vm2171_vm2, %v2725_v31 }
 0x289   : > { %5317 = vmatprep.mubr.msk.bf16.mxu0 %vm2171_vm2, %v2855_v17  ;;  %5322 = vmatpush3.bf16.msra.mxu1 %v5620_v10 }
 0x28a   : > { %5338 = vmatpush3.bf16.msra.mxu0 %v5621_v21  ;;  %5323 = vmatprep.subr.bf16.mxu1 %v5622_v59 }
 0x28b   : > { %5339 = vmatprep.subr.bf16.mxu0 %v5623_v26 }
 0x28d   : > { %5324 = vmatpush3.bf16.msra.mxu1 %v5622_v59 }
 0x28e   : > { %5340 = vmatpush3.bf16.msra.mxu0 %v5623_v26  ;;  %5325 = vmatprep.subr.bf16.mxu1 %v5624_v13 }
 0x28f   : > { %5302 = vmatmul.mubr.msk.bf16.gmra.mxu1 %vm2171_vm2, %v2726_v8  ;;  %5341 = vmatprep.subr.bf16.mxu0 %v5625_v38 }
 0x290   : > { %5318 = vmatmul.mubr.msk.bf16.gmra.mxu0 %vm2171_vm2, %v2856_v42  ;;  %5329 = vmatprep.mubr.msk.bf16.mxu1 %vm2171_vm2, %v6516_v15  ;;  %v5630_v15 = vld [vmem:[%s6999_s5 + $0x108] sm:$0xff]  }
 0x291   : > { %5326 = vmatpush3.bf16.msra.mxu1 %v5624_v13  ;;  %5345 = vmatprep.mubr.msk.bf16.mxu0 %vm2171_vm2, %v6513_v58  ;;  %v2983_v58 = vld [vmem:[#allocation3 + $0xdf] sm:$0xff] }
 0x292   : > { %5342 = vmatpush3.bf16.msra.mxu0 %v5625_v38  ;;  %5327 = vmatprep.subr.bf16.mxu1 %v5626_v7  ;;  %v2987_v24 = vpack.c.bf16 %v2983_v58, %v6601_v3 }
 0x293   : > { %5343 = vmatprep.subr.bf16.mxu0 %v5627_v5 }
 0x295   : > { %5328 = vmatpush3.bf16.msra.mxu1 %v5626_v7 }
 0x296   : > { %5344 = vmatpush3.bf16.msra.mxu0 %v5627_v5  ;;  %5353 = vmatprep.subr.bf16.mxu1 %v5628_v36 }
 0x298   : > { %5330 = vmatmul.mubr.msk.bf16.vlgmr.msra.gmra.mxu1 %vm2171_vm2, %v6538_v48  ;;  %v5632_v48 = vld [vmem:[%s7001_s7 + $0x38] sm:$0xff]  }
 0x299   : > { %5346 = vmatmul.mubr.msk.bf16.vlgmr.msra.gmra.mxu0 %vm2171_vm2, %v6536_v32  ;;  %5333 = vmatprep.mubr.msk.bf16.mxu1 %vm2171_vm2, %v6560_v19  ;;  %v3247_v32 = vpack.c.bf16 %v3243_v37, %v2852_v30 }
 0x29a   : > { %5349 = vmatprep.mubr.msk.bf16.mxu0 %vm2171_vm2, %v6558_v45  ;;  %5354 = vmatpush3.bf16.msra.mxu1 %v5628_v36 }
 0x29b   : > { %5355 = vmatprep.subr.bf16.mxu1 %v5629_v34  ;;  %5369 = vmatprep.subr.bf16.mxu0 %v5632_v48 }
 0x29c   : > { %5370 = vmatpush3.bf16.msra.mxu0 %v5632_v48 }
 0x29d   : > { %5371 = vmatprep.subr.bf16.mxu0 %v5633_v11 }
 0x29e   : > { %5356 = vmatpush3.bf16.msra.mxu1 %v5629_v34 }
 0x29f   : > { %5357 = vmatprep.subr.bf16.mxu1 %v5630_v15 }
 0x2a0   : > { %5334 = vmatmul.mubr.msk.bf16.gmra.mxu1 %vm2171_vm2, %v2987_v24  ;;  %5372 = vmatpush3.bf16.msra.mxu0 %v5633_v11 }
 0x2a1   : > { %5350 = vmatmul.mubr.msk.bf16.gmra.mxu0 %vm2171_vm2, %v3117_v27  ;;  %5361 = vmatprep.mubr.msk.bf16.mxu1 %vm2171_vm2, %v6581_v56 }
 0x2a2   : > { %5358 = vmatpush3.bf16.msra.mxu1 %v5630_v15  ;;  %5373 = vmatprep.subr.bf16.mxu0 %v5634_v6 }
 0x2a3   : > { %5359 = vmatprep.subr.bf16.mxu1 %v5631_v54 }
 0x2a4   : > { %5374 = vmatpush3.bf16.msra.mxu0 %v5634_v6 }
 0x2a5   : > { %5375 = vmatprep.subr.bf16.mxu0 %v5635_v55 }
 0x2a6   : > { %5360 = vmatpush3.bf16.msra.mxu1 %v5631_v54 }
 0x2a8   : > { %5376 = vmatpush3.bf16.msra.mxu0 %v5635_v55 }
 0x2a9   : > { %5362 = vmatmul.mubr.msk.bf16.vlgmr.msra.gmra.mxu1 %vm2171_vm2, %v6584_v52  ;;  %5377 = vmatprep.subr.bf16.mxu0 %v5636_v61 }
 0x2aa   : > { %5365 = vmatprep.mubr.msk.bf16.mxu1 %vm2171_vm2, %v6606_v25 }
 0x2ac   : > { %5378 = vmatpush3.bf16.msra.mxu0 %v5636_v61 }
 0x2ad   : > { %5379 = vmatprep.subr.bf16.mxu0 %v5637_v60 }
 0x2b0   : > { %5380 = vmatpush3.bf16.msra.mxu0 %v5637_v60 }
 0x2b1   : > { %5366 = vmatmul.mubr.msk.bf16.gmra.mxu1 %vm2171_vm2, %v3247_v32  ;;  %5381 = vmatprep.subr.bf16.mxu0 %v5638_v57 }
 0x2b4   : > { %5382 = vmatpush3.bf16.msra.mxu0 %v5638_v57 }
 0x2b5   : > { %5383 = vmatprep.subr.bf16.mxu0 %v5639_v1 }
 0x2b8   : > { %5384 = vmatpush3.bf16.msra.mxu0 %v5639_v1 }
 0x326   : > { %v5235_v39 = vpop.f32.mrf.mxu1 }
 0x327   : > { %v5251_v45 = vpop.f32.mrf.mxu0 }
 0x328   : > { %v2323_v19 = vpop.f32.mrf.mxu1  ;;  %v2433_v12 = vadd.f32 %v5251_v45, %v5235_v39 }
 0x329   : > { %v2424_v18 = vpop.f32.mrf.mxu0 }
 0x32a   : > { %v5236_v47 = vpop.f32.mrf.mxu1  ;;  %v2425_v58 = vadd.f32 %v2424_v18, %v2323_v19 }
 0x32b   : > { %v5252_v46 = vpop.f32.mrf.mxu0 }
 0x32c   : > { %v2326_v41 = vpop.f32.mrf.mxu1  ;;  %v2436_v27 = vadd.f32 %v5252_v46, %v5236_v47 }
 0x32d   : > { %v2427_v44 = vpop.f32.mrf.mxu0 }
 0x32e   : > { %v5239_v49 = vpop.f32.mrf.mxu1  ;;  %v2428_v48 = vadd.f32 %v2427_v44, %v2326_v41 }
 0x32f   : > { %v5255_v53 = vpop.f32.mrf.mxu0 }
 0x330   : > { %v2339_v14 = vpop.f32.mrf.mxu1  ;;  %v2449_v19 = vadd.f32 %v5255_v53, %v5239_v49 }
 0x331   : > { %v2440_v51 = vpop.f32.mrf.mxu0 }
 0x332   : > { %v5240_v56 = vpop.f32.mrf.mxu1 }
 0x333   : > { %v5256_v0 = vpop.f32.mrf.mxu0 }
 0x334   : > { %v2342_v16 = vpop.f32.mrf.mxu1  ;;  %v2452_v45 = vadd.f32 %v5256_v0, %v5240_v56 }
 0x335   : > { %v2443_v52 = vpop.f32.mrf.mxu0 }
 0x336   : > { %v5267_v9 = vpop.f32.mrf.mxu1  ;;  %v2444_v41 = vadd.f32 %v2443_v52, %v2342_v16 }
 0x337   : > { %v5283_v33 = vpop.f32.mrf.mxu0  ;;  %v2579_v32 = vadd.f32 %v5267_v9, %v2433_v12 }
 0x338   : > { %v2546_v62 = vpop.f32.mrf.mxu1 }
 0x339   : > { %v2676_v63 = vpop.f32.mrf.mxu0  ;;  %v2577_v54 = vadd.f32 %v2546_v62, %v2425_v58  ;;  %v2709_v1 = vadd.f32 %v5283_v33, %v2579_v32 }
 0x33a   : > { %v5268_v43 = vpop.f32.mrf.mxu1 }
 0x33b   : > { %v5284_v3 = vpop.f32.mrf.mxu0  ;;  %v2580_v11 = vadd.f32 %v5268_v43, %v2436_v27  ;;  %v2707_v61 = vadd.f32 %v2676_v63, %v2577_v54 }
 0x33c   : > { %v2549_v4 = vpop.f32.mrf.mxu1 }
 0x33d   : > { %v2679_v29 = vpop.f32.mrf.mxu0  ;;  %v2578_v60 = vadd.f32 %v2549_v4, %v2428_v48 }
 0x33e   : > { %v5271_v25 = vpop.f32.mrf.mxu1 }
 0x33f   : > { %v6716_v23 = vpop.f32.mrf.mxu0  ;;  %v2708_v47 = vadd.f32 %v2679_v29, %v2578_v60  ;;  %v2583_v44 = vadd.f32 %v5271_v25, %v2449_v19 }
 0x340   : > { %v2562_v40 = vpop.f32.mrf.mxu1 }
 0x341   : > { %v2692_v50 = vpop.f32.mrf.mxu0  ;;  %v2713_v53 = vadd.f32 %v6716_v23, %v2583_v44 }
 0x342   : > { %v5272_v22 = vpop.f32.mrf.mxu1 }
 0x343   : > { %v5288_v2 = vpop.f32.mrf.mxu0  ;;  %v2584_v43 = vadd.f32 %v5272_v22, %v2452_v45 }
 0x344   : > { %v2565_v10 = vpop.f32.mrf.mxu1 }
 0x345   : > { %v6718_v21 = vpop.f32.mrf.mxu0  ;;  %v2582_v12 = vadd.f32 %v2565_v10, %v2444_v41  ;;  %v2714_v0 = vadd.f32 %v5288_v2, %v2584_v43 }
 0x346   : > { %7020 = vst [vmem:[#allocation5_spill] sm:$0xff] %v6718_v21 }
 0x347   : > { %v5299_v35 = vpop.f32.mrf.mxu1 }
 0x348   : > { %v5315_v20 = vpop.f32.mrf.mxu0  ;;  %v2839_v18 = vadd.f32 %v5299_v35, %v2709_v1 }
 0x349   : > { %v2806_v31 = vpop.f32.mrf.mxu1 }
 0x34a   : > { %v2936_v59 = vpop.f32.mrf.mxu0  ;;  %v2837_v21 = vadd.f32 %v2806_v31, %v2707_v61  ;;  %v2969_v33 = vadd.f32 %v5315_v20, %v2839_v18 }
 0x34b   : > { %v5300_v17 = vpop.f32.mrf.mxu1 }
 0x34c   : > { %v5316_v26 = vpop.f32.mrf.mxu0  ;;  %v2967_v58 = vadd.f32 %v2936_v59, %v2837_v21 }
 0x34d   : > { %v2809_v28 = vpop.f32.mrf.mxu1  ;;  %v7024_v16 = vld [vmem:[#allocation5_spill] sm:$0xff] }
 0x34e   : > { %v2939_v13 = vpop.f32.mrf.mxu0  ;;  %v2838_v63 = vadd.f32 %v2809_v28, %v2708_v47  ;;  %v2712_v52 = vadd.f32 %v7024_v16, %v2582_v12 }
 0x34f   : > { %v5303_v30 = vpop.f32.mrf.mxu1 }
 0x350   : > { %v6720_v38 = vpop.f32.mrf.mxu0  ;;  %v2968_v29 = vadd.f32 %v2939_v13, %v2838_v63  ;;  %v2843_v25 = vadd.f32 %v5303_v30, %v2713_v53 }
 0x351   : > { %7021 = vst [vmem:[#allocation6_spill] sm:$0xff] %v6720_v38  ;;  %v2822_v8 = vpop.f32.mrf.mxu1  ;;  %v2710_v38 = vadd.f32 %v5284_v3, %v2580_v11 }
 0x352   : > { %v2952_v42 = vpop.f32.mrf.mxu0 }
 0x353   : > { %v5304_v7 = vpop.f32.mrf.mxu1  ;;  %v2840_v62 = vadd.f32 %v5300_v17, %v2710_v38 }
 0x354   : > { %v6722_v5 = vpop.f32.mrf.mxu0  ;;  %v2844_v59 = vadd.f32 %v5304_v7, %v2714_v0  ;;  %v4816_v7 = vld [vmem:[%s7000_s6] ss:$0 sm:$0xff] }
 0x355   : > { %7022 = vst [vmem:[#allocation7_spill] sm:$0xff] %v6722_v5  ;;  %v2825_v36 = vpop.f32.mrf.mxu1  ;;  %v2441_v5 = vadd.f32 %v2440_v51, %v2339_v14  ;;  %v2970_v3 = vadd.f32 %v5316_v26, %v2840_v62 }
 0x356   : > { %v6724_v34 = vpop.f32.mrf.mxu0  ;;  %v2842_v17 = vadd.f32 %v2825_v36, %v2712_v52 }
 0x357   : > { %7023 = vst [vmem:[#allocation8_spill] sm:$0xff] %v6724_v34  ;;  %v2581_v46 = vadd.f32 %v2562_v40, %v2441_v5 }
 0x358   : > { %v5331_v15 = vpop.f32.mrf.mxu1  ;;  %v7025_v23 = vld [vmem:[#allocation6_spill] sm:$0xff] }
 0x359   : > { %v5347_v24 = vpop.f32.mrf.mxu0  ;;  %v2711_v51 = vadd.f32 %v2692_v50, %v2581_v46  ;;  %v3100_v56 = vadd.f32 %v5331_v15, %v2969_v33  ;;  %v2973_v15 = vadd.f32 %v7025_v23, %v2843_v25 }
 0x35a   : > { %v3067_v37 = vpop.f32.mrf.mxu1 }
 0x35b   : > { %v3197_v55 = vpop.f32.mrf.mxu0  ;;  %v3098_v31 = vadd.f32 %v3067_v37, %v2967_v58  ;;  %v2841_v40 = vadd.f32 %v2822_v8, %v2711_v51  ;;  %v3230_v50 = vadd.f32 %v5347_v24, %v3100_v56 }
 0x35c   : > { %v5332_v6 = vpop.f32.mrf.mxu1  ;;  %v7026_v27 = vld [vmem:[#allocation7_spill] sm:$0xff] }
 0x35d   : > { %v5348_v39 = vpop.f32.mrf.mxu0  ;;  %v3101_v35 = vadd.f32 %v5332_v6, %v2970_v3  ;;  %v3228_v10 = vadd.f32 %v3197_v55, %v3098_v31  ;;  %v2971_v28 = vadd.f32 %v2952_v42, %v2841_v40  ;;  %v2974_v54 = vadd.f32 %v7026_v27, %v2844_v59 }
 0x35e   : > { %v3070_v57 = vpop.f32.mrf.mxu1  ;;  %v7027_v36 = vld [vmem:[#allocation8_spill] sm:$0xff] }
 0x35f   : > { %v3200_v14 = vpop.f32.mrf.mxu0  ;;  %v3099_v20 = vadd.f32 %v3070_v57, %v2968_v29  ;;  %v3231_v38 = vadd.f32 %v5348_v39, %v3101_v35  ;;  %v2972_v24 = vadd.f32 %v7027_v36, %v2842_v17 }
 0x360   : > { %v5335_v34 = vpop.f32.mrf.mxu1 }
 0x361   : > { %v5351_v22 = vpop.f32.mrf.mxu0  ;;  %v3229_v37 = vadd.f32 %v3200_v14, %v3099_v20  ;;  %v3104_v48 = vadd.f32 %v5335_v34, %v2973_v15  ;;  %v4817_v20 = vld [vmem:[%s7002_s8] ss:$0 sm:$0xff] }
 0x362   : > { %v3083_v9 = vpop.f32.mrf.mxu1 }
 0x363   : > { %v3213_v2 = vpop.f32.mrf.mxu0  ;;  %v3102_v30 = vadd.f32 %v3083_v9, %v2971_v28  ;;  %v3234_v45 = vadd.f32 %v5351_v22, %v3104_v48 }
 0x364   : > { %v5336_v4 = vpop.f32.mrf.mxu1 }
 0x365   : > { %v3105_v11 = vadd.f32 %v5336_v4, %v2974_v54  ;;  %v5352_v60 = vpop.f32.mrf.mxu0  ;;  %v3232_v19 = vadd.f32 %v3213_v2, %v3102_v30 }
 0x366   : > { %v3086_v49 = vpop.f32.mrf.mxu1 }
 0x367   : > { %v3103_v18 = vadd.f32 %v3086_v49, %v2972_v24  ;;  %v3235_v62 = vadd.f32 %v5352_v60, %v3105_v11  ;;  %v3216_v43 = vpop.f32.mrf.mxu0  ;;  %v5642_v11 = vld [vmem:[%s7003_s9 + $0x40] sm:$0xff]   ;;  %v5641_v60 = vld [vmem:[%s7003_s9 + $0x8] sm:$0xff]  }
 0x369   : > { %v5363_v21 = vpop.f32.mrf.mxu1  ;;  %v3233_v4 = vadd.f32 %v3216_v43, %v3103_v18  ;;  %v5647_v43 = vld [vmem:[%s7005_s11 + $0x30] sm:$0xff]  }
 0x36a   : > { %v3360_v13 = vadd.f32 %v5363_v21, %v3230_v50 }
 0x36b   : > { %v3327_v26 = vpop.f32.mrf.mxu1 }
 0x36c   : > { %v3358_v5 = vadd.f32 %v3327_v26, %v3228_v10  ;;  %v3375_v57 = vadd.f32 %v4816_v7, %v3360_v13  ;;  %v5640_v26 = vld [vmem:[%s7003_s9] sm:$0xff]  }
 0x36d   : > { %v5364_v8 = vpop.f32.mrf.mxu1  ;;  %5401 = vmatprep.mubr.msk.bf16.mxu1 %vm2171_vm2, %v5640_v26 }
 0x36e   : > { %v3361_v32 = vadd.f32 %v5364_v8, %v3231_v38  ;;  %v3373_v6 = vadd.f32 %v4816_v7, %v3358_v5  ;;  %v3383_v34 = vmax.f32 %v3375_v57, 0.0  ;;  %v5643_v57 = vld [vmem:[%s7003_s9 + $0x10] sm:$0xff]  }
 0x36f   : > { %v3330_v42 = vpop.f32.mrf.mxu1 }
 0x370   : > { %v3376_v55 = vadd.f32 %v4816_v7, %v3361_v32  ;;  %v3359_v61 = vadd.f32 %v3330_v42, %v3229_v37  ;;  %v3381_v9 = vmax.f32 %v3373_v6, 0.0 }
 0x371   : > { %v5367_v1 = vpop.f32.mrf.mxu1 }
 0x372   : > { %v3374_v39 = vadd.f32 %v4816_v7, %v3359_v61  ;;  %v3384_v47 = vmax.f32 %v3376_v55, 0.0  ;;  %v3364_v58 = vadd.f32 %v5367_v1, %v3234_v45  ;;  %v5644_v1 = vld [vmem:[%s7003_s9 + $0x18] sm:$0xff]  }
 0x373   : > { %v3343_v46 = vpop.f32.mrf.mxu1 }
 0x374   : > { %v3382_v41 = vmax.f32 %v3374_v39, 0.0  ;;  %v3362_v44 = vadd.f32 %v3343_v46, %v3232_v19  ;;  %v6736_v14 = vpack.c.bf16 %v3384_v47, %v3383_v34  ;;  %v3379_v53 = vadd.f32 %v4816_v7, %v3364_v58  ;;  %v5648_v19 = vld [vmem:[%s7003_s9 + $0x20] sm:$0xff]   ;;  %v5649_v34 = vld [vmem:[%s7003_s9 + $0x50] sm:$0xff]  }
 0x375   : > { %v5368_v63 = vpop.f32.mrf.mxu1 }
 0x376   : > { %v3365_v12 = vadd.f32 %v5368_v63, %v3235_v62  ;;  %v6734_v33 = vpack.c.bf16 %v3382_v41, %v3381_v9  ;;  %v3377_v3 = vadd.f32 %v4816_v7, %v3362_v44  ;;  %v3387_v35 = vmax.f32 %v3379_v53, 0.0  ;;  %v5646_v9 = vld [vmem:[%s7005_s11 + $0x38] sm:$0xff]   ;;  %v5645_v41 = vld [vmem:[%s7003_s9 + $0x48] sm:$0xff]  }
 0x377   : > { %v3346_v51 = vpop.f32.mrf.mxu1  ;;  %v5652_v63 = vld [vmem:[%s7005_s11 + $0x28] sm:$0xff]   ;;  %v5656_v53 = vld [vmem:[%s7005_s11 + $0x18] sm:$0xff]  }
 0x378   : > { %v3380_v31 = vadd.f32 %v4816_v7, %v3365_v12  ;;  %v3363_v49 = vadd.f32 %v3346_v51, %v3233_v4  ;;  %5385 = vmatprep.mubr.bf16.mxu0 %v6734_v33  ;;  %v3385_v29 = vmax.f32 %v3377_v3, 0.0  ;;  %v5650_v4 = vld [vmem:[%s7003_s9 + $0x28] sm:$0xff]   ;;  %v5651_v12 = vld [vmem:[%s7003_s9 + $0x58] sm:$0xff]   ;;  %v5653_v3 = vld [vmem:[%s7005_s11 + $0x20] sm:$0xff]  }
 0x379   : > { %5386 = vmatmul.mubr.bf16.vlgmr.msra.gmra.mxu0 %v6736_v14 }
 0x37a   : > { %v3378_v56 = vadd.f32 %v4816_v7, %v3363_v49  ;;  %v3388_v0 = vmax.f32 %v3380_v31, 0.0  ;;  %v5654_v31 = vld [vmem:[%s7003_s9 + $0x30] sm:$0xff]  }
 0x37c   : > { %v3386_v40 = vmax.f32 %v3378_v56, 0.0  ;;  %v6742_v52 = vpack.c.bf16 %v3388_v0, %v3387_v35  ;;  %v5655_v56 = vld [vmem:[%s7003_s9 + $0x38] sm:$0xff]   ;;  %v5660_v35 = vld [vmem:[%s7005_s11 + $0x8] sm:$0xff]  }
 0x37e   : > { %v6740_v16 = vpack.c.bf16 %v3386_v40, %v3385_v29  ;;  %v5658_v29 = vld [vmem:[%s7003_s9 + $0x60] sm:$0xff]  }
 0x380   : > { %5389 = vmatprep.mubr.bf16.mxu0 %v6740_v16 }
 0x381   : > { %5390 = vmatmul.mubr.bf16.gmra.mxu0 %v6742_v52 }
 0x382   : > { %5433 = vmatprep.mubr.msk.bf16.mxu0 %vm2171_vm2, %v5642_v11 }
 0x439   : > { %v5387_v25 = vpop.f32.mrf.mxu0 }
 0x43a   : > { %v3507_v15 = vadd.f32 %v5387_v25, %v4817_v20  ;;  %v5659_v25 = vld [vmem:[%s7003_s9 + $0x68] sm:$0xff]  }
 0x43b   : > { %v3498_v22 = vpop.f32.mrf.mxu0 }
 0x43c   : > { %v3499_v37 = vadd.f32 %v4817_v20, %v3498_v22  ;;  %v3531_v24 = vmax.f32 %v3507_v15, 0.0  ;;  %v5662_v22 = vld [vmem:[%s7003_s9 + $0x70] sm:$0xff]  }
 0x43d   : > { %v5388_v21 = vpop.f32.mrf.mxu0 }
 0x43e   : > { %v3510_v38 = vadd.f32 %v5388_v21, %v4817_v20  ;;  %v3529_v6 = vmax.f32 %v3499_v37, 0.0  ;;  %v5661_v21 = vld [vmem:[%s7005_s11] sm:$0xff]  }
 0x43f   : > { %v3501_v59 = vpop.f32.mrf.mxu0 }
 0x440   : > { %v3502_v13 = vadd.f32 %v4817_v20, %v3501_v59  ;;  %v3532_v30 = vmax.f32 %v3510_v38, 0.0  ;;  %v5663_v59 = vld [vmem:[%s7003_s9 + $0x78] sm:$0xff]  }
 0x441   : > { %v5391_v10 = vpop.f32.mrf.mxu0 }
 0x442   : > { %v3523_v50 = vadd.f32 %v5391_v10, %v4817_v20  ;;  %v3530_v48 = vmax.f32 %v3502_v13, 0.0  ;;  %v3554_v55 = vpack.c.bf16 %v3532_v30, %v3531_v24  ;;  %v5664_v10 = vld [vmem:[%s7007_s13] sm:$0xff]   ;;  %v3540_v30 = vld [vmem:[%s7004_s10 + $0x18] sm:$0xff]  ;;  %v3538_v24 = vld [vmem:[%s7004_s10 + $0x8] sm:$0xff] }
 0x443   : > { %v3514_v17 = vpop.f32.mrf.mxu0 }
 0x444   : > { %v3515_v5 = vadd.f32 %v4817_v20, %v3514_v17  ;;  %v3535_v8 = vmax.f32 %v3523_v50, 0.0  ;;  %v3553_v61 = vpack.c.bf16 %v3530_v48, %v3529_v6 }
 0x445   : > { %v5392_v28 = vpop.f32.mrf.mxu0 }
 0x446   : > { %v3526_v23 = vadd.f32 %v5392_v28, %v4817_v20  ;;  %v3533_v7 = vmax.f32 %v3515_v5, 0.0 }
 0x447   : > { %v3517_v2 = vpop.f32.mrf.mxu0 }
 0x448   : > { %v3536_v27 = vmax.f32 %v3526_v23, 0.0  ;;  %v3518_v54 = vadd.f32 %v4817_v20, %v3517_v2 }
 0x44a   : > { %v3556_v32 = vpack.c.bf16 %v3536_v27, %v3535_v8  ;;  %v3534_v36 = vmax.f32 %v3518_v54, 0.0  ;;  %v3537_v27 = vld [vmem:[%s7004_s10] sm:$0xff] }
 0x44c   : > { %v3555_v42 = vpack.c.bf16 %v3534_v36, %v3533_v7  ;;  %3827 = vrot.lane.b32.xlu0 %v3556_v32, %s5692_s27  ;;  %5393 = vmatprep.subr.bf16.mxu1 %v3556_v32 }
 0x44d   : > { %5394 = vmatpush3.bf16.msra.mxu1 %v3556_v32 }
 0x44e   : > { %3825 = vrot.lane.b32.xlu1 %v3555_v42, %s5692_s27  ;;  %5395 = vmatprep.subr.bf16.mxu1 %v3555_v42 }
 0x450   : > { %3823 = vrot.lane.b32.xlu0 %v3554_v55, %s5692_s27 }
 0x451   : > { %5396 = vmatpush3.bf16.msra.mxu1 %v3555_v42 }
 0x452   : > { %3821 = vrot.lane.b32.xlu1 %v3553_v61, %s5692_s27  ;;  %5397 = vmatprep.subr.bf16.mxu1 %v3554_v55  ;;  %s6875_s27 = scalar_lea.vmem %s7011_s17, %s4917_s16 }
 0x454   : > { %3701 = vrot.lane.b32.xlu0 %v3556_v32, %s5693_s1 }
 0x455   : > { %5398 = vmatpush3.bf16.msra.mxu1 %v3554_v55 }
 0x456   : > { %3699 = vrot.lane.b32.xlu1 %v3555_v42, %s5693_s1  ;;  %5399 = vmatprep.subr.bf16.mxu1 %v3553_v61 }
 0x458   : > { %3697 = vrot.lane.b32.xlu0 %v3554_v55, %s5693_s1 }
 0x459   : > { %5400 = vmatpush3.bf16.msra.mxu1 %v3553_v61 }
 0x45a   : > { %3695 = vrot.lane.b32.xlu1 %v3553_v61, %s5693_s1 }
 0x45c   : > { %3953 = vrot.lane.b32.xlu0 %v3556_v32, %s5694_s23  ;;  %5402 = vmatmul.mubr.msk.bf16.vlgmr.msra.gmra.mxu1 %vm2171_vm2, %v5641_v60 }
 0x45d   : > { %5405 = vmatprep.mubr.msk.bf16.mxu1 %vm2171_vm2, %v5643_v57 }
 0x45e   : > { %3951 = vrot.lane.b32.xlu1 %v3555_v42, %s5694_s23 }
 0x460   : > { %3949 = vrot.lane.b32.xlu0 %v3554_v55, %s5694_s23  ;;  %v3543_v55 = vld [vmem:[%s7004_s10 + $0x30] sm:$0xff] }
 0x462   : > { %3947 = vrot.lane.b32.xlu1 %v3553_v61, %s5694_s23 }
 0x464   : > { %5406 = vmatmul.mubr.msk.bf16.gmra.mxu1 %vm2171_vm2, %v5644_v1  ;;  %v3541_v1 = vld [vmem:[%s7004_s10 + $0x20] sm:$0xff] }
 0x465   : > { %5417 = vmatprep.mubr.msk.bf16.mxu1 %vm2171_vm2, %v5648_v19 }
 0x4be   : > { %v3828_v18 = vpop.permute.xlu0 %3827 }
 0x4bf   : > { %5425 = vmatprep.subr.bf16.mxu0 %v3828_v18 }
 0x4c0   : > { %5426 = vmatpush3.bf16.msra.mxu0 %v3828_v18  ;;  %v3826_v39 = vpop.permute.xlu1 %3825 }
 0x4c1   : > { %5427 = vmatprep.subr.bf16.mxu0 %v3826_v39 }
 0x4c2   : > { %v3824_v45 = vpop.permute.xlu0 %3823 }
 0x4c4   : > { %5428 = vmatpush3.bf16.msra.mxu0 %v3826_v39  ;;  %v3822_v47 = vpop.permute.xlu1 %3821 }
 0x4c5   : > { %5429 = vmatprep.subr.bf16.mxu0 %v3824_v45 }
 0x4c6   : > { %v3702_v46 = vpop.permute.xlu0 %3701 }
 0x4c7   : > { %5409 = vmatprep.subr.bf16.mxu1 %v3702_v46 }
 0x4c8   : > { %5430 = vmatpush3.bf16.msra.mxu0 %v3824_v45  ;;  %v3700_v62 = vpop.permute.xlu1 %3699  ;;  %5410 = vmatpush3.bf16.msra.mxu1 %v3702_v46  ;;  %v3544_v46 = vld [vmem:[%s7004_s10 + $0x38] sm:$0xff] }
 0x4c9   : > { %5411 = vmatprep.subr.bf16.mxu1 %v3700_v62  ;;  %5431 = vmatprep.subr.bf16.mxu0 %v3822_v47 }
 0x4ca   : > { %v3698_v44 = vpop.permute.xlu0 %3697 }
 0x4cc   : > { %5432 = vmatpush3.bf16.msra.mxu0 %v3822_v47  ;;  %5412 = vmatpush3.bf16.msra.mxu1 %v3700_v62  ;;  %v3696_v58 = vpop.permute.xlu1 %3695 }
 0x4cd   : > { %5413 = vmatprep.subr.bf16.mxu1 %v3698_v44  ;;  %5457 = vmatprep.subr.bf16.mxu0 %v5646_v9 }
 0x4ce   : > { %v3954_v51 = vpop.permute.xlu0 %3953 }
 0x4cf   : > { %5434 = vmatmul.mubr.msk.bf16.vlgmr.msra.gmra.mxu0 %vm2171_vm2, %v5645_v41 }
 0x4d0   : > { %5458 = vmatpush3.bf16.msra.mxu0 %v5646_v9  ;;  %5414 = vmatpush3.bf16.msra.mxu1 %v3698_v44  ;;  %v3952_v49 = vpop.permute.xlu1 %3951 }
 0x4d1   : > { %5415 = vmatprep.subr.bf16.mxu1 %v3696_v58  ;;  %5459 = vmatprep.subr.bf16.mxu0 %v5647_v43 }
 0x4d2   : > { %5437 = vmatprep.mubr.msk.bf16.mxu0 %vm2171_vm2, %v5649_v34  ;;  %v3950_v0 = vpop.permute.xlu0 %3949  ;;  %v3542_v34 = vld [vmem:[%s7004_s10 + $0x28] sm:$0xff] }
 0x4d4   : > { %5460 = vmatpush3.bf16.msra.mxu0 %v5647_v43  ;;  %5416 = vmatpush3.bf16.msra.mxu1 %v3696_v58  ;;  %v3948_v40 = vpop.permute.xlu1 %3947 }
 0x4d5   : > { %5441 = vmatprep.subr.bf16.mxu1 %v3954_v51  ;;  %5461 = vmatprep.subr.bf16.mxu0 %v5652_v63 }
 0x4d7   : > { %5418 = vmatmul.mubr.msk.bf16.vlgmr.msra.gmra.mxu1 %vm2171_vm2, %v5650_v4  ;;  %5438 = vmatmul.mubr.msk.bf16.gmra.mxu0 %vm2171_vm2, %v5651_v12 }
 0x4d8   : > { %5442 = vmatpush3.bf16.msra.mxu1 %v3954_v51  ;;  %5462 = vmatpush3.bf16.msra.mxu0 %v5652_v63 }
 0x4d9   : > { %5473 = vmatprep.mubr.bf16.mxu0 %v6734_v33  ;;  %5443 = vmatprep.subr.bf16.mxu1 %v3952_v49  ;;  %v5657_v33 = vld [vmem:[%s7005_s11 + $0x10] sm:$0xff]  }
 0x4da   : > { %5463 = vmatprep.subr.bf16.mxu0 %v5653_v3  ;;  %5421 = vmatprep.mubr.msk.bf16.mxu1 %vm2171_vm2, %v5654_v31 }
 0x4dc   : > { %5444 = vmatpush3.bf16.msra.mxu1 %v3952_v49  ;;  %5464 = vmatpush3.bf16.msra.mxu0 %v5653_v3 }
 0x4dd   : > { %5445 = vmatprep.subr.bf16.mxu1 %v3950_v0  ;;  %5465 = vmatprep.subr.bf16.mxu0 %v5656_v53 }
 0x4df   : > { %5422 = vmatmul.mubr.msk.bf16.gmra.mxu1 %vm2171_vm2, %v5655_v56 }
 0x4e0   : > { %5446 = vmatpush3.bf16.msra.mxu1 %v3950_v0  ;;  %5466 = vmatpush3.bf16.msra.mxu0 %v5656_v53 }
 0x4e1   : > { %5447 = vmatprep.subr.bf16.mxu1 %v3948_v40  ;;  %5467 = vmatprep.subr.bf16.mxu0 %v5657_v33 }
 0x4e2   : > { %5449 = vmatprep.mubr.msk.bf16.mxu1 %vm2171_vm2, %v5658_v29 }
 0x4e4   : > { %5448 = vmatpush3.bf16.msra.mxu1 %v3948_v40  ;;  %5468 = vmatpush3.bf16.msra.mxu0 %v5657_v33 }
 0x4e5   : > { %5469 = vmatprep.subr.bf16.mxu0 %v5660_v35 }
 0x4e7   : > { %5450 = vmatmul.mubr.msk.bf16.vlgmr.msra.gmra.mxu1 %vm2171_vm2, %v5659_v25 }
 0x4e8   : > { %5470 = vmatpush3.bf16.msra.mxu0 %v5660_v35  ;;  %5453 = vmatprep.mubr.msk.bf16.mxu1 %vm2171_vm2, %v5662_v22 }
 0x4e9   : > { %5471 = vmatprep.subr.bf16.mxu0 %v5661_v21 }
 0x4ec   : > { %5472 = vmatpush3.bf16.msra.mxu0 %v5661_v21 }
 0x4ef   : > { %5454 = vmatmul.mubr.msk.bf16.gmra.mxu1 %vm2171_vm2, %v5663_v59  ;;  %5474 = vmatmul.mubr.bf16.vlgmr.msra.gmra.mxu0 %v6736_v14 }
 0x4f0   : > { %5477 = vmatprep.mubr.bf16.mxu0 %v6740_v16  ;;  %5489 = vmatprep.mubr.msk.bf16.mxu1 %vm2171_vm2, %v5664_v10 }
 0x4f7   : > { %5478 = vmatmul.mubr.bf16.gmra.mxu0 %v6742_v52  ;;  %v3539_v52 = vld [vmem:[%s7004_s10 + $0x10] sm:$0xff] }
 0x51c   : > { %v5403_v20 = vpop.f32.mrf.mxu1 }
 0x51d   : > { %v3656_v37 = vadd.f32 %v5403_v20, %v3539_v52 }
 0x51e   : > { %v3623_v17 = vpop.f32.mrf.mxu1 }
 0x51f   : > { %v3654_v36 = vadd.f32 %v3623_v17, %v3537_v27 }
 0x520   : > { %v5404_v50 = vpop.f32.mrf.mxu1 }
 0x521   : > { %v3657_v11 = vadd.f32 %v5404_v50, %v3540_v30 }
 0x522   : > { %v3626_v26 = vpop.f32.mrf.mxu1 }
 0x523   : > { %v3655_v60 = vadd.f32 %v3626_v26, %v3538_v24 }
 0x524   : > { %v5407_v28 = vpop.f32.mrf.mxu1 }
 0x525   : > { %v3660_v39 = vadd.f32 %v5407_v28, %v3543_v55 }
 0x526   : > { %v3639_v38 = vpop.f32.mrf.mxu1 }
 0x527   : > { %v3658_v9 = vadd.f32 %v3639_v38, %v3541_v1 }
 0x528   : > { %v5408_v5 = vpop.f32.mrf.mxu1 }
 0x529   : > { %v3661_v4 = vadd.f32 %v5408_v5, %v3544_v46  ;;  %v5665_v46 = vld [vmem:[%s7007_s13 + $0x8] sm:$0xff]  }
 0x52a   : > { %v3642_v15 = vpop.f32.mrf.mxu1 }
 0x52b   : > { %v3659_v49 = vadd.f32 %v3642_v15, %v3542_v34 }
 0x58f   : > { %v5435_v23 = vpop.f32.mrf.mxu0 }
 0x591   : > { %v3879_v14 = vpop.f32.mrf.mxu0 }
 0x593   : > { %v5436_v13 = vpop.f32.mrf.mxu0 }
 0x595   : > { %v3882_v7 = vpop.f32.mrf.mxu0 }
 0x597   : > { %v5419_v2 = vpop.f32.mrf.mxu1  ;;  %v5439_v42 = vpop.f32.mrf.mxu0 }
 0x598   : > { %v3786_v6 = vadd.f32 %v5419_v2, %v3656_v37 }
 0x599   : > { %v3753_v16 = vpop.f32.mrf.mxu1  ;;  %v3895_v19 = vpop.f32.mrf.mxu0 }
 0x59a   : > { %v3784_v57 = vadd.f32 %v3753_v16, %v3654_v36  ;;  %v3912_v47 = vadd.f32 %v5435_v23, %v3786_v6 }
 0x59b   : > { %v5420_v8 = vpop.f32.mrf.mxu1  ;;  %v5440_v58 = vpop.f32.mrf.mxu0 }
 0x59c   : > { %v3787_v45 = vadd.f32 %v5420_v8, %v3657_v11  ;;  %v3910_v43 = vadd.f32 %v3879_v14, %v3784_v57 }
 0x59d   : > { %v3756_v54 = vpop.f32.mrf.mxu1  ;;  %v3898_v33 = vpop.f32.mrf.mxu0 }
 0x59e   : > { %v3785_v41 = vadd.f32 %v3756_v54, %v3655_v60  ;;  %v3913_v3 = vadd.f32 %v5436_v13, %v3787_v45  ;;  %v4882_v13 = vld [vmem:[%s7006_s12] ss:$0 sm:$0xff] }
 0x59f   : > { %v5423_v32 = vpop.f32.mrf.mxu1 }
 0x5a0   : > { %v3790_v12 = vadd.f32 %v5423_v32, %v3660_v39  ;;  %v3911_v0 = vadd.f32 %v3882_v7, %v3785_v41  ;;  %v5668_v41 = vld [vmem:[%s7007_s13 + $0x20] sm:$0xff]  }
 0x5a1   : > { %v3769_v48 = vpop.f32.mrf.mxu1 }
 0x5a2   : > { %v3788_v53 = vadd.f32 %v3769_v48, %v3658_v9  ;;  %v3916_v40 = vadd.f32 %v5439_v42, %v3790_v12  ;;  %v5667_v9 = vld [vmem:[%s7007_s13 + $0x18] sm:$0xff]  }
 0x5a3   : > { %v5424_v61 = vpop.f32.mrf.mxu1  ;;  %v5671_v12 = vld [vmem:[%s7007_s13 + $0x38] sm:$0xff]  }
 0x5a4   : > { %v3791_v35 = vadd.f32 %v5424_v61, %v3661_v4  ;;  %v3914_v59 = vadd.f32 %v3895_v19, %v3788_v53  ;;  %v5670_v4 = vld [vmem:[%s7007_s13 + $0x30] sm:$0xff]  }
 0x5a5   : > { %v3772_v18 = vpop.f32.mrf.mxu1 }
 0x5a6   : > { %v3789_v10 = vadd.f32 %v3772_v18, %v3659_v49  ;;  %v3917_v26 = vadd.f32 %v5440_v58, %v3791_v35  ;;  %v4200_v35 = vld [vmem:[%s7008_s14 + $0x18] sm:$0xff] }
 0x5a7   : > { %v5451_v62 = vpop.f32.mrf.mxu1 }
 0x5a8   : > { %v4038_v44 = vadd.f32 %v5451_v62, %v3912_v47  ;;  %v3915_v23 = vadd.f32 %v3898_v33, %v3789_v10  ;;  %v5666_v62 = vld [vmem:[%s7007_s13 + $0x10] sm:$0xff]  }
 0x5a9   : > { %v4005_v63 = vpop.f32.mrf.mxu1  ;;  %v4199_v33 = vld [vmem:[%s7008_s14 + $0x10] sm:$0xff] }
 0x5aa   : > { %4047 = vst.msk [vmem:[%s6875_s27 + $0x10] sm:$0xff] %vm4044_vm4, %v4038_v44  ;;  %v4036_v51 = vadd.f32 %v4005_v63, %v3910_v43  ;;  %v5669_v63 = vld [vmem:[%s7007_s13 + $0x28] sm:$0xff]  }
 0x5ab   : > { %v5452_v31 = vpop.f32.mrf.mxu1 }
 0x5ac   : > { %4045 = vst.msk [vmem:[%s6875_s27] sm:$0xff] %vm4044_vm4, %v4036_v51  ;;  %v4039_v56 = vadd.f32 %v5452_v31, %v3913_v3 }
 0x5ad   : > { %v4008_v29 = vpop.f32.mrf.mxu1 }
 0x5ae   : > { %4048 = vst.msk [vmem:[%s6875_s27 + $0x18] sm:$0xff] %vm4044_vm4, %v4039_v56  ;;  %v4037_v25 = vadd.f32 %v4008_v29, %v3911_v0  ;;  %v4197_v29 = vld [vmem:[%s7008_s14] sm:$0xff] }
 0x5af   : > { %v5455_v22 = vpop.f32.mrf.mxu1  ;;  %v5475_v21 = vpop.f32.mrf.mxu0 }
 0x5b0   : > { %4046 = vst.msk [vmem:[%s6875_s27 + $0x8] sm:$0xff] %vm4044_vm4, %v4037_v25  ;;  %v4042_v20 = vadd.f32 %v5455_v22, %v3916_v40  ;;  %v4167_v32 = vadd.f32 %v5475_v21, %v4882_v13 }
 0x5b1   : > { %v4021_v17 = vpop.f32.mrf.mxu1  ;;  %v4158_v50 = vpop.f32.mrf.mxu0 }
 0x5b2   : > { %4051 = vst.msk [vmem:[%s6875_s27 + $0x30] sm:$0xff] %vm4044_vm4, %v4042_v20  ;;  %v4040_v28 = vadd.f32 %v4021_v17, %v3914_v59  ;;  %v4159_v6 = vadd.f32 %v4882_v13, %v4158_v50  ;;  %v4191_v1 = vmax.f32 %v4167_v32, 0.0  ;;  %v4198_v59 = vld [vmem:[%s7008_s14 + $0x8] sm:$0xff] }
 0x5b3   : > { %v5456_v38 = vpop.f32.mrf.mxu1  ;;  %v5476_v5 = vpop.f32.mrf.mxu0  ;;  %v4202_v32 = vld [vmem:[%s7008_s14 + $0x28] sm:$0xff] }
 0x5b4   : > { %4049 = vst.msk [vmem:[%s6875_s27 + $0x20] sm:$0xff] %vm4044_vm4, %v4040_v28  ;;  %v4043_v15 = vadd.f32 %v5456_v38, %v3917_v26  ;;  %v4170_v37 = vadd.f32 %v5476_v5, %v4882_v13  ;;  %v4189_v39 = vmax.f32 %v4159_v6, 0.0  ;;  %v4460_v5 = vld [vmem:[%s7009_s15] sm:$0xff] }
 0x5b5   : > { %v4024_v14 = vpop.f32.mrf.mxu1  ;;  %v4161_v2 = vpop.f32.mrf.mxu0 }
 0x5b6   : > { %4052 = vst.msk [vmem:[%s6875_s27 + $0x38] sm:$0xff] %vm4044_vm4, %v4043_v15  ;;  %v4041_v16 = vadd.f32 %v4024_v14, %v3915_v23  ;;  %v4162_v24 = vadd.f32 %v4882_v13, %v4161_v2  ;;  %v4192_v55 = vmax.f32 %v4170_v37, 0.0  ;;  %v4203_v15 = vld [vmem:[%s7008_s14 + $0x30] sm:$0xff]  ;;  %v4201_v14 = vld [vmem:[%s7008_s14 + $0x20] sm:$0xff] }
 0x5b7   : > { %v5479_v52 = vpop.f32.mrf.mxu0 }
 0x5b8   : > { %4050 = vst.msk [vmem:[%s6875_s27 + $0x28] sm:$0xff] %vm4044_vm4, %v4041_v16  ;;  %v4183_v27 = vadd.f32 %v5479_v52, %v4882_v13  ;;  %v4190_v19 = vmax.f32 %v4162_v24, 0.0  ;;  %v4214_v45 = vpack.c.bf16 %v4192_v55, %v4191_v1  ;;  %v4204_v16 = vld [vmem:[%s7008_s14 + $0x38] sm:$0xff] }
 0x5b9   : > { %v4174_v8 = vpop.f32.mrf.mxu0 }
 0x5ba   : > { %v4175_v30 = vadd.f32 %v4882_v13, %v4174_v8  ;;  %v4195_v48 = vmax.f32 %v4183_v27, 0.0  ;;  %v4213_v47 = vpack.c.bf16 %v4190_v19, %v4189_v39  ;;  %v4462_v8 = vld [vmem:[%s7009_s15 + $0x10] sm:$0xff]  ;;  %v4464_v19 = vld [vmem:[%s7009_s15 + $0x20] sm:$0xff] }
 0x5bb   : > { %v5480_v54 = vpop.f32.mrf.mxu0 }
 0x5bc   : > { %v4186_v7 = vadd.f32 %v5480_v54, %v4882_v13  ;;  %v4193_v61 = vmax.f32 %v4175_v30, 0.0  ;;  %v4461_v54 = vld [vmem:[%s7009_s15 + $0x8] sm:$0xff] }
 0x5bd   : > { %v4177_v36 = vpop.f32.mrf.mxu0 }
 0x5be   : > { %v4196_v42 = vmax.f32 %v4186_v7, 0.0  ;;  %v4178_v11 = vadd.f32 %v4882_v13, %v4177_v36 }
 0x5c0   : > { %v4216_v60 = vpack.c.bf16 %v4196_v42, %v4195_v48  ;;  %v4194_v57 = vmax.f32 %v4178_v11, 0.0  ;;  %v4463_v42 = vld [vmem:[%s7009_s15 + $0x18] sm:$0xff] }
 0x5c2   : > { %v4215_v18 = vpack.c.bf16 %v4194_v57, %v4193_v61  ;;  %4361 = vrot.lane.b32.xlu0 %v4216_v60, %s5693_s1  ;;  %5481 = vmatprep.subr.bf16.mxu1 %v4216_v60 }
 0x5c3   : > { %5482 = vmatpush3.bf16.msra.mxu1 %v4216_v60 }
 0x5c4   : > { %4359 = vrot.lane.b32.xlu1 %v4215_v18, %s5693_s1  ;;  %5483 = vmatprep.subr.bf16.mxu1 %v4215_v18 }
 0x5c6   : > { %4357 = vrot.lane.b32.xlu0 %v4214_v45, %s5693_s1 }
 0x5c7   : > { %5484 = vmatpush3.bf16.msra.mxu1 %v4215_v18 }
 0x5c8   : > { %4355 = vrot.lane.b32.xlu1 %v4213_v47, %s5693_s1  ;;  %5485 = vmatprep.subr.bf16.mxu1 %v4214_v45 }
 0x5cb   : > { %5486 = vmatpush3.bf16.msra.mxu1 %v4214_v45 }
 0x5cc   : > { %5487 = vmatprep.subr.bf16.mxu1 %v4213_v47 }
 0x5cf   : > { %5488 = vmatpush3.bf16.msra.mxu1 %v4213_v47 }
 0x5d2   : > { %5490 = vmatmul.mubr.msk.bf16.vlgmr.msra.gmra.mxu1 %vm2171_vm2, %v5665_v46 }
 0x5d3   : > { %5493 = vmatprep.mubr.msk.bf16.mxu1 %vm2171_vm2, %v5666_v62 }
 0x5da   : > { %5494 = vmatmul.mubr.msk.bf16.gmra.mxu1 %vm2171_vm2, %v5667_v9 }
 0x5db   : > { %5505 = vmatprep.mubr.msk.bf16.mxu1 %vm2171_vm2, %v5668_v41 }
 0x634   : > { %v4362_v44 = vpop.permute.xlu0 %4361 }
 0x635   : > { %5497 = vmatprep.subr.bf16.mxu1 %v4362_v44 }
 0x636   : > { %v4360_v43 = vpop.permute.xlu1 %4359  ;;  %5498 = vmatpush3.bf16.msra.mxu1 %v4362_v44 }
 0x637   : > { %5499 = vmatprep.subr.bf16.mxu1 %v4360_v43 }
 0x638   : > { %v4358_v34 = vpop.permute.xlu0 %4357 }
 0x63a   : > { %5500 = vmatpush3.bf16.msra.mxu1 %v4360_v43  ;;  %v4356_v58 = vpop.permute.xlu1 %4355 }
 0x63b   : > { %5501 = vmatprep.subr.bf16.mxu1 %v4358_v34 }
 0x63e   : > { %5502 = vmatpush3.bf16.msra.mxu1 %v4358_v34 }
 0x63f   : > { %5503 = vmatprep.subr.bf16.mxu1 %v4356_v58 }
 0x642   : > { %5504 = vmatpush3.bf16.msra.mxu1 %v4356_v58 }
 0x645   : > { %5506 = vmatmul.mubr.msk.bf16.vlgmr.msra.gmra.mxu1 %vm2171_vm2, %v5669_v63  ;;  %v4466_v63 = vld [vmem:[%s7009_s15 + $0x30] sm:$0xff] }
 0x646   : > { %5509 = vmatprep.mubr.msk.bf16.mxu1 %vm2171_vm2, %v5670_v4  ;;  %v4465_v4 = vld [vmem:[%s7009_s15 + $0x28] sm:$0xff] }
 0x64d   : > { %5510 = vmatmul.mubr.msk.bf16.gmra.mxu1 %vm2171_vm2, %v5671_v12 }
 0x692   : > { %v5491_v51 = vpop.f32.mrf.mxu1 }
 0x693   : > { %v4316_v22 = vadd.f32 %v5491_v51, %v4199_v33 }
 0x694   : > { %v4283_v3 = vpop.f32.mrf.mxu1 }
 0x695   : > { %v4314_v21 = vadd.f32 %v4283_v3, %v4197_v29 }
 0x696   : > { %v5492_v31 = vpop.f32.mrf.mxu1 }
 0x697   : > { %v4317_v20 = vadd.f32 %v5492_v31, %v4200_v35 }
 0x698   : > { %v4286_v49 = vpop.f32.mrf.mxu1 }
 0x699   : > { %v4315_v28 = vadd.f32 %v4286_v49, %v4198_v59  ;;  %v4467_v49 = vld [vmem:[%s7009_s15 + $0x38] sm:$0xff] }
 0x69a   : > { %v5495_v53 = vpop.f32.mrf.mxu1 }
 0x69b   : > { %v4320_v30 = vadd.f32 %v5495_v53, %v4203_v15 }
 0x69c   : > { %v4299_v56 = vpop.f32.mrf.mxu1 }
 0x69d   : > { %v4318_v7 = vadd.f32 %v4299_v56, %v4201_v14 }
 0x69e   : > { %v5496_v0 = vpop.f32.mrf.mxu1 }
 0x69f   : > { %v4321_v48 = vadd.f32 %v5496_v0, %v4204_v16 }
 0x6a0   : > { %v4302_v40 = vpop.f32.mrf.mxu1 }
 0x6a1   : > { %v4319_v57 = vadd.f32 %v4302_v40, %v4202_v32 }
 0x705   : > { %v5507_v25 = vpop.f32.mrf.mxu1 }
 0x706   : > { %v4446_v17 = vadd.f32 %v5507_v25, %v4316_v22 }
 0x707   : > { %v4413_v10 = vpop.f32.mrf.mxu1 }
 0x708   : > { %v4444_v50 = vadd.f32 %v4413_v10, %v4314_v21  ;;  %v4454_v52 = vmax.f32 %v4446_v17, 0.0 }
 0x709   : > { %v5508_v26 = vpop.f32.mrf.mxu1 }
 0x70a   : > { %v4452_v38 = vmax.f32 %v4444_v50, 0.0  ;;  %v4447_v23 = vadd.f32 %v5508_v26, %v4317_v20  ;;  %v4470_v6 = vmul.f32 %v4462_v8, %v4454_v52 }
 0x70b   : > { %v4416_v2 = vpop.f32.mrf.mxu1 }
 0x70c   : > { %v4445_v13 = vadd.f32 %v4416_v2, %v4315_v28  ;;  %v4468_v27 = vmul.f32 %v4460_v5, %v4452_v38  ;;  %v4455_v36 = vmax.f32 %v4447_v23, 0.0  ;;  %v4479_v41 = vsel %vm4044_vm4, %v4470_v6, 0.0  ;;  %v4497_v28 = vld [vmem:[#allocation4] sm:$0x1] }
 0x70d   : > { %v5511_v37 = vpop.f32.mrf.mxu1 }
 0x70e   : > { %v4453_v24 = vmax.f32 %v4445_v13, 0.0  ;;  %v4450_v61 = vadd.f32 %v5511_v37, %v4320_v30  ;;  %v4476_v1 = vsel %vm4044_vm4, %v4468_v27, 0.0  ;;  %v4471_v39 = vmul.f32 %v4463_v42, %v4455_v36 }
 0x70f   : > { %v4429_v11 = vpop.f32.mrf.mxu1 }
 0x710   : > { %v4469_v55 = vmul.f32 %v4461_v54, %v4453_v24  ;;  %v4448_v60 = vadd.f32 %v4429_v11, %v4318_v7  ;;  %v4458_v44 = vmax.f32 %v4450_v61, 0.0  ;;  %v4481_v12 = vsel %vm4044_vm4, %v4471_v39, 0.0 }
 0x711   : > { %v5512_v18 = vpop.f32.mrf.mxu1 }
 0x712   : > { %v4477_v45 = vsel %vm4044_vm4, %v4469_v55, 0.0  ;;  %v4456_v47 = vmax.f32 %v4448_v60, 0.0  ;;  %v4451_v46 = vadd.f32 %v5512_v18, %v4321_v48  ;;  %v4474_v53 = vmul.f32 %v4466_v63, %v4458_v44 }
 0x713   : > { %v4478_v62 = vadd.f32 %v4477_v45, %v4476_v1  ;;  %v4432_v9 = vpop.f32.mrf.mxu1 }
 0x714   : > { %v4472_v43 = vmul.f32 %v4464_v19, %v4456_v47  ;;  %v4449_v34 = vadd.f32 %v4432_v9, %v4319_v57  ;;  %v4459_v51 = vmax.f32 %v4451_v46, 0.0  ;;  %v4487_v25 = vsel %vm4044_vm4, %v4474_v53, 0.0 }
 0x715   : > { %v4480_v58 = vadd.f32 %v4479_v41, %v4478_v62 }
 0x716   : > { %v4457_v3 = vmax.f32 %v4449_v34, 0.0  ;;  %v4483_v56 = vsel %vm4044_vm4, %v4472_v43, 0.0  ;;  %v4475_v29 = vmul.f32 %v4467_v49, %v4459_v51 }
 0x717   : > { %v4482_v31 = vadd.f32 %v4481_v12, %v4480_v58 }
 0x718   : > { %v4473_v0 = vmul.f32 %v4465_v4, %v4457_v3  ;;  %v4489_v21 = vsel %vm4044_vm4, %v4475_v29, 0.0 }
 0x719   : > { %v4484_v33 = vadd.f32 %v4483_v56, %v4482_v31 }
 0x71a   : > { %v4485_v40 = vsel %vm4044_vm4, %v4473_v0, 0.0 }
 0x71b   : > { %v4486_v35 = vadd.f32 %v4485_v40, %v4484_v33 }
 0x71d   : > { %v4488_v22 = vadd.f32 %v4487_v25, %v4486_v35 }
 0x71f   : > { %v4490_v59 = vadd.f32 %v4489_v21, %v4488_v22 }
 0x721   : > { %v4491_v10 = vrot.slane %v4490_v59, 4 }
 0x723   : > { %v4492_v20 = vadd.f32 %v4491_v10, %v4490_v59 }
 0x725   : > { %v4493_v17 = vrot.slane %v4492_v20, 2 }
 0x727   : > { %v4494_v50 = vadd.f32 %v4493_v17, %v4492_v20 }
 0x729   : > { %v4495_v26 = vrot.slane %v4494_v50, 1 }
 0x72b   : > { %v4496_v38 = vadd.f32 %v4495_v26, %v4494_v50 }
 0x72d   : > { %v4498_v5 = vadd.f32 %v4497_v28, %v4496_v38 }
 0x72f   : > { %5672 = vtanh.f32 %v4498_v5 }
 0x73c   : > { %v5673_v23 = vpop.eup %5672 }
 0x73d   : > { %4501 = vst.msk [vmem:[%s586_s28] sm:$0x1] %vm4500_vm5, %v5673_v23 }
 0x73e PF: > { %s31_s29 = sadd.s32 1, %s5680_s29  }
 0x73f   : > { %p28_p4 = scmp.ge.s32.totalorder %s31_s29, 4  }
 0x741   :  { %30 = sbr.rel (!%p28_p4) target bundleno = 4 (0x4), region = 154 }

</bundles_post_ra>
